<compile_context>
chip_gen: v7x
topology: tpu7x:2x2x1
jax: 0.10.0
libtpu: 0.0.40
codegen_flags: <defaults>
</compile_context>

<pallas_src>
import jax
import jax.numpy as jnp
from jax.experimental import pallas as pl
from jax.experimental.pallas import tpu as pltpu

IN_FEATS = 224 * 224          # 50176
HID = 128
KP_FEATS = 51                 # 17 keypoints * 3
OUT = 2
N_SPLIT = 2                   # K-halves / TensorCores engaged on v7x


# ---------------------------------------------------------------------------
# Fused kernel: grid = (core_half c, K tile k)
#   acc_c = sum_k x[:, K_c(k)] @ w1[K_c(k), :]          (bf16 in, f32 acc)
#   epilogue (k == last): partial_logits_c = acc_c @ w2h
#                          + [c==0] * (b1 @ w2h + kp @ w2k + b2)
# Summing partial_logits over c reproduces exactly
#   (x @ w1 + b1) @ w2h + kp @ w2k + b2  ==  fc2(cat(fc1(mask), kp))
# ---------------------------------------------------------------------------
def fused_kernel(x_ref, w1_ref, b1_ref, kp_ref, w2h_ref, w2k_ref, b2_ref,
                 o_ref, acc_ref):
    c = pl.program_id(0)          # which K-half (core on v7x megacore)
    k = pl.program_id(1)          # K tile within this half

    @pl.when(k == 0)
    def _():
        acc_ref[...] = jnp.zeros_like(acc_ref)

    acc_ref[...] += jnp.dot(x_ref[...], w1_ref[...],
                            preferred_element_type=jnp.float32)

    @pl.when(k == pl.num_programs(1) - 1)
    def _():
        # Partial fc2 on this half's partial h (f32 throughout the epilogue).
        logits = jnp.dot(acc_ref[...], w2h_ref[...],
                         preferred_element_type=jnp.float32)        # (B, OUT)
        # fc1 bias, keypoint branch and fc2 bias are added exactly once (c==0).
        extra = (jnp.dot(b1_ref[...], w2h_ref[...],
                         preferred_element_type=jnp.float32)
                 + jnp.dot(kp_ref[...], w2k_ref[...],
                           preferred_element_type=jnp.float32)
                 + b2_ref[...])                                      # (B, OUT)
        logits = logits + jnp.where(c == 0, extra, 0.0)
        o_ref[...] = logits[None].astype(o_ref.dtype)


def custom_net_head(x_flat, kp_flat, w1, b1, w2h, w2k, b2, *, tk=12544):
    """x_flat: (B, 50176) bf16, kp_flat: (B, 51) f32 -> logits (B, 2) f32."""
    B = x_flat.shape[0]
    assert IN_FEATS % (N_SPLIT * tk) == 0
    nk = IN_FEATS // (N_SPLIT * tk)          # K tiles per half

    itemsize = jnp.dtype(x_flat.dtype).itemsize
    cost = pl.CostEstimate(
        flops=2 * B * IN_FEATS * HID + 2 * B * (HID + KP_FEATS) * OUT,
        transcendentals=0,
        bytes_accessed=(IN_FEATS * HID * itemsize          # w1 stream (dominant)
                        + B * IN_FEATS * itemsize          # x stream
                        + (HID + KP_FEATS + 1) * OUT * 4   # w2 / b2
                        + (B * KP_FEATS + HID) * 4         # kp / b1
                        + N_SPLIT * B * OUT * 4))          # partial outputs

    partials = pl.pallas_call(
        fused_kernel,
        out_shape=jax.ShapeDtypeStruct((N_SPLIT, B, OUT), jnp.float32),
        grid_spec=pltpu.PrefetchScalarGridSpec(
            num_scalar_prefetch=0,
            grid=(N_SPLIT, nk),
            in_specs=[
                pl.BlockSpec((B, tk), lambda c, k: (0, c * nk + k)),
                pl.BlockSpec((tk, HID), lambda c, k: (c * nk + k, 0)),
                pl.BlockSpec((1, HID), lambda c, k: (0, 0)),
                pl.BlockSpec((B, KP_FEATS), lambda c, k: (0, 0)),
                pl.BlockSpec((HID, OUT), lambda c, k: (0, 0)),
                pl.BlockSpec((KP_FEATS, OUT), lambda c, k: (0, 0)),
                pl.BlockSpec((1, OUT), lambda c, k: (0, 0)),
            ],
            out_specs=pl.BlockSpec((1, B, OUT), lambda c, k: (c, 0, 0)),
            scratch_shapes=[pltpu.VMEM((B, HID), jnp.float32)],
        ),
        compiler_params=pltpu.CompilerParams(
            dimension_semantics=("parallel", "arbitrary"),
            vmem_limit_bytes=32 * 1024 * 1024),
        cost_estimate=cost,
    )(x_flat, w1, b1, kp_flat, w2h, w2k, b2)

    # Trailing add combines the two core-halves' partial logits.
    return partials.sum(axis=0)              # (B, OUT)


# ---------------------------------------------------------------------------
# Full forward: CustomNet((keypoints, mask_tensor))
# ---------------------------------------------------------------------------
def custom_net_forward(keypoints, mask_tensor, params):
    B = mask_tensor.shape[0]
    # nn.Flatten semantics: flatten everything after the batch dim (row-major).
    mask_flat = mask_tensor.reshape(B, -1).astype(jnp.bfloat16)   # (B, 50176)
    kp_flat = keypoints.reshape(B, -1).astype(jnp.float32)        # (B, 51)
    w2 = params["w2"]
    return custom_net_head(mask_flat, kp_flat,
                           params["w1"], params["b1"],
                           w2[:HID, :], w2[HID:, :], params["b2"])


def init_params(key):
    # Deterministic init mimicking PyTorch Linear default: U(-1/sqrt(fan_in), +).
    k1, k2, k3, k4 = jax.random.split(key, 4)
    bound1 = 1.0 / (IN_FEATS ** 0.5)
    bound2 = 1.0 / ((HID + KP_FEATS) ** 0.5)
    # Weights stored already transposed to (in, out) so kernels compute x @ W.
    # w1 is stored in bf16 (deliberate precision trade-off): fc1 is pure HBM
    # weight streaming, so halving w1's bytes ~halves wall clock.
    w1 = jax.random.uniform(k1, (IN_FEATS, HID), jnp.float32,
                            -bound1, bound1).astype(jnp.bfloat16)
    b1 = jax.random.uniform(k2, (1, HID), jnp.float32, -bound1, bound1)
    w2 = jax.random.uniform(k3, (HID + KP_FEATS, OUT), jnp.float32,
                            -bound2, bound2)
    b2 = jax.random.uniform(k4, (1, OUT), jnp.float32, -bound2, bound2)
    return {"w1": w1, "b1": b1, "w2": w2, "b2": b2}


if __name__ == "__main__":
    key = jax.random.PRNGKey(0)
    kp_key, mask_key, param_key = jax.random.split(key, 3)

    B = 2
    keypoints = jax.random.normal(kp_key, (B, 17, 3), jnp.float32)        # -> (B, 51)
    mask_tensor = jax.random.normal(mask_key, (B, 1, 224, 224), jnp.float32)
    params = init_params(param_key)

    fwd = jax.jit(custom_net_forward)
    out = jax.block_until_ready(fwd(keypoints, mask_tensor, params))

    # Pure-JAX reference using the SAME bf16-rounded inputs (f32 accumulation),
    # i.e. exactly the math the kernel is contracted to compute.
    mask_flat = mask_tensor.reshape(B, -1).astype(jnp.bfloat16).astype(jnp.float32)
    kp_flat = keypoints.reshape(B, -1)
    w1_f32 = params["w1"].astype(jnp.float32)
    h_ref = mask_flat @ w1_f32 + params["b1"]
    ref = jnp.concatenate([h_ref, kp_flat], axis=1) @ params["w2"] + params["b2"]

    assert out.shape == (B, OUT)
    assert jnp.allclose(out, ref, atol=2e-3, rtol=2e-3), (out, ref)

    print("KERNEL_OK")
</pallas_src>

<mosaic_0001>
module attributes {stable_mosaic.version = 11 : i64} {
  func.func @fused_kernel(%arg0: i32, %arg1: i32, %arg2: memref<2x12544xbf16, #tpu.memory_space<vmem>>, %arg3: memref<12544x128xbf16, #tpu.memory_space<vmem>>, %arg4: memref<1x128xf32, #tpu.memory_space<vmem>>, %arg5: memref<2x51xf32, #tpu.memory_space<vmem>>, %arg6: memref<128x2xf32, #tpu.memory_space<vmem>>, %arg7: memref<51x2xf32, #tpu.memory_space<vmem>>, %arg8: memref<1x2xf32, #tpu.memory_space<vmem>>, %arg9: memref<1x2x2xf32, #tpu.memory_space<vmem>>, %arg10: memref<2x128xf32, #tpu.memory_space<vmem>>) attributes {dimension_semantics = [#tpu.dimension_semantics<parallel>, #tpu.dimension_semantics<arbitrary>], iteration_bounds = array<i64: 2, 2>, scalar_prefetch = 0 : i64, scratch_operands = 1 : i64, tpu.core_type = #tpu.core_type<tc>, window_params = [{transform_indices = @transform_0, window_bounds = array<i64: 2, 12544>}, {transform_indices = @transform_1, window_bounds = array<i64: 12544, 128>}, {pipeline_mode = #tpu.pipeline_mode<synchronous>, transform_indices = @transform_2, window_bounds = array<i64: 1, 128>}, {pipeline_mode = #tpu.pipeline_mode<synchronous>, transform_indices = @transform_3, window_bounds = array<i64: 2, 51>}, {pipeline_mode = #tpu.pipeline_mode<synchronous>, transform_indices = @transform_4, window_bounds = array<i64: 128, 2>}, {pipeline_mode = #tpu.pipeline_mode<synchronous>, transform_indices = @transform_5, window_bounds = array<i64: 51, 2>}, {pipeline_mode = #tpu.pipeline_mode<synchronous>, transform_indices = @transform_6, window_bounds = array<i64: 1, 2>}, {transform_indices = @transform_7, window_bounds = array<i64: 1, 2, 2>}]} {
    %c0_i32 = arith.constant 0 : i32
    %0 = arith.cmpi eq, %arg1, %c0_i32 : i32
    %1 = arith.extui %0 : i1 to i32
    %c0_i32_0 = arith.constant 0 : i32
    %2 = arith.cmpi ne, %1, %c0_i32_0 : i32
    scf.if %2 {
      %cst_9 = arith.constant 0.000000e+00 : f32
      %12 = vector.broadcast %cst_9 : f32 to vector<2x128xf32>
      %c0_10 = arith.constant 0 : index
      %c0_11 = arith.constant 0 : index
      %13 = vector.load %arg10[%c0_10, %c0_11] : memref<2x128xf32, #tpu.memory_space<vmem>>, vector<2x128xf32>
      tpu.vector_store %arg10[%c0_10, %c0_11], %12 {strides = array<i32>} : memref<2x128xf32, #tpu.memory_space<vmem>>, vector<2x128xf32>,
    } else {
    }
    %c0 = arith.constant 0 : index
    %c0_1 = arith.constant 0 : index
    %3 = vector.load %arg10[%c0, %c0_1] : memref<2x128xf32, #tpu.memory_space<vmem>>, vector<2x128xf32>
    %c0_2 = arith.constant 0 : index
    %c0_3 = arith.constant 0 : index
    %4 = vector.load %arg2[%c0_2, %c0_3] : memref<2x12544xbf16, #tpu.memory_space<vmem>>, vector<2x12544xbf16>
    %c0_4 = arith.constant 0 : index
    %c0_5 = arith.constant 0 : index
    %5 = vector.load %arg3[%c0_4, %c0_5] : memref<12544x128xbf16, #tpu.memory_space<vmem>>, vector<12544x128xbf16>
    %cst = arith.constant dense<0.000000e+00> : vector<2x128xf32>
    %6 = tpu.matmul %4, %5, %cst {dimension_numbers = #tpu.dot_dimension_numbers<[1], [0], [0], [1], [0, 0, 1, 1], [], []>} : vector<2x12544xbf16>, vector<12544x128xbf16>, vector<2x128xf32> -> vector<2x128xf32>
    %7 = arith.addf %3, %6 : vector<2x128xf32>
    %c0_6 = arith.constant 0 : index
    %c0_7 = arith.constant 0 : index
    %8 = vector.load %arg10[%c0_6, %c0_7] : memref<2x128xf32, #tpu.memory_space<vmem>>, vector<2x128xf32>
    tpu.vector_store %arg10[%c0_6, %c0_7], %7 {strides = array<i32>} : memref<2x128xf32, #tpu.memory_space<vmem>>, vector<2x128xf32>,
    %c1_i32 = arith.constant 1 : i32
    %9 = arith.cmpi eq, %arg1, %c1_i32 : i32
    %10 = arith.extui %9 : i1 to i32
    %c0_i32_8 = arith.constant 0 : i32
    %11 = arith.cmpi ne, %10, %c0_i32_8 : i32
    scf.if %11 {
      %c0_9 = arith.constant 0 : index
      %c0_10 = arith.constant 0 : index
      %12 = vector.load %arg10[%c0_9, %c0_10] : memref<2x128xf32, #tpu.memory_space<vmem>>, vector<2x128xf32>
      %c0_11 = arith.constant 0 : index
      %c0_12 = arith.constant 0 : index
      %13 = vector.load %arg6[%c0_11, %c0_12] : memref<128x2xf32, #tpu.memory_space<vmem>>, vector<128x2xf32>
      %cst_13 = arith.constant dense<0.000000e+00> : vector<2x2xf32>
      %14 = tpu.matmul %12, %13, %cst_13 {dimension_numbers = #tpu.dot_dimension_numbers<[1], [0], [0], [1], [0, 0, 1, 1], [], []>} : vector<2x128xf32>, vector<128x2xf32>, vector<2x2xf32> -> vector<2x2xf32>
      %c0_14 = arith.constant 0 : index
      %c0_15 = arith.constant 0 : index
      %15 = vector.load %arg4[%c0_14, %c0_15] : memref<1x128xf32, #tpu.memory_space<vmem>>, vector<1x128xf32>
      %c0_16 = arith.constant 0 : index
      %c0_17 = arith.constant 0 : index
      %16 = vector.load %arg6[%c0_16, %c0_17] : memref<128x2xf32, #tpu.memory_space<vmem>>, vector<128x2xf32>
      %cst_18 = arith.constant dense<0.000000e+00> : vector<1x2xf32>
      %17 = tpu.matmul %15, %16, %cst_18 {dimension_numbers = #tpu.dot_dimension_numbers<[1], [0], [0], [1], [0, 0, 1, 1], [], []>} : vector<1x128xf32>, vector<128x2xf32>, vector<1x2xf32> -> vector<1x2xf32>
      %c0_19 = arith.constant 0 : index
      %c0_20 = arith.constant 0 : index
      %18 = vector.load %arg5[%c0_19, %c0_20] : memref<2x51xf32, #tpu.memory_space<vmem>>, vector<2x51xf32>
      %c0_21 = arith.constant 0 : index
      %c0_22 = arith.constant 0 : index
      %19 = vector.load %arg7[%c0_21, %c0_22] : memref<51x2xf32, #tpu.memory_space<vmem>>, vector<51x2xf32>
      %cst_23 = arith.constant dense<0.000000e+00> : vector<2x2xf32>
      %20 = tpu.matmul %18, %19, %cst_23 {dimension_numbers = #tpu.dot_dimension_numbers<[1], [0], [0], [1], [0, 0, 1, 1], [], []>} : vector<2x51xf32>, vector<51x2xf32>, vector<2x2xf32> -> vector<2x2xf32>
      %21 = vector.broadcast %17 : vector<1x2xf32> to vector<2x2xf32>
      %22 = arith.addf %21, %20 : vector<2x2xf32>
      %c0_24 = arith.constant 0 : index
      %c0_25 = arith.constant 0 : index
      %23 = vector.load %arg8[%c0_24, %c0_25] : memref<1x2xf32, #tpu.memory_space<vmem>>, vector<1x2xf32>
      %24 = vector.broadcast %23 : vector<1x2xf32> to vector<2x2xf32>
      %25 = arith.addf %22, %24 : vector<2x2xf32>
      %c0_i32_26 = arith.constant 0 : i32
      %26 = arith.cmpi eq, %arg0, %c0_i32_26 : i32
      %cst_27 = arith.constant 0.000000e+00 : f32
      %27 = vector.broadcast %cst_27 : f32 to vector<2x2xf32>
      %28 = arith.select %26, %25, %27 : vector<2x2xf32>
      %29 = arith.addf %14, %28 : vector<2x2xf32>
      %30 = vector.shape_cast %29 : vector<2x2xf32> to vector<1x2x2xf32>
      %c0_28 = arith.constant 0 : index
      %c0_29 = arith.constant 0 : index
      %c0_30 = arith.constant 0 : index
      %31 = vector.load %arg9[%c0_28, %c0_29, %c0_30] : memref<1x2x2xf32, #tpu.memory_space<vmem>>, vector<1x2x2xf32>
      tpu.vector_store %arg9[%c0_28, %c0_29, %c0_30], %30 {strides = array<i32>} : memref<1x2x2xf32, #tpu.memory_space<vmem>>, vector<1x2x2xf32>,
    } else {
    }
    return
  }
  func.func @transform_0(%arg0: i32, %arg1: i32) -> (i32, i32) {
    %c2_i32 = arith.constant 2 : i32
    %0 = arith.muli %arg0, %c2_i32 : i32
    %1 = arith.addi %0, %arg1 : i32
    %c0_i32 = arith.constant 0 : i32
    %c0_i32_0 = arith.constant 0 : i32
    return %c0_i32, %1 : i32, i32
  }
  func.func @transform_1(%arg0: i32, %arg1: i32) -> (i32, i32) {
    %c2_i32 = arith.constant 2 : i32
    %0 = arith.muli %arg0, %c2_i32 : i32
    %1 = arith.addi %0, %arg1 : i32
    %c0_i32 = arith.constant 0 : i32
    %c0_i32_0 = arith.constant 0 : i32
    return %1, %c0_i32 : i32, i32
  }
  func.func @transform_2(%arg0: i32, %arg1: i32) -> (i32, i32) {
    %c0_i32 = arith.constant 0 : i32
    %c0_i32_0 = arith.constant 0 : i32
    %c0_i32_1 = arith.constant 0 : i32
    return %c0_i32, %c0_i32_0 : i32, i32
  }
  func.func @transform_3(%arg0: i32, %arg1: i32) -> (i32, i32) {
    %c0_i32 = arith.constant 0 : i32
    %c0_i32_0 = arith.constant 0 : i32
    %c0_i32_1 = arith.constant 0 : i32
    return %c0_i32, %c0_i32_0 : i32, i32
  }
  func.func @transform_4(%arg0: i32, %arg1: i32) -> (i32, i32) {
    %c0_i32 = arith.constant 0 : i32
    %c0_i32_0 = arith.constant 0 : i32
    %c0_i32_1 = arith.constant 0 : i32
    return %c0_i32, %c0_i32_0 : i32, i32
  }
  func.func @transform_5(%arg0: i32, %arg1: i32) -> (i32, i32) {
    %c0_i32 = arith.constant 0 : i32
    %c0_i32_0 = arith.constant 0 : i32
    %c0_i32_1 = arith.constant 0 : i32
    return %c0_i32, %c0_i32_0 : i32, i32
  }
  func.func @transform_6(%arg0: i32, %arg1: i32) -> (i32, i32) {
    %c0_i32 = arith.constant 0 : i32
    %c0_i32_0 = arith.constant 0 : i32
    %c0_i32_1 = arith.constant 0 : i32
    return %c0_i32, %c0_i32_0 : i32, i32
  }
  func.func @transform_7(%arg0: i32, %arg1: i32) -> (i32, i32, i32) {
    %c0_i32 = arith.constant 0 : i32
    %c0_i32_0 = arith.constant 0 : i32
    %c0_i32_1 = arith.constant 0 : i32
    return %arg0, %c0_i32, %c0_i32_0 : i32, i32, i32
  }
}

</mosaic_0001>

<bundles_post_ra>
// kernel: custom_net_forward.1
= control target key start
LH: loop header
LB: loop body
LE: loop exit
PB: predicated region body
PF: predicated region fallthrough
CT: control target
= control target key end

     0   :  { %s14219_s0 = inlined_call_operand.vmem [shape: bf16[2,50176], index: 0, kind: input, shape index: {}]   ;;  %s14220_s1 = inlined_call_operand.hbm [shape: bf16[50176,128], index: 1, kind: input, shape index: {}]   ;;  %s14221_s2 = inlined_call_operand.hbm [shape: f32[1,128], index: 2, kind: input, shape index: {}]   ;;  %s14222_s3 = inlined_call_operand.vmem [shape: f32[2,51], index: 3, kind: input, shape index: {}]   ;;  %s14223_s4 = inlined_call_operand.vmem [shape: f32[128,2], index: 4, kind: input, shape index: {}]   ;;  %s14224_s5 = inlined_call_operand.vmem [shape: f32[51,2], index: 5, kind: input, shape index: {}]   ;;  %s14225_s6 = inlined_call_operand.hbm [shape: f32[1,2], index: 6, kind: input, shape index: {}]   ;;  %s14226_s7 = inlined_call_operand.vmem [shape: f32[2,2,2], index: 7, kind: output, shape index: {}]  }
   0x1   :  { %14233 = sst [smem:[#allocation11_spill]] %s14221_s2 }
   0x2   :  { %14234 = sst [smem:[#allocation12_spill]] %s14225_s6 }
   0x3   :  { %12 = vsyncpa [#allocation4], 0 }
   0x4   :  { %14 = vsyncpa [#allocation4 + $0x1], 0 }
   0x5   :  { %15 = vsyncpa [#allocation6], 0  ;;  %s12904_s24 = smov 0   ;;  %s12906_s25 = smov 0  }
   0x6   :  { %s12908_s26 = smov 0   ;;  %s12910_s27 = smov 0  }
   0x7   :  { %s12912_s28 = smov 0   ;;  %s12914_s29 = smov 0  }
   0x8   :  { %s12916_s30 = smov 0   ;;  %s12918_s8 = smov 0  }
   0x9 LB: > { %14235 = sst [smem:[#allocation10_spill]] %s12848_s30  ;;  %s9725_s9 = sadd.s32 4294967295, %s12852_s8   ;;  %s12852_s8 = sphi %s12918_s8, %s21_s8   ;;  %s12848_s30 = sphi %s12916_s30, %s14257_s30   ;;  %s12844_s29 = sphi %s12914_s29, %s14256_s29   ;;  %s12840_s28 = sphi %s12912_s28, %s14255_s28   ;;  %s12836_s27 = sphi %s12910_s27, %s14254_s27   ;;  %s12832_s26 = sphi %s12908_s26, %s14253_s26   ;;  %s12828_s25 = sphi %s12906_s25, %s14252_s25   ;;  %s12824_s24 = sphi %s12904_s24, %s14251_s24  }
   0xa   : > { %p81_p0 = scmp.ne.s32.totalorder %s12832_s26, %s12828_s25  ;;  %p82_p1 = scmp.eq.s32.totalorder %s12852_s8, 0 }
   0xb   : > { %p87_p2 = scmp.ne.s32.totalorder %s12828_s25, %s12824_s24  ;;  %p12947_p3 = scmp.eq.s32.totalorder %s9725_s9, 0 }
   0xc   : > { %p9731_p4 = scmp.ge.s32.totalorder %s12852_s8, 1  ;;  %p83_p5 = por %p82_p1, %p81_p0 }
   0xd   : > { %s14236_s10 = scalar_select %p12947_p3, 1, 0 }
   0xe   : > { %p229_p6 = scmp.lt.s32.totalorder %s12852_s8, 5  ;;  %p12955_p7 = por %p12947_p3, %p87_p2 }
   0xf   : > { %s12854_s13 = smov [#allocation5]   ;;  %p11824_p10 = scmp.lt.s32.totalorder %s12852_s8, 4 }
  0x10   : > { %s14237_s11 = scalar_select %p12955_p7, 1, 0 }
  0x11   : > { %p12959_p8 = pnand %p9731_p4, %p229_p6  ;;  %s242_s14 = sshll.u32 %s12854_s13, 4  ;;  %s243_s14 = int_to_ptr.vmem [resolvable:$true] %s242_s14 }
  0x12   : > { %s12855_s16 = smov [#allocation7]   ;;  %p12972_p12 = pnand %p11824_p10, %p83_p5 }
  0x13   : > { %s14238_s12 = scalar_select %p12959_p8, 1, 0 }
  0x14   : > { %p11811_p9 = pneg %p12959_p8  ;;  %s262_s17 = sshll.u32 %s12855_s16, 4  ;;  %s12976_s17 = int_to_ptr.vmem [resolvable:$true] %s262_s17 }
  0x15   : > { %s14240_s18 = scalar_select %p12972_p12, 1, 0 }
  0x16   : > { %p12968_p11 = pnand %p11811_p9, %p12947_p3  ;;  %s14241_s2 = sld [smem:[#allocation11_spill]] }
  0x18   : > { %p12698_p0 = pneg %p12968_p11 }
  0x1c   : > { %s12696_s21 = scalar_lea.hbm %s14241_s2, 16 }
  0x1d   : > { %p12697_p13 = scmp.ne.s32.totalorder %s14241_s2, %s12696_s21  ;;  %p12703_p4 = scmp.lt.u32.totalorder %s12696_s21, %s14241_s2 }
  0x1f   : > { %p12699_p1 = pnand %p12698_p0, %p12697_p13 }
  0x21   : > { %p12700_p2 = pneg %p12699_p1 }
  0x23   : > { %p12705_p5 = pnand %p12703_p4, %p12700_p2 }
  0x25   : > { %12708 = shalt.err (!%p12705_p5)
}
  0x26   : > { %s12709_s13 = scalar_lea.vmem %s243_s14, 16  ;;  %s12716_s16 = scalar_lea.vmem %s243_s14, 32 }
  0x27   : > { %p12710_p6 = scmp.ne.s32.totalorder %s243_s14, %s12709_s13  ;;  %p12717_p3 = scmp.lt.s32.totalorder %s243_s14, %s243_s14 }
  0x28   : > { %p12718_p7 = scmp.lt.s32.totalorder %s12716_s16, %s12709_s13 }
  0x29   : > { %p12712_p9 = pnand %p12710_p6, %p12698_p0 }
  0x2a   : > { %p12719_p8 = por %p12718_p7, %p12717_p3 }
  0x2b   : > { %p12713_p10 = pneg %p12712_p9 }
  0x2d   : > { %p12720_p12 = pnand %p12719_p8, %p12713_p10 }
  0x2f   : > { %12723 = shalt.err (!%p12720_p12)
}
  0x30   : > { %11814 = dma.hbm_to_vmem [thread:$0]  (!%p12968_p11), %s14241_s2, 16, %s243_s14, [#allocation6]  }
  0x31   : > { %s14242_s6 = sld [smem:[#allocation12_spill]] }
  0x37   : > { %s12724_s23 = scalar_lea.hbm %s14242_s6, 16 }
  0x38   : > { %p12725_p13 = scmp.ne.s32.totalorder %s14242_s6, %s12724_s23  ;;  %p12731_p8 = scmp.lt.u32.totalorder %s12724_s23, %s14242_s6 }
  0x3a   : > { %p12727_p3 = pnand %p12725_p13, %p12698_p0 }
  0x3c   : > { %p12728_p7 = pneg %p12727_p3 }
  0x3e   : > { %p12733_p12 = pnand %p12731_p8, %p12728_p7 }
  0x40   : > { %12736 = shalt.err (!%p12733_p12)
}
  0x41   : > { %s12737_s14 = scalar_lea.vmem %s12976_s17, 16  ;;  %s12744_s19 = scalar_lea.vmem %s12976_s17, 32 }
  0x42   : > { %p12738_p1 = scmp.ne.s32.totalorder %s12976_s17, %s12737_s14  ;;  %p12745_p5 = scmp.lt.s32.totalorder %s12976_s17, %s12976_s17 }
  0x43   : > { %p12746_p6 = scmp.lt.s32.totalorder %s12744_s19, %s12737_s14 }
  0x44   : > { %p12740_p2 = pnand %p12738_p1, %p12698_p0 }
  0x45   : > { %p12747_p9 = por %p12746_p6, %p12745_p5 }
  0x46   : > { %p12741_p4 = pneg %p12740_p2 }
  0x48   : > { %p12748_p10 = pnand %p12747_p9, %p12741_p4 }
  0x4a   : > { %12751 = shalt.err (!%p12748_p10)
}
  0x4b   : > { %11817 = dma.hbm_to_vmem [thread:$0]  (!%p12968_p11), %s14242_s6, 16, %s12976_s17, [#allocation6]  }
  0x4c   : > { %s30_s22 = sadd.s32 1, %s12844_s29  ;;  %s33_s23 = sadd.s32 1, %s12848_s30 }
  0x4d   : > { %p31_p0 = scmp.ge.s32.totalorder %s30_s22, 2  ;;  %s9729_s24 = sshll.u32 %s12848_s30, 1 }
  0x4e   : > { %s68_s9 = sadd.s32 %s12844_s29, %s9729_s24  ;;  %s285_s15 = sand.u32 1, %s12832_s26  }
  0x4f   : > { %s14259_s22 = smov (%p31_p0, %s30_s22), 0  ;;  %s14261_s23 = smov (!%p31_p0, %s33_s23), %s12848_s30 }
  0x50   : > { %s10534_s16 = smul.u32 100352, %s68_s9  ;;  %p35_p13 = scmp.ge.s32.totalorder %s14261_s23, 2 }
  0x51   : > { %s11799_s14 = smul.u32 6272, %s285_s15  ;;  %p14244_p7 = scmp.ne.s32.totalorder %s14240_s18, 0 }
  0x52   : > { %s13038_s17 = scalar_lea.hbm %s14220_s1, %s10534_s16  ;;  %s14263_s23 = smov (%p35_p13, %s14261_s23), 0 }
  0x53   : > { %s9730_s21 = sshll.u32 %s14263_s23, 1  ;;  %s289_s24 = scalar_lea.vmem [#allocation3], %s11799_s14 }
  0x54   : > { %s298_s13 = sshll.u32 %s289_s24, 4  ;;  %s70_s2 = sadd.s32 %s9730_s21, %s14259_s22  ;;  %s13044_s13 = int_to_ptr.vmem [resolvable:$true] %s298_s13 }
  0x55   : > { %s71_s6 = ssub.s32 %s68_s9, %s70_s2  ;;  %s13050_s16 = scalar_lea.sflag [#allocation4], %s285_s15 }
  0x56   : > { %p13046_p11 = scmp.eq.s32.totalorder %s71_s6, 0  ;;  %s12752_s19 = scalar_lea.hbm %s13038_s17, 100352 }
  0x57   : > { %p12753_p3 = scmp.ne.s32.totalorder %s13038_s17, %s12752_s19  ;;  %p12754_p8 = pneg %p14244_p7 }
  0x58   : > { %s12757_s21 = scalar_lea.hbm %s14220_s1, 401408  ;;  %p12758_p2 = scmp.lt.u32.totalorder %s13038_s17, %s14220_s1 }
  0x59   : > { %p12755_p12 = pnand %p12754_p8, %p12753_p3  ;;  %p12759_p4 = scmp.lt.u32.totalorder %s12757_s21, %s12752_s19 }
  0x5a   : > { %p12761_p6 = scmp.lt.u32.totalorder %s12752_s19, %s13038_s17 }
  0x5b   : > { %p12756_p1 = pneg %p12755_p12  ;;  %p12760_p5 = por %p12759_p4, %p12758_p2 }
  0x5d   : > { %p12762_p9 = por %p12761_p6, %p12760_p5 }
  0x5f   : > { %p12763_p10 = pnand %p12762_p9, %p12756_p1 }
  0x61   : > { %12766 = shalt.err (!%p12763_p10)
}
  0x62   : > { %s12767_s6 = scalar_lea.vmem %s13044_s13, 100352  ;;  %s12856_s9 = smov [#allocation3]  }
  0x63   : > { %p12768_p0 = scmp.ne.s32.totalorder %s13044_s13, %s12767_s6  ;;  %s12772_s15 = sshll.u32 %s12856_s9, 4  ;;  %s12773_s15 = int_to_ptr.vmem [resolvable:$false] %s12772_s15 }
  0x64   : > { %s12774_s14 = scalar_lea.vmem %s12773_s15, 200704  ;;  %p12775_p12 = scmp.lt.s32.totalorder %s13044_s13, %s12773_s15 }
  0x65   : > { %p12770_p13 = pnand %p12768_p0, %p12754_p8  ;;  %p12776_p2 = scmp.lt.s32.totalorder %s12774_s14, %s12767_s6 }
  0x67   : > { %p12771_p3 = pneg %p12770_p13  ;;  %p12777_p4 = por %p12776_p2, %p12775_p12 }
  0x69   : > { %p12778_p5 = pnand %p12777_p4, %p12771_p3 }
  0x6b   : > { %12781 = shalt.err (!%p12778_p5)
}
  0x6c   : > { %s12857_s19 = smov 64   ;;  %s12858_s20 = smov 4  }
  0x6d   : > { %11821 = dma.hbm_to_vmem [thread:$0]  (!%p14244_p7), %s13038_s17, 100352, %s13044_s13, %s13050_s16, %s12857_s19, %s12857_s19, %s12858_s20  }
  0x6e   : > { %s14245_s21 = sadd.s32 1, %s12832_s26  ;;  %p14246_p8 = scmp.ne.s32.totalorder %s14238_s12, 0 }
  0x6f   : > { %s13083_s24 = scalar_select %p13046_p11, %s12832_s26, %s14245_s21  }
  0x70   : > { %310 = sbr.rel (%p14246_p8) target bundleno = 1378 (0x562), region = 48  ;;  %s312_s2 = sand.u32 (!%p14246_p8), 1, %s12828_s25  }
  0x71   : > { %s11800_s6 = smul.u32 (!%p14246_p8), 6272, %s312_s2  ;;  %s313_s9 = scalar_lea.sflag (!%p14246_p8), [#allocation4], %s312_s2 }
  0x72   : > { %p14247_p1 = scmp.ne.s32.totalorder (!%p14246_p8), %s14237_s11, 0 }
  0x73   : > { %s13088_s15 = scalar_lea.vmem (!%p14246_p8), [#allocation3], %s11800_s6 }
  0x77   : > { %12815 = dma.done.wait (%p14247_p1), %s313_s9, 100352  }
  0x78   : > { %12817 = vsyncadd (%p14247_p1), %s313_s9, 4294866944  ;;  %p14248_p7 = scmp.ne.s32.totalorder %s14236_s10, 0 }
  0x7a   : > { %12819 = dma.done.wait (%p14248_p7), [#allocation6], 32  }
  0x7b   : > { %12821 = vsyncadd (%p14248_p7), [#allocation6], 4294967264  ;;  %s9740_s30 = sshll.u32 %s12840_s28, 1  ;;  %p372_p11 = scmp.lt.s32.totalorder %s12840_s28, 1 }
  0x7c   : > { %s361_s12 = sadd.s32 %s12836_s27, %s9740_s30  ;;  %p9742_p9 = scmp.ne.s32.totalorder %s12836_s27, 0 }
  0x7d   : > { %s362_s18 = smul.u32 98, %s361_s12  ;;  %v12859_v0 = vmov (!%p9742_p9), 0.0  }
  0x7e   : > { %s373_s13 = scalar_select %p372_p11, %s12840_s28, 1 }
  0x7f   : > { %p363_p6 = scmp.lt.s32.totalorder %s362_s18, 391  ;;  %380 = sbr.rel (%p9742_p9) target bundleno = 134 (0x86), region = 64  ;;  %381 = vst [vmem:[#allocation2] sm:$0x3] (!%p9742_p9), %v12859_v0 }
  0x80   : > { %s9741_s17 = sshll.u32 %s373_s13, 1 }
  0x81   : > { %s14265_s18 = smov (!%p363_p6, %s362_s18), 391  ;;  %s13105_s14 = scalar_lea.vmem %s14226_s7, %s9741_s17 }
  0x82   : > { %s13110_s20 = scalar_lea.vmem %s14219_s0, %s14265_s18 }
  0x86 PF: > { %v11900_v1 = vld [vmem:[%s13088_s15 + $0x40] sm:$0xff]   ;;  %v11904_v5 = vld [vmem:[%s13088_s15 + $0x48] sm:$0xff]   ;;  %v11908_v9 = vld [vmem:[%s13088_s15 + $0x50] sm:$0xff]   ;;  %v1981_v30 = vlaneseq  ;;  %v12860_v36 = vmov 1966171168   ;;  %p10528_p10 = scmp.ne.s32.totalorder %s12836_s27, 1 }
  0x87   : > { %v11901_v2 = vld [vmem:[%s13088_s15 + $0xc0] sm:$0xff]   ;;  %10535 = vmatprep.subr.bf16.mxu0 %v11900_v1  ;;  %v11905_v6 = vld [vmem:[%s13088_s15 + $0xc8] sm:$0xff]   ;;  %v11909_v10 = vld [vmem:[%s13088_s15 + $0xd0] sm:$0xff]   ;;  %v1979_v37 = vunpack.c.l.s4 %v12860_v36  ;;  %vm12862_vm0 = vmmov (!%p10528_p10), 0   ;;  %vm9455_vm1 = vcmask (!%p10528_p10), 1042432   ;;  %vm9451_vm2 = vcmask (!%p10528_p10), 416768  }
  0x88   : > { %v11902_v3 = vld [vmem:[%s13088_s15] sm:$0xff]   ;;  %10557 = vmatprep.subr.bf16.mxu1 %v11901_v2  ;;  %v11906_v7 = vld [vmem:[%s13088_s15 + $0x8] sm:$0xff]   ;;  %v11910_v11 = vld [vmem:[%s13088_s15 + $0x10] sm:$0xff]   ;;  %v13145_v34 = vshrl.u32 %v1981_v30, 7  ;;  %p9542_p0 = scmp.eq.s32.totalorder (!%p10528_p10), %s12840_s28, 0  ;;  %vm9617_vm4 = vcmask (!%p10528_p10), 9216  }
  0x89   : > { %v11903_v4 = vld [vmem:[%s13088_s15 + $0x80] sm:$0xff]   ;;  %10536 = vmatpush3.bf16.msra.mxu0 %v11902_v3  ;;  %v11907_v8 = vld [vmem:[%s13088_s15 + $0x88] sm:$0xff]   ;;  %v11911_v12 = vld [vmem:[%s13088_s15 + $0x90] sm:$0xff]   ;;  %v1980_v40 = vunpack.c.0.s8 %v1979_v37 }
  0x8a   : > { %10558 = vmatpush3.bf16.msra.mxu1 %v11903_v4  ;;  %10537 = vmatprep.subr.bf16.mxu0 %v11904_v5  ;;  %v11912_v13 = vld [vmem:[%s13088_s15 + $0x58] sm:$0xff]   ;;  %v11916_v17 = vld [vmem:[%s13088_s15 + $0x60] sm:$0xff]   ;;  %v11920_v21 = vld [vmem:[%s13088_s15 + $0x68] sm:$0xff]  }
  0x8b   : > { %10559 = vmatprep.subr.bf16.mxu1 %v11905_v6  ;;  %v11913_v14 = vld [vmem:[%s13088_s15 + $0xd8] sm:$0xff]   ;;  %v11917_v18 = vld [vmem:[%s13088_s15 + $0xe0] sm:$0xff]   ;;  %v11921_v22 = vld [vmem:[%s13088_s15 + $0xe8] sm:$0xff]   ;;  %v13151_v42 = vsub.s32 %v1980_v40, %v13145_v34 }
  0x8c   : > { %v11914_v15 = vld [vmem:[%s13088_s15 + $0x18] sm:$0xff]   ;;  %v11918_v19 = vld [vmem:[%s13088_s15 + $0x20] sm:$0xff]   ;;  %v11922_v23 = vld [vmem:[%s13088_s15 + $0x28] sm:$0xff]  }
  0x8d   : > { %10538 = vmatpush3.bf16.msra.mxu0 %v11906_v7  ;;  %v11915_v16 = vld [vmem:[%s13088_s15 + $0x98] sm:$0xff]   ;;  %v11919_v20 = vld [vmem:[%s13088_s15 + $0xa0] sm:$0xff]   ;;  %v11923_v24 = vld [vmem:[%s13088_s15 + $0xa8] sm:$0xff]  }
  0x8e   : > { %10560 = vmatpush3.bf16.msra.mxu1 %v11907_v8  ;;  %10539 = vmatprep.subr.bf16.mxu0 %v11908_v9  ;;  %v11924_v25 = vld [vmem:[%s13088_s15 + $0x70] sm:$0xff]   ;;  %v11928_v29 = vld [vmem:[%s13088_s15 + $0x78] sm:$0xff]   ;;  %v11933_v35 = vld [vmem:[%s13088_s15 + $0x140] sm:$0xff]  }
  0x8f   : > { %10561 = vmatprep.subr.bf16.mxu1 %v11909_v10  ;;  %v11925_v26 = vld [vmem:[%s13088_s15 + $0xf0] sm:$0xff]   ;;  %v11929_v31 = vld [vmem:[%s13088_s15 + $0xf8] sm:$0xff]   ;;  %v11935_v41 = vld [vmem:[%s13088_s15 + $0x1c0] sm:$0xff]  }
  0x90   : > { %v11926_v27 = vld [vmem:[%s13088_s15 + $0x30] sm:$0xff]   ;;  %v11930_v32 = vld [vmem:[%s13088_s15 + $0x38] sm:$0xff]   ;;  %v11934_v48 = vld [vmem:[%s13088_s15 + $0x100] sm:$0xff]  }
  0x91   : > { %10540 = vmatpush3.bf16.msra.mxu0 %v11910_v11  ;;  %v11927_v28 = vld [vmem:[%s13088_s15 + $0xb0] sm:$0xff]   ;;  %v11931_v33 = vld [vmem:[%s13088_s15 + $0xb8] sm:$0xff]   ;;  %v11936_v50 = vld [vmem:[%s13088_s15 + $0x180] sm:$0xff]  }
  0x92   : > { %10562 = vmatpush3.bf16.msra.mxu1 %v11911_v12  ;;  %10541 = vmatprep.subr.bf16.mxu0 %v11912_v13  ;;  %v383_v38 = vld [vmem:[%s13110_s20] sm:$0xff]  ;;  %v11937_v53 = vld [vmem:[%s13088_s15 + $0x148] sm:$0xff]   ;;  %v11941_v59 = vld [vmem:[%s13088_s15 + $0x150] sm:$0xff]  }
  0x93   : > { %10563 = vmatprep.subr.bf16.mxu1 %v11913_v14  ;;  %v1977_v39 = vcombine.high %v383_v38, %v383_v38  ;;  %v1984_v43 = vrot.slane %v383_v38, %v13151_v42  ;;  %v11938_v55 = vld [vmem:[%s13088_s15 + $0x108] sm:$0xff]   ;;  %v11942_v60 = vld [vmem:[%s13088_s15 + $0x110] sm:$0xff]   ;;  %v11945_v63 = vld [vmem:[%s13088_s15 + $0x158] sm:$0xff]  }
  0x94   : > { %v11939_v56 = vld [vmem:[%s13088_s15 + $0x1c8] sm:$0xff]   ;;  %v11943_v61 = vld [vmem:[%s13088_s15 + $0x1d0] sm:$0xff]   ;;  %v11946_v0 = vld [vmem:[%s13088_s15 + $0x118] sm:$0xff]  }
  0x95   : > { %10542 = vmatpush3.bf16.msra.mxu0 %v11914_v15  ;;  %v13155_v44 = vrot.slane %v1977_v39, %v13151_v42  ;;  %v1992_v45 = vcombine.high %v1984_v43, %v1984_v43  ;;  %v2000_v46 = vrot.slane %v1984_v43, %v13151_v42  ;;  %v11940_v58 = vld [vmem:[%s13088_s15 + $0x188] sm:$0xff]   ;;  %v11944_v62 = vld [vmem:[%s13088_s15 + $0x190] sm:$0xff]   ;;  %v11947_v1 = vld [vmem:[%s13088_s15 + $0x1d8] sm:$0xff]  }
  0x96   : > { %10564 = vmatpush3.bf16.msra.mxu1 %v11915_v16  ;;  %10543 = vmatprep.subr.bf16.mxu0 %v11916_v17  ;;  %v11948_v2 = vld [vmem:[%s13088_s15 + $0x198] sm:$0xff]   ;;  %v11949_v3 = vld [vmem:[%s13088_s15 + $0x160] sm:$0xff]   ;;  %v11953_v7 = vld [vmem:[%s13088_s15 + $0x168] sm:$0xff]  }
  0x97   : > { %10565 = vmatprep.subr.bf16.mxu1 %v11917_v18  ;;  %v1993_v47 = vcombine.high %v13155_v44, %v13155_v44  ;;  %v2014_v49 = vrot.slane %v1992_v45, %v13151_v42  ;;  %v2022_v52 = vcombine.high %v2000_v46, %v2000_v46  ;;  %v11950_v4 = vld [vmem:[%s13088_s15 + $0x120] sm:$0xff]   ;;  %v11954_v8 = vld [vmem:[%s13088_s15 + $0x128] sm:$0xff]   ;;  %v11957_v11 = vld [vmem:[%s13088_s15 + $0x170] sm:$0xff]  }
  0x98   : > { %v11951_v5 = vld [vmem:[%s13088_s15 + $0x1e0] sm:$0xff]   ;;  %v11955_v9 = vld [vmem:[%s13088_s15 + $0x1e8] sm:$0xff]   ;;  %v11958_v12 = vld [vmem:[%s13088_s15 + $0x130] sm:$0xff]  }
  0x99   : > { %10544 = vmatpush3.bf16.msra.mxu0 %v11918_v19  ;;  %v2021_v51 = vrot.slane %v1993_v47, %v13151_v42  ;;  %7421 = vmatprep.mubr.bf16.mxu0 %v2014_v49  ;;  %v2024_v54 = vcombine.high %v2014_v49, %v2014_v49  ;;  %v11952_v6 = vld [vmem:[%s13088_s15 + $0x1a0] sm:$0xff]   ;;  %v11956_v10 = vld [vmem:[%s13088_s15 + $0x1a8] sm:$0xff]   ;;  %v11959_v13 = vld [vmem:[%s13088_s15 + $0x1f0] sm:$0xff]   ;;  %v2007_v19 = vrot.slane %v13155_v44, %v13151_v42 }
  0x9a   : > { %10566 = vmatpush3.bf16.msra.mxu1 %v11919_v20  ;;  %10545 = vmatprep.subr.bf16.mxu0 %v11920_v21  ;;  %v11960_v14 = vld [vmem:[%s13088_s15 + $0x1b0] sm:$0xff]   ;;  %v11961_v15 = vld [vmem:[%s13088_s15 + $0x178] sm:$0xff]   ;;  %v11965_v20 = vld [vmem:[%s13088_s15 + $0x240] sm:$0xff]  }
  0x9b   : > { %10567 = vmatprep.subr.bf16.mxu1 %v11921_v22  ;;  %v2025_v57 = vcombine.high %v2021_v51, %v2021_v51  ;;  %7461 = vmatprep.mubr.bf16.mxu1 %v2024_v54  ;;  %v11962_v16 = vld [vmem:[%s13088_s15 + $0x138] sm:$0xff]   ;;  %v11966_v21 = vld [vmem:[%s13088_s15 + $0x200] sm:$0xff]   ;;  %v11974_v30 = vld [vmem:[%s13088_s15 + $0x210] sm:$0xff]  }
  0x9c   : > { %v11963_v17 = vld [vmem:[%s13088_s15 + $0x1f8] sm:$0xff]   ;;  %v11967_v22 = vld [vmem:[%s13088_s15 + $0x2c0] sm:$0xff]   ;;  %v11985_v43 = vld [vmem:[%s13088_s15 + $0x268] sm:$0xff]  }
  0x9d   : > { %10546 = vmatpush3.bf16.msra.mxu0 %v11922_v23  ;;  %v11964_v18 = vld [vmem:[%s13088_s15 + $0x1b8] sm:$0xff]   ;;  %v11968_v23 = vld [vmem:[%s13088_s15 + $0x280] sm:$0xff]   ;;  %v11986_v44 = vld [vmem:[%s13088_s15 + $0x228] sm:$0xff]  }
  0x9e   : > { %10568 = vmatpush3.bf16.msra.mxu1 %v11923_v24  ;;  %10547 = vmatprep.subr.bf16.mxu0 %v11924_v25  ;;  %v2023_v24 = vcombine.high %v2007_v19, %v2007_v19  ;;  %v11969_v25 = vld [vmem:[%s13088_s15 + $0x248] sm:$0xff]   ;;  %v11979_v36 = vld [vmem:[%s13088_s15 + $0x2d8] sm:$0xff]   ;;  %v11981_v38 = vld [vmem:[%s13088_s15 + $0x260] sm:$0xff]  }
  0x9f   : > { %10569 = vmatprep.subr.bf16.mxu1 %v11925_v26  ;;  %v11970_v26 = vld [vmem:[%s13088_s15 + $0x208] sm:$0xff]   ;;  %v11980_v37 = vld [vmem:[%s13088_s15 + $0x298] sm:$0xff]   ;;  %v11982_v39 = vld [vmem:[%s13088_s15 + $0x220] sm:$0xff]  }
  0xa0   : > { %v11983_v40 = vld [vmem:[%s13088_s15 + $0x2e0] sm:$0xff]   ;;  %v11987_v45 = vld [vmem:[%s13088_s15 + $0x2e8] sm:$0xff]  }
  0xa1   : > { %10548 = vmatpush3.bf16.msra.mxu0 %v11926_v27  ;;  %v11971_v27 = vld [vmem:[%s13088_s15 + $0x2c8] sm:$0xff]  }
  0xa2   : > { %10570 = vmatpush3.bf16.msra.mxu1 %v11927_v28  ;;  %10549 = vmatprep.subr.bf16.mxu0 %v11928_v29  ;;  %v11972_v28 = vld [vmem:[%s13088_s15 + $0x288] sm:$0xff]   ;;  %v11973_v29 = vld [vmem:[%s13088_s15 + $0x250] sm:$0xff]  }
  0xa3   : > { %10571 = vmatprep.subr.bf16.mxu1 %v11929_v31  ;;  %v11975_v31 = vld [vmem:[%s13088_s15 + $0x2d0] sm:$0xff]   ;;  %v384_v47 = vld [vmem:[%s13110_s20 + $0x8] sm:$0xff] }
  0xa4   : > { %v2033_v49 = vrot.slane %v384_v47, %v13151_v42 }
  0xa5   : > { %10550 = vmatpush3.bf16.msra.mxu0 %v11930_v32  ;;  %v11976_v32 = vld [vmem:[%s13088_s15 + $0x290] sm:$0xff]  }
  0xa6   : > { %10572 = vmatpush3.bf16.msra.mxu1 %v11931_v33  ;;  %10579 = vmatprep.subr.bf16.mxu0 %v11933_v35  ;;  %v11977_v33 = vld [vmem:[%s13088_s15 + $0x258] sm:$0xff]  }
  0xa7   : > { %10601 = vmatprep.subr.bf16.mxu1 %v11935_v41  ;;  %v11978_v35 = vld [vmem:[%s13088_s15 + $0x218] sm:$0xff]   ;;  %v11984_v41 = vld [vmem:[%s13088_s15 + $0x2a0] sm:$0xff]  }
  0xa8   : > { %7422 = vmatmul.mubr.bf16.vlgmr.msra.gmra.mrb[0].mxu0 %v2000_v46  ;;  %v11988_v46 = vld [vmem:[%s13088_s15 + $0x2a8] sm:$0xff]  }
  0xa9   : > { %10580 = vmatpush3.bf16.msra.mxu0 %v11934_v48  ;;  %7462 = vmatmul.mubr.bf16.vlgmr.msra.gmra.mrb[0].mxu1 %v2022_v52  ;;  %v11989_v48 = vld [vmem:[%s13088_s15 + $0x270] sm:$0xff]  }
  0xaa   : > { %10581 = vmatprep.subr.bf16.mxu0 %v11937_v53  ;;  %10602 = vmatpush3.bf16.msra.mxu1 %v11936_v50  ;;  %v2026_v50 = vcombine.high %v384_v47, %v384_v47  ;;  %v11991_v52 = vld [vmem:[%s13088_s15 + $0x2f0] sm:$0xff]   ;;  %v2041_v53 = vcombine.high %v2033_v49, %v2033_v49 }
  0xab   : > { %7501 = vmatprep.mubr.bf16.mxu0 %v2021_v51  ;;  %10603 = vmatprep.subr.bf16.mxu1 %v11939_v56  ;;  %v11990_v51 = vld [vmem:[%s13088_s15 + $0x230] sm:$0xff]   ;;  %v11993_v56 = vld [vmem:[%s13088_s15 + $0x278] sm:$0xff]  }
  0xac   : > { %7541 = vmatprep.mubr.bf16.mxu1 %v2025_v57  ;;  %v13224_v54 = vrot.slane %v2026_v50, %v13151_v42  ;;  %v2063_v57 = vrot.slane %v2041_v53, %v13151_v42  ;;  %v12038_v47 = vld [vmem:[%s13088_s15 + $0x450] sm:$0xff]   ;;  %v12044_v53 = vld [vmem:[%s13088_s15 + $0x4d8] sm:$0xff]  }
  0xad   : > { %10582 = vmatpush3.bf16.msra.mxu0 %v11938_v55  ;;  %v11992_v55 = vld [vmem:[%s13088_s15 + $0x2b0] sm:$0xff]  }
  0xae   : > { %10583 = vmatprep.subr.bf16.mxu0 %v11941_v59  ;;  %10604 = vmatpush3.bf16.msra.mxu1 %v11940_v58  ;;  %v11994_v58 = vld [vmem:[%s13088_s15 + $0x238] sm:$0xff]   ;;  %v2042_v59 = vcombine.high %v13224_v54, %v13224_v54  ;;  %v12041_v50 = vld [vmem:[%s13088_s15 + $0x490] sm:$0xff]  }
  0xaf   : > { %10605 = vmatprep.subr.bf16.mxu1 %v11943_v61  ;;  %v2073_v61 = vcombine.high %v2063_v57, %v2063_v57 }
  0xb1   : > { %10584 = vmatpush3.bf16.msra.mxu0 %v11942_v60  ;;  %v11995_v60 = vld [vmem:[%s13088_s15 + $0x2f8] sm:$0xff]  }
  0xb2   : > { %10585 = vmatprep.subr.bf16.mxu0 %v11945_v63  ;;  %10606 = vmatpush3.bf16.msra.mxu1 %v11944_v62  ;;  %v11996_v62 = vld [vmem:[%s13088_s15 + $0x2b8] sm:$0xff]   ;;  %v2049_v63 = vrot.slane %v2033_v49, %v13151_v42  ;;  %v12040_v49 = vld [vmem:[%s13088_s15 + $0x4d0] sm:$0xff]  }
  0xb3   : > { %10607 = vmatprep.subr.bf16.mxu1 %v11947_v1  ;;  %v11998_v1 = vld [vmem:[%s13088_s15 + $0x300] sm:$0xff]  }
  0xb5   : > { %10586 = vmatpush3.bf16.msra.mxu0 %v11946_v0  ;;  %v11997_v0 = vld [vmem:[%s13088_s15 + $0x340] sm:$0xff]  }
  0xb6   : > { %10587 = vmatprep.subr.bf16.mxu0 %v11949_v3  ;;  %10608 = vmatpush3.bf16.msra.mxu1 %v11948_v2  ;;  %v2070_v2 = vrot.slane %v2042_v59, %v13151_v42  ;;  %v11999_v3 = vld [vmem:[%s13088_s15 + $0x3c0] sm:$0xff]   ;;  %v12050_v59 = vld [vmem:[%s13088_s15 + $0x468] sm:$0xff]  }
  0xb7   : > { %10609 = vmatprep.subr.bf16.mxu1 %v11951_v5  ;;  %v2071_v5 = vcombine.high %v2049_v63, %v2049_v63 }
  0xb9   : > { %10588 = vmatpush3.bf16.msra.mxu0 %v11950_v4  ;;  %v12000_v4 = vld [vmem:[%s13088_s15 + $0x380] sm:$0xff]  }
  0xba   : > { %10589 = vmatprep.subr.bf16.mxu0 %v11953_v7  ;;  %10610 = vmatpush3.bf16.msra.mxu1 %v11952_v6  ;;  %v12001_v6 = vld [vmem:[%s13088_s15 + $0x348] sm:$0xff]  }
  0xbb   : > { %10611 = vmatprep.subr.bf16.mxu1 %v11955_v9  ;;  %v12002_v7 = vld [vmem:[%s13088_s15 + $0x308] sm:$0xff]  }
  0xbc   : > { %v12003_v9 = vld [vmem:[%s13088_s15 + $0x3c8] sm:$0xff]  }
  0xbd   : > { %10590 = vmatpush3.bf16.msra.mxu0 %v11954_v8  ;;  %v2074_v8 = vcombine.high %v2070_v2, %v2070_v2 }
  0xbe   : > { %10591 = vmatprep.subr.bf16.mxu0 %v11957_v11  ;;  %10612 = vmatpush3.bf16.msra.mxu1 %v11956_v10  ;;  %v12004_v10 = vld [vmem:[%s13088_s15 + $0x388] sm:$0xff]   ;;  %v12005_v11 = vld [vmem:[%s13088_s15 + $0x350] sm:$0xff]  }
  0xbf   : > { %10613 = vmatprep.subr.bf16.mxu1 %v11959_v13  ;;  %v12007_v13 = vld [vmem:[%s13088_s15 + $0x3d0] sm:$0xff]  }
  0xc1   : > { %10592 = vmatpush3.bf16.msra.mxu0 %v11958_v12  ;;  %v12006_v12 = vld [vmem:[%s13088_s15 + $0x310] sm:$0xff]  }
  0xc2   : > { %10593 = vmatprep.subr.bf16.mxu0 %v11961_v15  ;;  %10614 = vmatpush3.bf16.msra.mxu1 %v11960_v14  ;;  %v12008_v14 = vld [vmem:[%s13088_s15 + $0x390] sm:$0xff]   ;;  %v12009_v15 = vld [vmem:[%s13088_s15 + $0x358] sm:$0xff]  }
  0xc3   : > { %10615 = vmatprep.subr.bf16.mxu1 %v11963_v17  ;;  %v12011_v17 = vld [vmem:[%s13088_s15 + $0x3d8] sm:$0xff]  }
  0xc5   : > { %10594 = vmatpush3.bf16.msra.mxu0 %v11962_v16  ;;  %v12010_v16 = vld [vmem:[%s13088_s15 + $0x318] sm:$0xff]  }
  0xc6   : > { %10623 = vmatprep.subr.bf16.mxu0 %v11965_v20  ;;  %10616 = vmatpush3.bf16.msra.mxu1 %v11964_v18  ;;  %v12012_v18 = vld [vmem:[%s13088_s15 + $0x398] sm:$0xff]   ;;  %v12014_v20 = vld [vmem:[%s13088_s15 + $0x320] sm:$0xff]  }
  0xc7   : > { %10645 = vmatprep.subr.bf16.mxu1 %v11967_v22  ;;  %v12016_v22 = vld [vmem:[%s13088_s15 + $0x3a0] sm:$0xff]  }
  0xc8   : > { %7502 = vmatmul.mubr.bf16.vlgmr.msra.gmra.mrb[4].mxu0 %v2007_v19  ;;  %v12013_v19 = vld [vmem:[%s13088_s15 + $0x360] sm:$0xff]  }
  0xc9   : > { %10624 = vmatpush3.bf16.msra.mxu0 %v11966_v21  ;;  %7542 = vmatmul.mubr.bf16.vlgmr.msra.gmra.mrb[4].mxu1 %v2023_v24  ;;  %v12015_v21 = vld [vmem:[%s13088_s15 + $0x3e0] sm:$0xff]   ;;  %v12018_v24 = vld [vmem:[%s13088_s15 + $0x328] sm:$0xff]  }
  0xca   : > { %10625 = vmatprep.subr.bf16.mxu0 %v11969_v25  ;;  %10646 = vmatpush3.bf16.msra.mxu1 %v11968_v23  ;;  %v12017_v23 = vld [vmem:[%s13088_s15 + $0x368] sm:$0xff]  }
  0xcb   : > { %10647 = vmatprep.subr.bf16.mxu1 %v11971_v27  ;;  %7581 = vmatprep.mubr.bf16.mxu0 %v2063_v57  ;;  %v12019_v25 = vld [vmem:[%s13088_s15 + $0x3e8] sm:$0xff]   ;;  %v12021_v27 = vld [vmem:[%s13088_s15 + $0x370] sm:$0xff]   ;;  %v12048_v57 = vld [vmem:[%s13088_s15 + $0x4e0] sm:$0xff]  }
  0xcc   : > { %7621 = vmatprep.mubr.bf16.mxu1 %v2073_v61  ;;  %v12052_v61 = vld [vmem:[%s13088_s15 + $0x4e8] sm:$0xff]  }
  0xcd   : > { %10626 = vmatpush3.bf16.msra.mxu0 %v11970_v26  ;;  %v12020_v26 = vld [vmem:[%s13088_s15 + $0x3a8] sm:$0xff]  }
  0xce   : > { %10627 = vmatprep.subr.bf16.mxu0 %v11973_v29  ;;  %10648 = vmatpush3.bf16.msra.mxu1 %v11972_v28  ;;  %v12022_v28 = vld [vmem:[%s13088_s15 + $0x330] sm:$0xff]  }
  0xcf   : > { %10649 = vmatprep.subr.bf16.mxu1 %v11975_v31  ;;  %v12023_v29 = vld [vmem:[%s13088_s15 + $0x3f0] sm:$0xff]   ;;  %v12025_v31 = vld [vmem:[%s13088_s15 + $0x378] sm:$0xff]  }
  0xd1   : > { %10628 = vmatpush3.bf16.msra.mxu0 %v11974_v30  ;;  %v12024_v30 = vld [vmem:[%s13088_s15 + $0x3b0] sm:$0xff]  }
  0xd2   : > { %10629 = vmatprep.subr.bf16.mxu0 %v11977_v33  ;;  %10650 = vmatpush3.bf16.msra.mxu1 %v11976_v32  ;;  %v12026_v32 = vld [vmem:[%s13088_s15 + $0x338] sm:$0xff]  }
  0xd3   : > { %10651 = vmatprep.subr.bf16.mxu1 %v11979_v36  ;;  %v12027_v33 = vld [vmem:[%s13088_s15 + $0x3f8] sm:$0xff]   ;;  %v2056_v36 = vrot.slane %v13224_v54, %v13151_v42 }
  0xd4   : > { %v12045_v54 = vld [vmem:[%s13088_s15 + $0x498] sm:$0xff]  }
  0xd5   : > { %10630 = vmatpush3.bf16.msra.mxu0 %v11978_v35  ;;  %v12029_v35 = vld [vmem:[%s13088_s15 + $0x3b8] sm:$0xff]  }
  0xd6   : > { %10631 = vmatprep.subr.bf16.mxu0 %v11981_v38  ;;  %10652 = vmatpush3.bf16.msra.mxu1 %v11980_v37  ;;  %v12030_v37 = vld [vmem:[%s13088_s15 + $0x440] sm:$0xff]  }
  0xd7   : > { %10653 = vmatprep.subr.bf16.mxu1 %v11983_v40  ;;  %v12031_v38 = vld [vmem:[%s13088_s15 + $0x400] sm:$0xff]  }
  0xd8   : > { %v12033_v40 = vld [vmem:[%s13088_s15 + $0x480] sm:$0xff]  }
  0xd9   : > { %10632 = vmatpush3.bf16.msra.mxu0 %v11982_v39  ;;  %v12032_v39 = vld [vmem:[%s13088_s15 + $0x4c0] sm:$0xff]  }
  0xda   : > { %10633 = vmatprep.subr.bf16.mxu0 %v11985_v43  ;;  %10654 = vmatpush3.bf16.msra.mxu1 %v11984_v41  ;;  %v2072_v41 = vcombine.high %v2056_v36, %v2056_v36  ;;  %v12034_v43 = vld [vmem:[%s13088_s15 + $0x448] sm:$0xff]  }
  0xdb   : > { %10655 = vmatprep.subr.bf16.mxu1 %v11987_v45  ;;  %v12036_v45 = vld [vmem:[%s13088_s15 + $0x4c8] sm:$0xff]  }
  0xdd   : > { %10634 = vmatpush3.bf16.msra.mxu0 %v11986_v44  ;;  %v12035_v44 = vld [vmem:[%s13088_s15 + $0x408] sm:$0xff]  }
  0xde   : > { %10635 = vmatprep.subr.bf16.mxu0 %v11989_v48  ;;  %10656 = vmatpush3.bf16.msra.mxu1 %v11988_v46  ;;  %v12037_v46 = vld [vmem:[%s13088_s15 + $0x488] sm:$0xff]   ;;  %v12039_v48 = vld [vmem:[%s13088_s15 + $0x410] sm:$0xff]  }
  0xdf   : > { %10657 = vmatprep.subr.bf16.mxu1 %v11991_v52  ;;  %v12043_v52 = vld [vmem:[%s13088_s15 + $0x418] sm:$0xff]  }
  0xe1   : > { %10636 = vmatpush3.bf16.msra.mxu0 %v11990_v51  ;;  %v12042_v51 = vld [vmem:[%s13088_s15 + $0x458] sm:$0xff]  }
  0xe2   : > { %10637 = vmatprep.subr.bf16.mxu0 %v11993_v56  ;;  %10658 = vmatpush3.bf16.msra.mxu1 %v11992_v55  ;;  %v12046_v55 = vld [vmem:[%s13088_s15 + $0x460] sm:$0xff]  }
  0xe3   : > { %10659 = vmatprep.subr.bf16.mxu1 %v11995_v60  ;;  %v12047_v56 = vld [vmem:[%s13088_s15 + $0x420] sm:$0xff]   ;;  %v12051_v60 = vld [vmem:[%s13088_s15 + $0x428] sm:$0xff]  }
  0xe5   : > { %10638 = vmatpush3.bf16.msra.mxu0 %v11994_v58  ;;  %v12049_v58 = vld [vmem:[%s13088_s15 + $0x4a0] sm:$0xff]  }
  0xe6   : > { %10667 = vmatprep.subr.bf16.mxu0 %v11997_v0  ;;  %10660 = vmatpush3.bf16.msra.mxu1 %v11996_v62  ;;  %v12053_v62 = vld [vmem:[%s13088_s15 + $0x4a8] sm:$0xff]   ;;  %v12054_v0 = vld [vmem:[%s13088_s15 + $0x470] sm:$0xff]  }
  0xe7   : > { %10689 = vmatprep.subr.bf16.mxu1 %v11999_v3  ;;  %v12055_v3 = vld [vmem:[%s13088_s15 + $0x430] sm:$0xff]  }
  0xe8   : > { %7582 = vmatmul.mubr.bf16.vlgmr.msra.gmra.mrb[8].mxu0 %v2049_v63  ;;  %v385_v63 = vld [vmem:[%s13110_s20 + $0x10] sm:$0xff] }
  0xe9   : > { %10668 = vmatpush3.bf16.msra.mxu0 %v11998_v1  ;;  %7661 = vmatprep.mubr.bf16.mxu0 %v2070_v2  ;;  %v2082_v1 = vrot.slane %v385_v63, %v13151_v42  ;;  %v2075_v2 = vcombine.high %v385_v63, %v385_v63  ;;  %v12103_v63 = vld [vmem:[%s13088_s15 + $0x650] sm:$0xff]  }
  0xea   : > { %7622 = vmatmul.mubr.bf16.vlgmr.msra.gmra.mrb[8].mxu1 %v2071_v5  ;;  %10669 = vmatprep.subr.bf16.mxu0 %v12001_v6 }
  0xeb   : > { %10690 = vmatpush3.bf16.msra.mxu1 %v12000_v4  ;;  %7701 = vmatprep.mubr.bf16.mxu1 %v2074_v8  ;;  %v12056_v4 = vld [vmem:[%s13088_s15 + $0x4f0] sm:$0xff]   ;;  %v2090_v5 = vcombine.high %v2082_v1, %v2082_v1  ;;  %v13300_v6 = vrot.slane %v2075_v2, %v13151_v42  ;;  %v12058_v8 = vld [vmem:[%s13088_s15 + $0x478] sm:$0xff]  }
  0xec   : > { %10691 = vmatprep.subr.bf16.mxu1 %v12003_v9  ;;  %v12106_v2 = vld [vmem:[%s13088_s15 + $0x690] sm:$0xff]  }
  0xed   : > { %10670 = vmatpush3.bf16.msra.mxu0 %v12002_v7  ;;  %v12057_v7 = vld [vmem:[%s13088_s15 + $0x4b0] sm:$0xff]   ;;  %v2112_v9 = vrot.slane %v2090_v5, %v13151_v42  ;;  %v12109_v5 = vld [vmem:[%s13088_s15 + $0x6d8] sm:$0xff]  }
  0xee   : > { %10671 = vmatprep.subr.bf16.mxu0 %v12005_v11  ;;  %v2091_v11 = vcombine.high %v13300_v6, %v13300_v6 }
  0xef   : > { %10692 = vmatpush3.bf16.msra.mxu1 %v12004_v10  ;;  %v12059_v10 = vld [vmem:[%s13088_s15 + $0x438] sm:$0xff]  }
  0xf0   : > { %10693 = vmatprep.subr.bf16.mxu1 %v12007_v13  ;;  %v2122_v13 = vcombine.high %v2112_v9, %v2112_v9 }
  0xf1   : > { %10672 = vmatpush3.bf16.msra.mxu0 %v12006_v12  ;;  %v12060_v12 = vld [vmem:[%s13088_s15 + $0x4f8] sm:$0xff]  }
  0xf2   : > { %10673 = vmatprep.subr.bf16.mxu0 %v12009_v15  ;;  %v2098_v15 = vrot.slane %v2082_v1, %v13151_v42  ;;  %v12105_v1 = vld [vmem:[%s13088_s15 + $0x6d0] sm:$0xff]  }
  0xf3   : > { %10694 = vmatpush3.bf16.msra.mxu1 %v12008_v14  ;;  %v12061_v14 = vld [vmem:[%s13088_s15 + $0x4b8] sm:$0xff]  }
  0xf4   : > { %10695 = vmatprep.subr.bf16.mxu1 %v12011_v17  ;;  %v12063_v17 = vld [vmem:[%s13088_s15 + $0x500] sm:$0xff]  }
  0xf5   : > { %10674 = vmatpush3.bf16.msra.mxu0 %v12010_v16  ;;  %v12062_v16 = vld [vmem:[%s13088_s15 + $0x540] sm:$0xff]  }
  0xf6   : > { %10675 = vmatprep.subr.bf16.mxu0 %v12013_v19  ;;  %v12064_v19 = vld [vmem:[%s13088_s15 + $0x5c0] sm:$0xff]  }
  0xf7   : > { %10696 = vmatpush3.bf16.msra.mxu1 %v12012_v18  ;;  %v2119_v18 = vrot.slane %v2091_v11, %v13151_v42  ;;  %v12115_v11 = vld [vmem:[%s13088_s15 + $0x668] sm:$0xff]  }
  0xf8   : > { %10697 = vmatprep.subr.bf16.mxu1 %v12015_v21  ;;  %v2120_v21 = vcombine.high %v2098_v15, %v2098_v15 }
  0xf9   : > { %10676 = vmatpush3.bf16.msra.mxu0 %v12014_v20  ;;  %v12065_v20 = vld [vmem:[%s13088_s15 + $0x580] sm:$0xff]  }
  0xfa   : > { %10677 = vmatprep.subr.bf16.mxu0 %v12017_v23  ;;  %v12067_v23 = vld [vmem:[%s13088_s15 + $0x508] sm:$0xff]  }
  0xfb   : > { %10698 = vmatpush3.bf16.msra.mxu1 %v12016_v22  ;;  %v12066_v22 = vld [vmem:[%s13088_s15 + $0x548] sm:$0xff]  }
  0xfc   : > { %10699 = vmatprep.subr.bf16.mxu1 %v12019_v25  ;;  %v12068_v25 = vld [vmem:[%s13088_s15 + $0x5c8] sm:$0xff]  }
  0xfd   : > { %10678 = vmatpush3.bf16.msra.mxu0 %v12018_v24  ;;  %v2123_v24 = vcombine.high %v2119_v18, %v2119_v18 }
  0xfe   : > { %10679 = vmatprep.subr.bf16.mxu0 %v12021_v27  ;;  %v12070_v27 = vld [vmem:[%s13088_s15 + $0x550] sm:$0xff]  }
  0xff   : > { %10700 = vmatpush3.bf16.msra.mxu1 %v12020_v26  ;;  %v12069_v26 = vld [vmem:[%s13088_s15 + $0x588] sm:$0xff]  }
 0x100   : > { %10701 = vmatprep.subr.bf16.mxu1 %v12023_v29  ;;  %v12072_v29 = vld [vmem:[%s13088_s15 + $0x5d0] sm:$0xff]  }
 0x101   : > { %10680 = vmatpush3.bf16.msra.mxu0 %v12022_v28  ;;  %v12071_v28 = vld [vmem:[%s13088_s15 + $0x510] sm:$0xff]  }
 0x102   : > { %10681 = vmatprep.subr.bf16.mxu0 %v12025_v31  ;;  %v12074_v31 = vld [vmem:[%s13088_s15 + $0x558] sm:$0xff]  }
 0x103   : > { %10702 = vmatpush3.bf16.msra.mxu1 %v12024_v30  ;;  %v12073_v30 = vld [vmem:[%s13088_s15 + $0x590] sm:$0xff]  }
 0x104   : > { %10703 = vmatprep.subr.bf16.mxu1 %v12027_v33  ;;  %v12076_v33 = vld [vmem:[%s13088_s15 + $0x5d8] sm:$0xff]  }
 0x105   : > { %10682 = vmatpush3.bf16.msra.mxu0 %v12026_v32  ;;  %v12075_v32 = vld [vmem:[%s13088_s15 + $0x518] sm:$0xff]  }
 0x106   : > { %10711 = vmatprep.subr.bf16.mxu0 %v12030_v37  ;;  %v12079_v37 = vld [vmem:[%s13088_s15 + $0x520] sm:$0xff]  }
 0x107   : > { %10704 = vmatpush3.bf16.msra.mxu1 %v12029_v35  ;;  %v12077_v35 = vld [vmem:[%s13088_s15 + $0x598] sm:$0xff]  }
 0x108   : > { %7662 = vmatmul.mubr.bf16.vlgmr.msra.gmra.mrb[12].mxu0 %v2056_v36  ;;  %10733 = vmatprep.subr.bf16.mxu1 %v12032_v39  ;;  %v12078_v36 = vld [vmem:[%s13088_s15 + $0x560] sm:$0xff]  }
 0x109   : > { %10712 = vmatpush3.bf16.msra.mxu0 %v12031_v38  ;;  %7741 = vmatprep.mubr.bf16.mxu0 %v2112_v9  ;;  %v12080_v38 = vld [vmem:[%s13088_s15 + $0x5e0] sm:$0xff]  }
 0x10a   : > { %7702 = vmatmul.mubr.bf16.vlgmr.msra.gmra.mrb[12].mxu1 %v2072_v41  ;;  %10713 = vmatprep.subr.bf16.mxu0 %v12034_v43  ;;  %v12081_v39 = vld [vmem:[%s13088_s15 + $0x5a0] sm:$0xff]   ;;  %v12083_v41 = vld [vmem:[%s13088_s15 + $0x528] sm:$0xff]  }
 0x10b   : > { %10734 = vmatpush3.bf16.msra.mxu1 %v12033_v40  ;;  %7781 = vmatprep.mubr.bf16.mxu1 %v2122_v13  ;;  %v12082_v40 = vld [vmem:[%s13088_s15 + $0x568] sm:$0xff]   ;;  %v12113_v9 = vld [vmem:[%s13088_s15 + $0x6e0] sm:$0xff]  }
 0x10c   : > { %10735 = vmatprep.subr.bf16.mxu1 %v12036_v45  ;;  %v12084_v43 = vld [vmem:[%s13088_s15 + $0x5e8] sm:$0xff]   ;;  %v12086_v45 = vld [vmem:[%s13088_s15 + $0x570] sm:$0xff]  }
 0x10d   : > { %10714 = vmatpush3.bf16.msra.mxu0 %v12035_v44  ;;  %v12085_v44 = vld [vmem:[%s13088_s15 + $0x5a8] sm:$0xff]  }
 0x10e   : > { %10715 = vmatprep.subr.bf16.mxu0 %v12038_v47  ;;  %v12088_v47 = vld [vmem:[%s13088_s15 + $0x5f0] sm:$0xff]   ;;  %v12117_v13 = vld [vmem:[%s13088_s15 + $0x6e8] sm:$0xff]  }
 0x10f   : > { %10736 = vmatpush3.bf16.msra.mxu1 %v12037_v46  ;;  %v12087_v46 = vld [vmem:[%s13088_s15 + $0x530] sm:$0xff]  }
 0x110   : > { %10737 = vmatprep.subr.bf16.mxu1 %v12040_v49  ;;  %v12090_v49 = vld [vmem:[%s13088_s15 + $0x578] sm:$0xff]  }
 0x111   : > { %10716 = vmatpush3.bf16.msra.mxu0 %v12039_v48  ;;  %v12089_v48 = vld [vmem:[%s13088_s15 + $0x5b0] sm:$0xff]  }
 0x112   : > { %10717 = vmatprep.subr.bf16.mxu0 %v12042_v51  ;;  %v12092_v51 = vld [vmem:[%s13088_s15 + $0x5f8] sm:$0xff]  }
 0x113   : > { %10738 = vmatpush3.bf16.msra.mxu1 %v12041_v50  ;;  %v12091_v50 = vld [vmem:[%s13088_s15 + $0x538] sm:$0xff]  }
 0x114   : > { %10739 = vmatprep.subr.bf16.mxu1 %v12044_v53  ;;  %v2105_v53 = vrot.slane %v13300_v6, %v13151_v42  ;;  %v12110_v6 = vld [vmem:[%s13088_s15 + $0x698] sm:$0xff]  }
 0x115   : > { %10718 = vmatpush3.bf16.msra.mxu0 %v12043_v52  ;;  %v12094_v52 = vld [vmem:[%s13088_s15 + $0x5b8] sm:$0xff]  }
 0x116   : > { %10719 = vmatprep.subr.bf16.mxu0 %v12046_v55  ;;  %v12096_v55 = vld [vmem:[%s13088_s15 + $0x600] sm:$0xff]  }
 0x117   : > { %10740 = vmatpush3.bf16.msra.mxu1 %v12045_v54  ;;  %v12095_v54 = vld [vmem:[%s13088_s15 + $0x640] sm:$0xff]  }
 0x118   : > { %10741 = vmatprep.subr.bf16.mxu1 %v12048_v57  ;;  %v12098_v57 = vld [vmem:[%s13088_s15 + $0x680] sm:$0xff]  }
 0x119   : > { %10720 = vmatpush3.bf16.msra.mxu0 %v12047_v56  ;;  %v12097_v56 = vld [vmem:[%s13088_s15 + $0x6c0] sm:$0xff]  }
 0x11a   : > { %10721 = vmatprep.subr.bf16.mxu0 %v12050_v59  ;;  %v12099_v59 = vld [vmem:[%s13088_s15 + $0x648] sm:$0xff]  }
 0x11b   : > { %10742 = vmatpush3.bf16.msra.mxu1 %v12049_v58  ;;  %v2121_v58 = vcombine.high %v2105_v53, %v2105_v53 }
 0x11c   : > { %10743 = vmatprep.subr.bf16.mxu1 %v12052_v61  ;;  %v12101_v61 = vld [vmem:[%s13088_s15 + $0x6c8] sm:$0xff]  }
 0x11d   : > { %10722 = vmatpush3.bf16.msra.mxu0 %v12051_v60  ;;  %v12100_v60 = vld [vmem:[%s13088_s15 + $0x608] sm:$0xff]  }
 0x11e   : > { %10723 = vmatprep.subr.bf16.mxu0 %v12054_v0  ;;  %v12104_v0 = vld [vmem:[%s13088_s15 + $0x610] sm:$0xff]  }
 0x11f   : > { %10744 = vmatpush3.bf16.msra.mxu1 %v12053_v62  ;;  %v12102_v62 = vld [vmem:[%s13088_s15 + $0x688] sm:$0xff]  }
 0x120   : > { %10745 = vmatprep.subr.bf16.mxu1 %v12056_v4  ;;  %v12108_v4 = vld [vmem:[%s13088_s15 + $0x618] sm:$0xff]  }
 0x121   : > { %10724 = vmatpush3.bf16.msra.mxu0 %v12055_v3  ;;  %v12107_v3 = vld [vmem:[%s13088_s15 + $0x658] sm:$0xff]  }
 0x122   : > { %10725 = vmatprep.subr.bf16.mxu0 %v12058_v8  ;;  %v12112_v8 = vld [vmem:[%s13088_s15 + $0x620] sm:$0xff]  }
 0x123   : > { %10746 = vmatpush3.bf16.msra.mxu1 %v12057_v7  ;;  %v12111_v7 = vld [vmem:[%s13088_s15 + $0x660] sm:$0xff]  }
 0x124   : > { %10747 = vmatprep.subr.bf16.mxu1 %v12060_v12  ;;  %v12116_v12 = vld [vmem:[%s13088_s15 + $0x628] sm:$0xff]  }
 0x125   : > { %10726 = vmatpush3.bf16.msra.mxu0 %v12059_v10  ;;  %v12114_v10 = vld [vmem:[%s13088_s15 + $0x6a0] sm:$0xff]  }
 0x126   : > { %10755 = vmatprep.subr.bf16.mxu0 %v12062_v16  ;;  %v386_v16 = vld [vmem:[%s13110_s20 + $0x18] sm:$0xff] }
 0x127   : > { %10748 = vmatpush3.bf16.msra.mxu1 %v12061_v14  ;;  %v12118_v14 = vld [vmem:[%s13088_s15 + $0x6a8] sm:$0xff]  }
 0x128   : > { %7742 = vmatmul.mubr.bf16.vlgmr.msra.gmra.mrb[16].mxu0 %v2098_v15  ;;  %10777 = vmatprep.subr.bf16.mxu1 %v12064_v19  ;;  %v12119_v15 = vld [vmem:[%s13088_s15 + $0x670] sm:$0xff]   ;;  %v2124_v19 = vcombine.high %v386_v16, %v386_v16 }
 0x129   : > { %10756 = vmatpush3.bf16.msra.mxu0 %v12063_v17  ;;  %7821 = vmatprep.mubr.bf16.mxu0 %v2119_v18  ;;  %v12120_v17 = vld [vmem:[%s13088_s15 + $0x630] sm:$0xff]   ;;  %v2131_v18 = vrot.slane %v386_v16, %v13151_v42 }
 0x12a   : > { %7782 = vmatmul.mubr.bf16.vlgmr.msra.gmra.mrb[16].mxu1 %v2120_v21  ;;  %10757 = vmatprep.subr.bf16.mxu0 %v12066_v22  ;;  %v12122_v21 = vld [vmem:[%s13088_s15 + $0x6b0] sm:$0xff]  }
 0x12b   : > { %10778 = vmatpush3.bf16.msra.mxu1 %v12065_v20  ;;  %7861 = vmatprep.mubr.bf16.mxu1 %v2123_v24  ;;  %v12121_v20 = vld [vmem:[%s13088_s15 + $0x6f0] sm:$0xff]   ;;  %v2139_v22 = vcombine.high %v2131_v18, %v2131_v18  ;;  %v12123_v24 = vld [vmem:[%s13088_s15 + $0x678] sm:$0xff]  }
 0x12c   : > { %10779 = vmatprep.subr.bf16.mxu1 %v12068_v25  ;;  %v12124_v25 = vld [vmem:[%s13088_s15 + $0x638] sm:$0xff]  }
 0x12d   : > { %10758 = vmatpush3.bf16.msra.mxu0 %v12067_v23  ;;  %v13377_v23 = vrot.slane %v2124_v19, %v13151_v42  ;;  %v12162_v19 = vld [vmem:[%s13088_s15 + $0x8c0] sm:$0xff]  }
 0x12e   : > { %10759 = vmatprep.subr.bf16.mxu0 %v12070_v27 }
 0x12f   : > { %10780 = vmatpush3.bf16.msra.mxu1 %v12069_v26  ;;  %v2161_v26 = vrot.slane %v2139_v22, %v13151_v42  ;;  %v2140_v27 = vcombine.high %v13377_v23, %v13377_v23  ;;  %v2154_v16 = vrot.slane %v13377_v23, %v13151_v42  ;;  %v12164_v22 = vld [vmem:[%s13088_s15 + $0x848] sm:$0xff]  }
 0x130   : > { %10781 = vmatprep.subr.bf16.mxu1 %v12072_v29  ;;  %v12126_v29 = vld [vmem:[%s13088_s15 + $0x6b8] sm:$0xff]   ;;  %v12166_v23 = vld [vmem:[%s13088_s15 + $0x8c8] sm:$0xff]  }
 0x131   : > { %10760 = vmatpush3.bf16.msra.mxu0 %v12071_v28  ;;  %v12125_v28 = vld [vmem:[%s13088_s15 + $0x6f8] sm:$0xff]  }
 0x132   : > { %10761 = vmatprep.subr.bf16.mxu0 %v12074_v31  ;;  %v2147_v31 = vrot.slane %v2131_v18, %v13151_v42  ;;  %v12161_v18 = vld [vmem:[%s13088_s15 + $0x800] sm:$0xff]  }
 0x133   : > { %10782 = vmatpush3.bf16.msra.mxu1 %v12073_v30  ;;  %v2171_v30 = vcombine.high %v2161_v26, %v2161_v26 }
 0x134   : > { %10783 = vmatprep.subr.bf16.mxu1 %v12076_v33  ;;  %v12128_v33 = vld [vmem:[%s13088_s15 + $0x700] sm:$0xff]  }
 0x135   : > { %10762 = vmatpush3.bf16.msra.mxu0 %v12075_v32  ;;  %v12127_v32 = vld [vmem:[%s13088_s15 + $0x740] sm:$0xff]  }
 0x136   : > { %10763 = vmatprep.subr.bf16.mxu0 %v12078_v36  ;;  %v12129_v36 = vld [vmem:[%s13088_s15 + $0x7c0] sm:$0xff]  }
 0x137   : > { %10784 = vmatpush3.bf16.msra.mxu1 %v12077_v35  ;;  %v2168_v35 = vrot.slane %v2140_v27, %v13151_v42  ;;  %v12169_v27 = vld [vmem:[%s13088_s15 + $0x810] sm:$0xff]  }
 0x138   : > { %10785 = vmatprep.subr.bf16.mxu1 %v12080_v38  ;;  %v2169_v38 = vcombine.high %v2147_v31, %v2147_v31 }
 0x139   : > { %10764 = vmatpush3.bf16.msra.mxu0 %v12079_v37  ;;  %v12130_v37 = vld [vmem:[%s13088_s15 + $0x780] sm:$0xff]  }
 0x13a   : > { %10765 = vmatprep.subr.bf16.mxu0 %v12082_v40  ;;  %v12132_v40 = vld [vmem:[%s13088_s15 + $0x708] sm:$0xff]  }
 0x13b   : > { %10786 = vmatpush3.bf16.msra.mxu1 %v12081_v39  ;;  %v12131_v39 = vld [vmem:[%s13088_s15 + $0x748] sm:$0xff]  }
 0x13c   : > { %10787 = vmatprep.subr.bf16.mxu1 %v12084_v43  ;;  %v12133_v43 = vld [vmem:[%s13088_s15 + $0x7c8] sm:$0xff]  }
 0x13d   : > { %10766 = vmatpush3.bf16.msra.mxu0 %v12083_v41  ;;  %v2172_v41 = vcombine.high %v2168_v35, %v2168_v35 }
 0x13e   : > { %10767 = vmatprep.subr.bf16.mxu0 %v12086_v45  ;;  %v12135_v45 = vld [vmem:[%s13088_s15 + $0x750] sm:$0xff]  }
 0x13f   : > { %10788 = vmatpush3.bf16.msra.mxu1 %v12085_v44  ;;  %v12134_v44 = vld [vmem:[%s13088_s15 + $0x788] sm:$0xff]  }
 0x140   : > { %10789 = vmatprep.subr.bf16.mxu1 %v12088_v47  ;;  %v12137_v47 = vld [vmem:[%s13088_s15 + $0x7d0] sm:$0xff]  }
 0x141   : > { %10768 = vmatpush3.bf16.msra.mxu0 %v12087_v46  ;;  %v12136_v46 = vld [vmem:[%s13088_s15 + $0x710] sm:$0xff]  }
 0x142   : > { %10769 = vmatprep.subr.bf16.mxu0 %v12090_v49  ;;  %v12139_v49 = vld [vmem:[%s13088_s15 + $0x758] sm:$0xff]  }
 0x143   : > { %10790 = vmatpush3.bf16.msra.mxu1 %v12089_v48  ;;  %v12138_v48 = vld [vmem:[%s13088_s15 + $0x790] sm:$0xff]  }
 0x144   : > { %10791 = vmatprep.subr.bf16.mxu1 %v12092_v51  ;;  %v12141_v51 = vld [vmem:[%s13088_s15 + $0x7d8] sm:$0xff]  }
 0x145   : > { %10770 = vmatpush3.bf16.msra.mxu0 %v12091_v50  ;;  %v12140_v50 = vld [vmem:[%s13088_s15 + $0x718] sm:$0xff]  }
 0x146   : > { %10799 = vmatprep.subr.bf16.mxu0 %v12095_v54  ;;  %v12144_v54 = vld [vmem:[%s13088_s15 + $0x720] sm:$0xff]  }
 0x147   : > { %10792 = vmatpush3.bf16.msra.mxu1 %v12094_v52  ;;  %v12142_v52 = vld [vmem:[%s13088_s15 + $0x798] sm:$0xff]  }
 0x148   : > { %7822 = vmatmul.mubr.bf16.vlgmr.msra.gmra.mrb[20].mxu0 %v2105_v53  ;;  %10821 = vmatprep.subr.bf16.mxu1 %v12097_v56  ;;  %v12143_v53 = vld [vmem:[%s13088_s15 + $0x760] sm:$0xff]  }
 0x149   : > { %10800 = vmatpush3.bf16.msra.mxu0 %v12096_v55  ;;  %7901 = vmatprep.mubr.bf16.mxu0 %v2161_v26  ;;  %v12145_v55 = vld [vmem:[%s13088_s15 + $0x7e0] sm:$0xff]   ;;  %v12168_v26 = vld [vmem:[%s13088_s15 + $0x850] sm:$0xff]  }
 0x14a   : > { %7862 = vmatmul.mubr.bf16.vlgmr.msra.gmra.mrb[20].mxu1 %v2121_v58  ;;  %10801 = vmatprep.subr.bf16.mxu0 %v12099_v59  ;;  %v12146_v56 = vld [vmem:[%s13088_s15 + $0x7a0] sm:$0xff]   ;;  %v12148_v58 = vld [vmem:[%s13088_s15 + $0x728] sm:$0xff]  }
 0x14b   : > { %10822 = vmatpush3.bf16.msra.mxu1 %v12098_v57  ;;  %7941 = vmatprep.mubr.bf16.mxu1 %v2171_v30  ;;  %v12147_v57 = vld [vmem:[%s13088_s15 + $0x768] sm:$0xff]   ;;  %v12172_v30 = vld [vmem:[%s13088_s15 + $0x858] sm:$0xff]  }
 0x14c   : > { %10823 = vmatprep.subr.bf16.mxu1 %v12101_v61  ;;  %v12149_v59 = vld [vmem:[%s13088_s15 + $0x7e8] sm:$0xff]   ;;  %v12151_v61 = vld [vmem:[%s13088_s15 + $0x770] sm:$0xff]  }
 0x14d   : > { %10802 = vmatpush3.bf16.msra.mxu0 %v12100_v60  ;;  %v12150_v60 = vld [vmem:[%s13088_s15 + $0x7a8] sm:$0xff]  }
 0x14e   : > { %10803 = vmatprep.subr.bf16.mxu0 %v12103_v63  ;;  %v12152_v63 = vld [vmem:[%s13088_s15 + $0x730] sm:$0xff]  }
 0x14f   : > { %10824 = vmatpush3.bf16.msra.mxu1 %v12102_v62 }
 0x150   : > { %10825 = vmatprep.subr.bf16.mxu1 %v12105_v1  ;;  %v12153_v1 = vld [vmem:[%s13088_s15 + $0x7f0] sm:$0xff]  }
 0x151   : > { %10804 = vmatpush3.bf16.msra.mxu0 %v12104_v0 }
 0x152   : > { %10805 = vmatprep.subr.bf16.mxu0 %v12107_v3 }
 0x153   : > { %10826 = vmatpush3.bf16.msra.mxu1 %v12106_v2 }
 0x154   : > { %10827 = vmatprep.subr.bf16.mxu1 %v12109_v5  ;;  %v12154_v5 = vld [vmem:[%s13088_s15 + $0x7b0] sm:$0xff]  }
 0x155   : > { %10806 = vmatpush3.bf16.msra.mxu0 %v12108_v4 }
 0x156   : > { %10807 = vmatprep.subr.bf16.mxu0 %v12111_v7 }
 0x157   : > { %10828 = vmatpush3.bf16.msra.mxu1 %v12110_v6  ;;  %v12155_v6 = vld [vmem:[%s13088_s15 + $0x778] sm:$0xff]  }
 0x158   : > { %10829 = vmatprep.subr.bf16.mxu1 %v12113_v9 }
 0x159   : > { %10808 = vmatpush3.bf16.msra.mxu0 %v12112_v8 }
 0x15a   : > { %10809 = vmatprep.subr.bf16.mxu0 %v12115_v11 }
 0x15b   : > { %10830 = vmatpush3.bf16.msra.mxu1 %v12114_v10  ;;  %v12156_v10 = vld [vmem:[%s13088_s15 + $0x738] sm:$0xff]  }
 0x15c   : > { %10831 = vmatprep.subr.bf16.mxu1 %v12117_v13 }
 0x15d   : > { %10810 = vmatpush3.bf16.msra.mxu0 %v12116_v12  ;;  %v12157_v12 = vld [vmem:[%s13088_s15 + $0x7f8] sm:$0xff]  }
 0x15e   : > { %10811 = vmatprep.subr.bf16.mxu0 %v12119_v15  ;;  %v12159_v15 = vld [vmem:[%s13088_s15 + $0x7b8] sm:$0xff]  }
 0x15f   : > { %10832 = vmatpush3.bf16.msra.mxu1 %v12118_v14 }
 0x160   : > { %10833 = vmatprep.subr.bf16.mxu1 %v12121_v20  ;;  %v12163_v20 = vld [vmem:[%s13088_s15 + $0x880] sm:$0xff]  }
 0x161   : > { %10812 = vmatpush3.bf16.msra.mxu0 %v12120_v17  ;;  %v12160_v17 = vld [vmem:[%s13088_s15 + $0x840] sm:$0xff]  }
 0x162   : > { %10813 = vmatprep.subr.bf16.mxu0 %v12123_v24  ;;  %v12165_v24 = vld [vmem:[%s13088_s15 + $0x808] sm:$0xff]  }
 0x163   : > { %10834 = vmatpush3.bf16.msra.mxu1 %v12122_v21  ;;  %v2170_v21 = vcombine.high %v2154_v16, %v2154_v16 }
 0x164   : > { %10835 = vmatprep.subr.bf16.mxu1 %v12125_v28  ;;  %v12170_v28 = vld [vmem:[%s13088_s15 + $0x8d0] sm:$0xff]  }
 0x165   : > { %10814 = vmatpush3.bf16.msra.mxu0 %v12124_v25  ;;  %v12167_v25 = vld [vmem:[%s13088_s15 + $0x888] sm:$0xff]  }
 0x166   : > { %10843 = vmatprep.subr.bf16.mxu0 %v12127_v32  ;;  %v12174_v32 = vld [vmem:[%s13088_s15 + $0x8d8] sm:$0xff]  }
 0x167   : > { %10836 = vmatpush3.bf16.msra.mxu1 %v12126_v29  ;;  %v12171_v29 = vld [vmem:[%s13088_s15 + $0x890] sm:$0xff]  }
 0x168   : > { %7902 = vmatmul.mubr.bf16.vlgmr.msra.gmra.mrb[24].mxu0 %v2147_v31  ;;  %10865 = vmatprep.subr.bf16.mxu1 %v12129_v36  ;;  %v12173_v31 = vld [vmem:[%s13088_s15 + $0x818] sm:$0xff]   ;;  %v12177_v36 = vld [vmem:[%s13088_s15 + $0x820] sm:$0xff]  }
 0x169   : > { %10844 = vmatpush3.bf16.msra.mxu0 %v12128_v33  ;;  %7981 = vmatprep.mubr.bf16.mxu0 %v2168_v35  ;;  %v12175_v33 = vld [vmem:[%s13088_s15 + $0x898] sm:$0xff]   ;;  %v12176_v35 = vld [vmem:[%s13088_s15 + $0x860] sm:$0xff]  }
 0x16a   : > { %7942 = vmatmul.mubr.bf16.vlgmr.msra.gmra.mrb[24].mxu1 %v2169_v38  ;;  %10845 = vmatprep.subr.bf16.mxu0 %v12131_v39  ;;  %v12179_v38 = vld [vmem:[%s13088_s15 + $0x8a0] sm:$0xff]   ;;  %v12180_v39 = vld [vmem:[%s13088_s15 + $0x868] sm:$0xff]  }
 0x16b   : > { %10866 = vmatpush3.bf16.msra.mxu1 %v12130_v37  ;;  %8021 = vmatprep.mubr.bf16.mxu1 %v2172_v41  ;;  %v12178_v37 = vld [vmem:[%s13088_s15 + $0x8e0] sm:$0xff]   ;;  %v12182_v41 = vld [vmem:[%s13088_s15 + $0x8e8] sm:$0xff]  }
 0x16c   : > { %10867 = vmatprep.subr.bf16.mxu1 %v12133_v43  ;;  %v12183_v43 = vld [vmem:[%s13088_s15 + $0x8a8] sm:$0xff]  }
 0x16d   : > { %10846 = vmatpush3.bf16.msra.mxu0 %v12132_v40  ;;  %v12181_v40 = vld [vmem:[%s13088_s15 + $0x828] sm:$0xff]  }
 0x16e   : > { %10847 = vmatprep.subr.bf16.mxu0 %v12135_v45  ;;  %v387_v45 = vld [vmem:[%s13110_s20 + $0x20] sm:$0xff] }
 0x16f   : > { %10868 = vmatpush3.bf16.msra.mxu1 %v12134_v44  ;;  %v12184_v44 = vld [vmem:[%s13088_s15 + $0x870] sm:$0xff]  }
 0x170   : > { %10869 = vmatprep.subr.bf16.mxu1 %v12137_v47  ;;  %v12185_v47 = vld [vmem:[%s13088_s15 + $0x830] sm:$0xff]  }
 0x171   : > { %10848 = vmatpush3.bf16.msra.mxu0 %v12136_v46 }
 0x172   : > { %10849 = vmatprep.subr.bf16.mxu0 %v12139_v49  ;;  %v2173_v49 = vcombine.high %v387_v45, %v387_v45 }
 0x173   : > { %10870 = vmatpush3.bf16.msra.mxu1 %v12138_v48  ;;  %v2180_v48 = vrot.slane %v387_v45, %v13151_v42 }
 0x174   : > { %10871 = vmatprep.subr.bf16.mxu1 %v12141_v51  ;;  %v12186_v51 = vld [vmem:[%s13088_s15 + $0x8f0] sm:$0xff]  }
 0x175   : > { %10850 = vmatpush3.bf16.msra.mxu0 %v12140_v50 }
 0x176   : > { %10851 = vmatprep.subr.bf16.mxu0 %v12143_v53 }
 0x177   : > { %10872 = vmatpush3.bf16.msra.mxu1 %v12142_v52 }
 0x178   : > { %10873 = vmatprep.subr.bf16.mxu1 %v12145_v55  ;;  %v2188_v55 = vcombine.high %v2180_v48, %v2180_v48 }
 0x179   : > { %10852 = vmatpush3.bf16.msra.mxu0 %v12144_v54 }
 0x17a   : > { %10853 = vmatprep.subr.bf16.mxu0 %v12147_v57 }
 0x17b   : > { %v10551_v62 = vpop.f32.mrb[0].mxu0  ;;  %10874 = vmatpush3.bf16.msra.mxu1 %v12146_v56  ;;  %v13454_v56 = vrot.slane %v2173_v49, %v13151_v42 }
 0x17c   : > { %v10552_v0 = vpop.f32.mrb[1].mxu0  ;;  %10875 = vmatprep.subr.bf16.mxu1 %v12149_v59  ;;  %v10573_v2 = vpop.f32.mrb[0].mxu1  ;;  %v12187_v59 = vld [vmem:[%s13088_s15 + $0x8b0] sm:$0xff]  }
 0x17d   : > { %v10553_v3 = vadd.f32 %v10552_v0, %v10551_v62  ;;  %v10554_v4 = vpop.f32.mrb[2].mxu0  ;;  %10854 = vmatpush3.bf16.msra.mxu0 %v12148_v58  ;;  %v10574_v7 = vpop.f32.mrb[1].mxu1  ;;  %v2210_v0 = vrot.slane %v2188_v55, %v13151_v42 }
 0x17e   : > { %v10555_v8 = vpop.f32.mrb[3].mxu0  ;;  %10855 = vmatprep.subr.bf16.mxu0 %v12151_v61  ;;  %v10575_v9 = vadd.f32 %v10574_v7, %v10573_v2  ;;  %v10576_v11 = vpop.f32.mrb[2].mxu1 }
 0x17f   : > { %10876 = vmatpush3.bf16.msra.mxu1 %v12150_v60  ;;  %v10577_v13 = vpop.f32.mrb[3].mxu1  ;;  %v12188_v60 = vld [vmem:[%s13088_s15 + $0x878] sm:$0xff]   ;;  %v2196_v8 = vrot.slane %v2180_v48, %v13151_v42 }
 0x180   : > { %10877 = vmatprep.subr.bf16.mxu1 %v12153_v1  ;;  %v13419_v14 = vadd.f32 %v10575_v9, %v10553_v3  ;;  %v12190_v1 = vld [vmem:[%s13088_s15 + $0x8f8] sm:$0xff]   ;;  %v2189_v3 = vcombine.high %v13454_v56, %v13454_v56  ;;  %v12192_v9 = vld [vmem:[%s13088_s15 + $0x940] sm:$0xff]  }
 0x181   : > { %10856 = vmatpush3.bf16.msra.mxu0 %v12152_v63  ;;  %v12189_v63 = vld [vmem:[%s13088_s15 + $0x838] sm:$0xff]   ;;  %v12195_v13 = vld [vmem:[%s13088_s15 + $0x980] sm:$0xff]  }
 0x182   : > { %10857 = vmatprep.subr.bf16.mxu0 %v12155_v6  ;;  %v2220_v6 = vcombine.high %v2210_v0, %v2210_v0  ;;  %v2217_v11 = vrot.slane %v2189_v3, %v13151_v42  ;;  %v12232_v3 = vld [vmem:[%s13088_s15 + $0xa88] sm:$0xff]  }
 0x183   : > { %10878 = vmatpush3.bf16.msra.mxu1 %v12154_v5  ;;  %v12191_v5 = vld [vmem:[%s13088_s15 + $0x8b8] sm:$0xff]  }
 0x184   : > { %10879 = vmatprep.subr.bf16.mxu1 %v12157_v12  ;;  %v12194_v12 = vld [vmem:[%s13088_s15 + $0x9c0] sm:$0xff]  }
 0x185   : > { %10858 = vmatpush3.bf16.msra.mxu0 %v12156_v10  ;;  %v12193_v10 = vld [vmem:[%s13088_s15 + $0x900] sm:$0xff]  }
 0x186   : > { %10887 = vmatprep.subr.bf16.mxu0 %v12160_v17  ;;  %v2221_v17 = vcombine.high %v2217_v11, %v2217_v11 }
 0x187   : > { %10880 = vmatpush3.bf16.msra.mxu1 %v12159_v15  ;;  %v12196_v15 = vld [vmem:[%s13088_s15 + $0x948] sm:$0xff]  }
 0x188   : > { %7982 = vmatmul.mubr.bf16.vlgmr.msra.gmra.mrb[28].mxu0 %v2154_v16  ;;  %10909 = vmatprep.subr.bf16.mxu1 %v12162_v19  ;;  %v12197_v16 = vld [vmem:[%s13088_s15 + $0x908] sm:$0xff]  }
 0x189   : > { %10888 = vmatpush3.bf16.msra.mxu0 %v12161_v18  ;;  %8061 = vmatprep.mubr.bf16.mxu0 %v2210_v0  ;;  %v12198_v18 = vld [vmem:[%s13088_s15 + $0x9c8] sm:$0xff]  }
 0x18a   : > { %8022 = vmatmul.mubr.bf16.vlgmr.msra.gmra.mrb[28].mxu1 %v2170_v21  ;;  %10889 = vmatprep.subr.bf16.mxu0 %v12164_v22  ;;  %v12199_v19 = vld [vmem:[%s13088_s15 + $0x988] sm:$0xff]   ;;  %v12201_v21 = vld [vmem:[%s13088_s15 + $0x910] sm:$0xff]  }
 0x18b   : > { %10910 = vmatpush3.bf16.msra.mxu1 %v12163_v20  ;;  %8101 = vmatprep.mubr.bf16.mxu1 %v2220_v6  ;;  %v12200_v20 = vld [vmem:[%s13088_s15 + $0x950] sm:$0xff]  }
 0x18c   : > { %10911 = vmatprep.subr.bf16.mxu1 %v12166_v23  ;;  %v12202_v22 = vld [vmem:[%s13088_s15 + $0x9d0] sm:$0xff]   ;;  %v12204_v23 = vld [vmem:[%s13088_s15 + $0x958] sm:$0xff]  }
 0x18d   : > { %10890 = vmatpush3.bf16.msra.mxu0 %v12165_v24  ;;  %v12203_v24 = vld [vmem:[%s13088_s15 + $0x990] sm:$0xff]  }
 0x18e   : > { %10891 = vmatprep.subr.bf16.mxu0 %v12168_v26  ;;  %v12206_v26 = vld [vmem:[%s13088_s15 + $0x9d8] sm:$0xff]   ;;  %v12235_v6 = vld [vmem:[%s13088_s15 + $0xad0] sm:$0xff]  }
 0x18f   : > { %10912 = vmatpush3.bf16.msra.mxu1 %v12167_v25  ;;  %v12205_v25 = vld [vmem:[%s13088_s15 + $0x918] sm:$0xff]  }
 0x190   : > { %10913 = vmatprep.subr.bf16.mxu1 %v12170_v28  ;;  %v12208_v28 = vld [vmem:[%s13088_s15 + $0x960] sm:$0xff]  }
 0x191   : > { %10892 = vmatpush3.bf16.msra.mxu0 %v12169_v27  ;;  %v12207_v27 = vld [vmem:[%s13088_s15 + $0x998] sm:$0xff]  }
 0x192   : > { %10893 = vmatprep.subr.bf16.mxu0 %v12172_v30  ;;  %v12210_v30 = vld [vmem:[%s13088_s15 + $0x9e0] sm:$0xff]  }
 0x193   : > { %10914 = vmatpush3.bf16.msra.mxu1 %v12171_v29  ;;  %v12209_v29 = vld [vmem:[%s13088_s15 + $0x920] sm:$0xff]  }
 0x194   : > { %10915 = vmatprep.subr.bf16.mxu1 %v12174_v32  ;;  %v12212_v32 = vld [vmem:[%s13088_s15 + $0x968] sm:$0xff]  }
 0x195   : > { %10894 = vmatpush3.bf16.msra.mxu0 %v12173_v31  ;;  %v12211_v31 = vld [vmem:[%s13088_s15 + $0x9a0] sm:$0xff]  }
 0x196   : > { %10895 = vmatprep.subr.bf16.mxu0 %v12176_v35  ;;  %v12214_v35 = vld [vmem:[%s13088_s15 + $0x9e8] sm:$0xff]  }
 0x197   : > { %10916 = vmatpush3.bf16.msra.mxu1 %v12175_v33  ;;  %v12213_v33 = vld [vmem:[%s13088_s15 + $0x928] sm:$0xff]  }
 0x198   : > { %10917 = vmatprep.subr.bf16.mxu1 %v12178_v37  ;;  %v12216_v37 = vld [vmem:[%s13088_s15 + $0x970] sm:$0xff]  }
 0x199   : > { %10896 = vmatpush3.bf16.msra.mxu0 %v12177_v36  ;;  %v12215_v36 = vld [vmem:[%s13088_s15 + $0x9a8] sm:$0xff]  }
 0x19a   : > { %10897 = vmatprep.subr.bf16.mxu0 %v12180_v39  ;;  %v12217_v39 = vld [vmem:[%s13088_s15 + $0x930] sm:$0xff]  }
 0x19b   : > { %v10595_v46 = vpop.f32.mrb[4].mxu0  ;;  %10918 = vmatpush3.bf16.msra.mxu1 %v12179_v38 }
 0x19c   : > { %v10596_v50 = vpop.f32.mrb[5].mxu0  ;;  %10919 = vmatprep.subr.bf16.mxu1 %v12182_v41  ;;  %v10617_v54 = vpop.f32.mrb[4].mxu1  ;;  %v12218_v41 = vld [vmem:[%s13088_s15 + $0x9f0] sm:$0xff]  }
 0x19d   : > { %v10597_v52 = vadd.f32 %v10596_v50, %v10595_v46  ;;  %v10598_v53 = vpop.f32.mrb[6].mxu0  ;;  %10898 = vmatpush3.bf16.msra.mxu0 %v12181_v40  ;;  %v10618_v58 = vpop.f32.mrb[5].mxu1  ;;  %v12219_v46 = vld [vmem:[%s13088_s15 + $0x9b0] sm:$0xff]  }
 0x19e   : > { %v10599_v57 = vpop.f32.mrb[7].mxu0  ;;  %10899 = vmatprep.subr.bf16.mxu0 %v12184_v44  ;;  %v10619_v62 = vadd.f32 %v10618_v58, %v10617_v54  ;;  %v10620_v2 = vpop.f32.mrb[6].mxu1  ;;  %v12222_v54 = vld [vmem:[%s13088_s15 + $0x9f8] sm:$0xff]  }
 0x19f   : > { %v7504_v61 = vadd.f32 %v10597_v52, %v13419_v14  ;;  %10920 = vmatpush3.bf16.msra.mxu1 %v12183_v43  ;;  %v10621_v7 = vpop.f32.mrb[7].mxu1  ;;  %v2218_v14 = vcombine.high %v2196_v8, %v2196_v8  ;;  %v12221_v52 = vld [vmem:[%s13088_s15 + $0x938] sm:$0xff]   ;;  %v12230_v2 = vld [vmem:[%s13088_s15 + $0xa08] sm:$0xff]  }
 0x1a0   : > { %10921 = vmatprep.subr.bf16.mxu1 %v12186_v51  ;;  %v12224_v58 = vld [vmem:[%s13088_s15 + $0x9b8] sm:$0xff]   ;;  %v12236_v7 = vld [vmem:[%s13088_s15 + $0xa90] sm:$0xff]  }
 0x1a1   : > { %v13464_v4 = vadd.f32 %v10619_v62, %v7504_v61  ;;  %10900 = vmatpush3.bf16.msra.mxu0 %v12185_v47  ;;  %v12220_v47 = vld [vmem:[%s13088_s15 + $0x978] sm:$0xff]   ;;  %v12226_v61 = vld [vmem:[%s13088_s15 + $0xa00] sm:$0xff]  }
 0x1a2   : > { %10901 = vmatprep.subr.bf16.mxu0 %v12188_v60  ;;  %v12225_v60 = vld [vmem:[%s13088_s15 + $0xa40] sm:$0xff]  }
 0x1a3   : > { %10922 = vmatpush3.bf16.msra.mxu1 %v12187_v59  ;;  %v2203_v59 = vrot.slane %v13454_v56, %v13151_v42  ;;  %v12227_v62 = vld [vmem:[%s13088_s15 + $0xac0] sm:$0xff]   ;;  %v12231_v56 = vld [vmem:[%s13088_s15 + $0xac8] sm:$0xff]  }
 0x1a4   : > { %10923 = vmatprep.subr.bf16.mxu1 %v12190_v1  ;;  %v12229_v1 = vld [vmem:[%s13088_s15 + $0xa48] sm:$0xff]  }
 0x1a5   : > { %10902 = vmatpush3.bf16.msra.mxu0 %v12189_v63  ;;  %v12228_v63 = vld [vmem:[%s13088_s15 + $0xa80] sm:$0xff]   ;;  %v2219_v0 = vcombine.high %v2203_v59, %v2203_v59 }
 0x1a6   : > { %10931 = vmatprep.subr.bf16.mxu0 %v12192_v9  ;;  %v12238_v9 = vld [vmem:[%s13088_s15 + $0xa18] sm:$0xff]  }
 0x1a7   : > { %10924 = vmatpush3.bf16.msra.mxu1 %v12191_v5  ;;  %v12234_v5 = vld [vmem:[%s13088_s15 + $0xa10] sm:$0xff]  }
 0x1a8   : > { %8062 = vmatmul.mubr.bf16.vlgmr.msra.gmra.mrb[32].mxu0 %v2196_v8  ;;  %10953 = vmatprep.subr.bf16.mxu1 %v12194_v12  ;;  %v12237_v8 = vld [vmem:[%s13088_s15 + $0xa58] sm:$0xff]   ;;  %v12241_v12 = vld [vmem:[%s13088_s15 + $0xa60] sm:$0xff]  }
 0x1a9   : > { %10932 = vmatpush3.bf16.msra.mxu0 %v12193_v10  ;;  %8141 = vmatprep.mubr.bf16.mxu0 %v2217_v11  ;;  %v12239_v10 = vld [vmem:[%s13088_s15 + $0xad8] sm:$0xff]  }
 0x1aa   : > { %8102 = vmatmul.mubr.bf16.vlgmr.msra.gmra.mrb[32].mxu1 %v2218_v14  ;;  %10933 = vmatprep.subr.bf16.mxu0 %v12196_v15  ;;  %v12240_v11 = vld [vmem:[%s13088_s15 + $0xa98] sm:$0xff]   ;;  %v12243_v14 = vld [vmem:[%s13088_s15 + $0xae0] sm:$0xff]  }
 0x1ab   : > { %10954 = vmatpush3.bf16.msra.mxu1 %v12195_v13  ;;  %8181 = vmatprep.mubr.bf16.mxu1 %v2221_v17  ;;  %v12242_v13 = vld [vmem:[%s13088_s15 + $0xa20] sm:$0xff]   ;;  %v12246_v17 = vld [vmem:[%s13088_s15 + $0xa28] sm:$0xff]  }
 0x1ac   : > { %10955 = vmatprep.subr.bf16.mxu1 %v12198_v18  ;;  %v12244_v15 = vld [vmem:[%s13088_s15 + $0xaa0] sm:$0xff]   ;;  %v12247_v18 = vld [vmem:[%s13088_s15 + $0xae8] sm:$0xff]  }
 0x1ad   : > { %10934 = vmatpush3.bf16.msra.mxu0 %v12197_v16  ;;  %v12245_v16 = vld [vmem:[%s13088_s15 + $0xa68] sm:$0xff]  }
 0x1ae   : > { %10935 = vmatprep.subr.bf16.mxu0 %v12200_v20  ;;  %v12249_v20 = vld [vmem:[%s13088_s15 + $0xa70] sm:$0xff]  }
 0x1af   : > { %10956 = vmatpush3.bf16.msra.mxu1 %v12199_v19  ;;  %v12248_v19 = vld [vmem:[%s13088_s15 + $0xaa8] sm:$0xff]  }
 0x1b0   : > { %10957 = vmatprep.subr.bf16.mxu1 %v12202_v22  ;;  %v12250_v22 = vld [vmem:[%s13088_s15 + $0xa30] sm:$0xff]  }
 0x1b1   : > { %10936 = vmatpush3.bf16.msra.mxu0 %v12201_v21 }
 0x1b2   : > { %10937 = vmatprep.subr.bf16.mxu0 %v12204_v23 }
 0x1b3   : > { %10958 = vmatpush3.bf16.msra.mxu1 %v12203_v24  ;;  %v388_v24 = vld [vmem:[%s13110_s20 + $0x28] sm:$0xff] }
 0x1b4   : > { %10959 = vmatprep.subr.bf16.mxu1 %v12206_v26  ;;  %v2229_v26 = vrot.slane %v388_v24, %v13151_v42 }
 0x1b5   : > { %10938 = vmatpush3.bf16.msra.mxu0 %v12205_v25  ;;  %v12251_v25 = vld [vmem:[%s13088_s15 + $0xaf0] sm:$0xff]  }
 0x1b6   : > { %10939 = vmatprep.subr.bf16.mxu0 %v12208_v28 }
 0x1b7   : > { %10960 = vmatpush3.bf16.msra.mxu1 %v12207_v27  ;;  %v2222_v27 = vcombine.high %v388_v24, %v388_v24  ;;  %v12285_v24 = vld [vmem:[%s13088_s15 + $0xb78] sm:$0xff]  }
 0x1b8   : > { %10961 = vmatprep.subr.bf16.mxu1 %v12210_v30 }
 0x1b9   : > { %10940 = vmatpush3.bf16.msra.mxu0 %v12209_v29 }
 0x1ba   : > { %10941 = vmatprep.subr.bf16.mxu0 %v12212_v32 }
 0x1bb   : > { %v10639_v38 = vpop.f32.mrb[8].mxu0  ;;  %10962 = vmatpush3.bf16.msra.mxu1 %v12211_v31 }
 0x1bc   : > { %v10640_v40 = vpop.f32.mrb[9].mxu0  ;;  %10963 = vmatprep.subr.bf16.mxu1 %v12214_v35  ;;  %v12253_v35 = vld [vmem:[%s13088_s15 + $0xa78] sm:$0xff]  }
 0x1bd   : > { %v10641_v43 = vadd.f32 %v10640_v40, %v10639_v38  ;;  %v10642_v44 = vpop.f32.mrb[10].mxu0  ;;  %v10661_v45 = vpop.f32.mrb[8].mxu1  ;;  %10942 = vmatpush3.bf16.msra.mxu0 %v12213_v33  ;;  %v12252_v33 = vld [vmem:[%s13088_s15 + $0xab0] sm:$0xff]   ;;  %v12254_v40 = vld [vmem:[%s13088_s15 + $0xa38] sm:$0xff]  }
 0x1be   : > { %v10643_v48 = vpop.f32.mrb[11].mxu0  ;;  %v10662_v49 = vpop.f32.mrb[9].mxu1  ;;  %10943 = vmatprep.subr.bf16.mxu0 %v12216_v37  ;;  %v13538_v37 = vrot.slane %v2222_v27, %v13151_v42 }
 0x1bf   : > { %v7584_v50 = vadd.f32 %v10641_v43, %v13464_v4  ;;  %v10663_v51 = vadd.f32 %v10662_v49, %v10661_v45  ;;  %10964 = vmatpush3.bf16.msra.mxu1 %v12215_v36  ;;  %v10664_v53 = vpop.f32.mrb[10].mxu1  ;;  %v12233_v4 = vld [vmem:[%s13088_s15 + $0xa50] sm:$0xff]   ;;  %v2237_v36 = vcombine.high %v2229_v26, %v2229_v26  ;;  %v2245_v49 = vrot.slane %v2229_v26, %v13151_v42 }
 0x1c0   : > { %10965 = vmatprep.subr.bf16.mxu1 %v12218_v41  ;;  %v10665_v55 = vpop.f32.mrb[11].mxu1  ;;  %v12255_v41 = vld [vmem:[%s13088_s15 + $0xaf8] sm:$0xff]   ;;  %v2238_v45 = vcombine.high %v13538_v37, %v13538_v37 }
 0x1c1   : > { %v13501_v57 = vadd.f32 %v10663_v51, %v7584_v50  ;;  %10944 = vmatpush3.bf16.msra.mxu0 %v12217_v39  ;;  %v2259_v43 = vrot.slane %v2237_v36, %v13151_v42  ;;  %v12257_v50 = vld [vmem:[%s13088_s15 + $0xb40] sm:$0xff]  }
 0x1c2   : > { %10945 = vmatprep.subr.bf16.mxu0 %v12220_v47  ;;  %v12256_v47 = vld [vmem:[%s13088_s15 + $0xab8] sm:$0xff]   ;;  %v2266_v53 = vrot.slane %v2238_v45, %v13151_v42  ;;  %v12260_v55 = vld [vmem:[%s13088_s15 + $0xb80] sm:$0xff]   ;;  %v12297_v45 = vld [vmem:[%s13088_s15 + $0xc88] sm:$0xff]  }
 0x1c3   : > { %10966 = vmatpush3.bf16.msra.mxu1 %v12219_v46  ;;  %v2269_v51 = vcombine.high %v2259_v43, %v2259_v43  ;;  %v12290_v36 = vld [vmem:[%s13088_s15 + $0xc40] sm:$0xff]  }
 0x1c4   : > { %10967 = vmatprep.subr.bf16.mxu1 %v12222_v54  ;;  %v12259_v54 = vld [vmem:[%s13088_s15 + $0xbc0] sm:$0xff]  }
 0x1c5   : > { %10946 = vmatpush3.bf16.msra.mxu0 %v12221_v52  ;;  %v12258_v52 = vld [vmem:[%s13088_s15 + $0xb00] sm:$0xff]  }
 0x1c6   : > { %10975 = vmatprep.subr.bf16.mxu0 %v12225_v60  ;;  %v2270_v60 = vcombine.high %v2266_v53, %v2266_v53 }
 0x1c7   : > { %10968 = vmatpush3.bf16.msra.mxu1 %v12224_v58  ;;  %v12261_v58 = vld [vmem:[%s13088_s15 + $0xb48] sm:$0xff]  }
 0x1c8   : > { %8142 = vmatmul.mubr.bf16.vlgmr.msra.gmra.mrb[36].mxu0 %v2203_v59  ;;  %10997 = vmatprep.subr.bf16.mxu1 %v12227_v62  ;;  %v12262_v59 = vld [vmem:[%s13088_s15 + $0xb08] sm:$0xff]  }
 0x1c9   : > { %10976 = vmatpush3.bf16.msra.mxu0 %v12226_v61  ;;  %8221 = vmatprep.mubr.bf16.mxu0 %v2259_v43  ;;  %v12263_v61 = vld [vmem:[%s13088_s15 + $0xbc8] sm:$0xff]  }
 0x1ca   : > { %8182 = vmatmul.mubr.bf16.vlgmr.msra.gmra.mrb[36].mxu1 %v2219_v0  ;;  %10977 = vmatprep.subr.bf16.mxu0 %v12229_v1  ;;  %v12264_v62 = vld [vmem:[%s13088_s15 + $0xb88] sm:$0xff]   ;;  %v12266_v0 = vld [vmem:[%s13088_s15 + $0xb10] sm:$0xff]  }
 0x1cb   : > { %10998 = vmatpush3.bf16.msra.mxu1 %v12228_v63  ;;  %8261 = vmatprep.mubr.bf16.mxu1 %v2269_v51  ;;  %v12265_v63 = vld [vmem:[%s13088_s15 + $0xb50] sm:$0xff]   ;;  %v12294_v43 = vld [vmem:[%s13088_s15 + $0xc48] sm:$0xff]   ;;  %v12303_v51 = vld [vmem:[%s13088_s15 + $0xc18] sm:$0xff]  }
 0x1cc   : > { %10999 = vmatprep.subr.bf16.mxu1 %v12231_v56  ;;  %v12267_v1 = vld [vmem:[%s13088_s15 + $0xbd0] sm:$0xff]   ;;  %v12269_v56 = vld [vmem:[%s13088_s15 + $0xb58] sm:$0xff]  }
 0x1cd   : > { %10978 = vmatpush3.bf16.msra.mxu0 %v12230_v2  ;;  %v12268_v2 = vld [vmem:[%s13088_s15 + $0xb90] sm:$0xff]  }
 0x1ce   : > { %10979 = vmatprep.subr.bf16.mxu0 %v12233_v4  ;;  %v12271_v4 = vld [vmem:[%s13088_s15 + $0xbd8] sm:$0xff]  }
 0x1cf   : > { %11000 = vmatpush3.bf16.msra.mxu1 %v12232_v3  ;;  %v12270_v3 = vld [vmem:[%s13088_s15 + $0xb18] sm:$0xff]  }
 0x1d0   : > { %11001 = vmatprep.subr.bf16.mxu1 %v12235_v6  ;;  %v12273_v6 = vld [vmem:[%s13088_s15 + $0xb60] sm:$0xff]  }
 0x1d1   : > { %10980 = vmatpush3.bf16.msra.mxu0 %v12234_v5  ;;  %v12272_v5 = vld [vmem:[%s13088_s15 + $0xb98] sm:$0xff]  }
 0x1d2   : > { %10981 = vmatprep.subr.bf16.mxu0 %v12237_v8  ;;  %v12275_v8 = vld [vmem:[%s13088_s15 + $0xbe0] sm:$0xff]  }
 0x1d3   : > { %11002 = vmatpush3.bf16.msra.mxu1 %v12236_v7  ;;  %v12274_v7 = vld [vmem:[%s13088_s15 + $0xb20] sm:$0xff]  }
 0x1d4   : > { %11003 = vmatprep.subr.bf16.mxu1 %v12239_v10  ;;  %v12277_v10 = vld [vmem:[%s13088_s15 + $0xb68] sm:$0xff]  }
 0x1d5   : > { %10982 = vmatpush3.bf16.msra.mxu0 %v12238_v9  ;;  %v12276_v9 = vld [vmem:[%s13088_s15 + $0xba0] sm:$0xff]  }
 0x1d6   : > { %10983 = vmatprep.subr.bf16.mxu0 %v12241_v12  ;;  %v12279_v12 = vld [vmem:[%s13088_s15 + $0xbe8] sm:$0xff]  }
 0x1d7   : > { %11004 = vmatpush3.bf16.msra.mxu1 %v12240_v11  ;;  %v12278_v11 = vld [vmem:[%s13088_s15 + $0xb28] sm:$0xff]  }
 0x1d8   : > { %11005 = vmatprep.subr.bf16.mxu1 %v12243_v14  ;;  %v12281_v14 = vld [vmem:[%s13088_s15 + $0xb70] sm:$0xff]  }
 0x1d9   : > { %10984 = vmatpush3.bf16.msra.mxu0 %v12242_v13  ;;  %v12280_v13 = vld [vmem:[%s13088_s15 + $0xba8] sm:$0xff]  }
 0x1da   : > { %10985 = vmatprep.subr.bf16.mxu0 %v12245_v16  ;;  %v12282_v16 = vld [vmem:[%s13088_s15 + $0xb30] sm:$0xff]  }
 0x1db   : > { %v10683_v21 = vpop.f32.mrb[12].mxu0  ;;  %11006 = vmatpush3.bf16.msra.mxu1 %v12244_v15 }
 0x1dc   : > { %v10684_v23 = vpop.f32.mrb[13].mxu0  ;;  %11007 = vmatprep.subr.bf16.mxu1 %v12247_v18  ;;  %v12283_v18 = vld [vmem:[%s13088_s15 + $0xbf0] sm:$0xff]  }
 0x1dd   : > { %v10685_v28 = vadd.f32 %v10684_v23, %v10683_v21  ;;  %v10686_v29 = vpop.f32.mrb[14].mxu0  ;;  %v10705_v30 = vpop.f32.mrb[12].mxu1  ;;  %10986 = vmatpush3.bf16.msra.mxu0 %v12246_v17 }
 0x1de   : > { %v10687_v31 = vpop.f32.mrb[15].mxu0  ;;  %v10706_v32 = vpop.f32.mrb[13].mxu1  ;;  %10987 = vmatprep.subr.bf16.mxu0 %v12249_v20 }
 0x1df   : > { %v7664_v38 = vadd.f32 %v10685_v28, %v13501_v57  ;;  %v10707_v39 = vadd.f32 %v10706_v32, %v10705_v30  ;;  %11008 = vmatpush3.bf16.msra.mxu1 %v12248_v19  ;;  %v10708_v44 = vpop.f32.mrb[14].mxu1  ;;  %v2267_v57 = vcombine.high %v2245_v49, %v2245_v49  ;;  %v12286_v28 = vld [vmem:[%s13088_s15 + $0xb38] sm:$0xff]  }
 0x1e0   : > { %11009 = vmatprep.subr.bf16.mxu1 %v12251_v25  ;;  %v10709_v48 = vpop.f32.mrb[15].mxu1  ;;  %v12287_v30 = vld [vmem:[%s13088_s15 + $0xbf8] sm:$0xff]   ;;  %v12295_v44 = vld [vmem:[%s13088_s15 + $0xc08] sm:$0xff]  }
 0x1e1   : > { %v13546_v46 = vadd.f32 %v10707_v39, %v7664_v38  ;;  %10988 = vmatpush3.bf16.msra.mxu0 %v12250_v22  ;;  %v12284_v22 = vld [vmem:[%s13088_s15 + $0xbb0] sm:$0xff]   ;;  %v12291_v38 = vld [vmem:[%s13088_s15 + $0xc00] sm:$0xff]  }
 0x1e2   : > { %10989 = vmatprep.subr.bf16.mxu0 %v12253_v35  ;;  %v2252_v35 = vrot.slane %v13538_v37, %v13151_v42  ;;  %v12292_v39 = vld [vmem:[%s13088_s15 + $0xcc0] sm:$0xff]   ;;  %v12296_v37 = vld [vmem:[%s13088_s15 + $0xcc8] sm:$0xff]   ;;  %v12300_v48 = vld [vmem:[%s13088_s15 + $0xcd0] sm:$0xff]  }
 0x1e3   : > { %11010 = vmatpush3.bf16.msra.mxu1 %v12252_v33  ;;  %v12289_v33 = vld [vmem:[%s13088_s15 + $0xbb8] sm:$0xff]  }
 0x1e4   : > { %11011 = vmatprep.subr.bf16.mxu1 %v12255_v41  ;;  %v2268_v41 = vcombine.high %v2252_v35, %v2252_v35 }
 0x1e5   : > { %10990 = vmatpush3.bf16.msra.mxu0 %v12254_v40  ;;  %v12293_v40 = vld [vmem:[%s13088_s15 + $0xc80] sm:$0xff]  }
 0x1e6   : > { %11019 = vmatprep.subr.bf16.mxu0 %v12257_v50  ;;  %v12302_v50 = vld [vmem:[%s13088_s15 + $0xc58] sm:$0xff]  }
 0x1e7   : > { %11012 = vmatpush3.bf16.msra.mxu1 %v12256_v47  ;;  %v12299_v47 = vld [vmem:[%s13088_s15 + $0xc10] sm:$0xff]  }
 0x1e8   : > { %8222 = vmatmul.mubr.bf16.vlgmr.msra.gmra.mrb[40].mxu0 %v2245_v49  ;;  %11041 = vmatprep.subr.bf16.mxu1 %v12259_v54  ;;  %v12301_v49 = vld [vmem:[%s13088_s15 + $0xc90] sm:$0xff]   ;;  %v12306_v54 = vld [vmem:[%s13088_s15 + $0xc60] sm:$0xff]  }
 0x1e9   : > { %11020 = vmatpush3.bf16.msra.mxu0 %v12258_v52  ;;  %8301 = vmatprep.mubr.bf16.mxu0 %v2266_v53  ;;  %v12304_v52 = vld [vmem:[%s13088_s15 + $0xcd8] sm:$0xff]  }
 0x1ea   : > { %8262 = vmatmul.mubr.bf16.vlgmr.msra.gmra.mrb[40].mxu1 %v2267_v57  ;;  %11021 = vmatprep.subr.bf16.mxu0 %v12261_v58  ;;  %v12305_v53 = vld [vmem:[%s13088_s15 + $0xc98] sm:$0xff]   ;;  %v12308_v57 = vld [vmem:[%s13088_s15 + $0xce0] sm:$0xff]  }
 0x1eb   : > { %11042 = vmatpush3.bf16.msra.mxu1 %v12260_v55  ;;  %8341 = vmatprep.mubr.bf16.mxu1 %v2270_v60  ;;  %v12307_v55 = vld [vmem:[%s13088_s15 + $0xc20] sm:$0xff]   ;;  %v12311_v60 = vld [vmem:[%s13088_s15 + $0xc28] sm:$0xff]  }
 0x1ec   : > { %11043 = vmatprep.subr.bf16.mxu1 %v12263_v61  ;;  %v12309_v58 = vld [vmem:[%s13088_s15 + $0xca0] sm:$0xff]   ;;  %v12312_v61 = vld [vmem:[%s13088_s15 + $0xce8] sm:$0xff]  }
 0x1ed   : > { %11022 = vmatpush3.bf16.msra.mxu0 %v12262_v59  ;;  %v12310_v59 = vld [vmem:[%s13088_s15 + $0xc68] sm:$0xff]  }
 0x1ee   : > { %11023 = vmatprep.subr.bf16.mxu0 %v12265_v63  ;;  %v12314_v63 = vld [vmem:[%s13088_s15 + $0xc70] sm:$0xff]  }
 0x1ef   : > { %11044 = vmatpush3.bf16.msra.mxu1 %v12264_v62  ;;  %v12313_v62 = vld [vmem:[%s13088_s15 + $0xca8] sm:$0xff]  }
 0x1f0   : > { %11045 = vmatprep.subr.bf16.mxu1 %v12267_v1  ;;  %v12315_v1 = vld [vmem:[%s13088_s15 + $0xc30] sm:$0xff]  }
 0x1f1   : > { %11024 = vmatpush3.bf16.msra.mxu0 %v12266_v0 }
 0x1f2   : > { %11025 = vmatprep.subr.bf16.mxu0 %v12269_v56  ;;  %v12316_v56 = vld [vmem:[%s13088_s15 + $0xcf0] sm:$0xff]  }
 0x1f3   : > { %11046 = vmatpush3.bf16.msra.mxu1 %v12268_v2 }
 0x1f4   : > { %11047 = vmatprep.subr.bf16.mxu1 %v12271_v4 }
 0x1f5   : > { %11026 = vmatpush3.bf16.msra.mxu0 %v12270_v3  ;;  %v389_v3 = vld [vmem:[%s13110_s20 + $0x30] sm:$0xff] }
 0x1f6   : > { %11027 = vmatprep.subr.bf16.mxu0 %v12273_v6 }
 0x1f7   : > { %11048 = vmatpush3.bf16.msra.mxu1 %v12272_v5 }
 0x1f8   : > { %11049 = vmatprep.subr.bf16.mxu1 %v12275_v8  ;;  %v2271_v8 = vcombine.high %v389_v3, %v389_v3 }
 0x1f9   : > { %11028 = vmatpush3.bf16.msra.mxu0 %v12274_v7  ;;  %v2278_v7 = vrot.slane %v389_v3, %v13151_v42 }
 0x1fa   : > { %11029 = vmatprep.subr.bf16.mxu0 %v12277_v10 }
 0x1fb   : > { %v10727_v15 = vpop.f32.mrb[16].mxu0  ;;  %11050 = vmatpush3.bf16.msra.mxu1 %v12276_v9 }
 0x1fc   : > { %v10728_v17 = vpop.f32.mrb[17].mxu0  ;;  %11051 = vmatprep.subr.bf16.mxu1 %v12279_v12  ;;  %v12318_v12 = vld [vmem:[%s13088_s15 + $0xc78] sm:$0xff]  }
 0x1fd   : > { %v10729_v19 = vadd.f32 %v10728_v17, %v10727_v15  ;;  %v10730_v20 = vpop.f32.mrb[18].mxu0  ;;  %v10749_v21 = vpop.f32.mrb[16].mxu1  ;;  %11030 = vmatpush3.bf16.msra.mxu0 %v12278_v11  ;;  %v12317_v11 = vld [vmem:[%s13088_s15 + $0xcb0] sm:$0xff]   ;;  %v12319_v15 = vld [vmem:[%s13088_s15 + $0xc38] sm:$0xff]  }
 0x1fe   : > { %v10731_v23 = vpop.f32.mrb[19].mxu0  ;;  %v10750_v25 = vpop.f32.mrb[17].mxu1  ;;  %11031 = vmatprep.subr.bf16.mxu0 %v12281_v14  ;;  %v12320_v17 = vld [vmem:[%s13088_s15 + $0xcf8] sm:$0xff]  }
 0x1ff   : > { %v7744_v26 = vadd.f32 %v10729_v19, %v13546_v46  ;;  %v10751_v27 = vadd.f32 %v10750_v25, %v10749_v21  ;;  %11052 = vmatpush3.bf16.msra.mxu1 %v12280_v13  ;;  %v10752_v29 = vpop.f32.mrb[18].mxu1  ;;  %v12298_v46 = vld [vmem:[%s13088_s15 + $0xc50] sm:$0xff]   ;;  %v13623_v19 = vrot.slane %v2271_v8, %v13151_v42  ;;  %v2294_v23 = vrot.slane %v2278_v7, %v13151_v42  ;;  %v12322_v25 = vld [vmem:[%s13088_s15 + $0xd40] sm:$0xff]   ;;  %v12352_v8 = vld [vmem:[%s13088_s15 + $0xdf8] sm:$0xff]  }
 0x200   : > { %11053 = vmatprep.subr.bf16.mxu1 %v12283_v18  ;;  %v10753_v31 = vpop.f32.mrb[19].mxu1  ;;  %v12324_v29 = vld [vmem:[%s13088_s15 + $0xdc0] sm:$0xff]  }
 0x201   : > { %v13583_v32 = vadd.f32 %v10751_v27, %v7744_v26  ;;  %11032 = vmatpush3.bf16.msra.mxu0 %v12282_v16  ;;  %v2286_v16 = vcombine.high %v2278_v7, %v2278_v7  ;;  %v2287_v26 = vcombine.high %v13623_v19, %v13623_v19  ;;  %v12325_v31 = vld [vmem:[%s13088_s15 + $0xd80] sm:$0xff]  }
 0x202   : > { %11033 = vmatprep.subr.bf16.mxu0 %v12285_v24 }
 0x203   : > { %11054 = vmatpush3.bf16.msra.mxu1 %v12284_v22  ;;  %v2308_v21 = vrot.slane %v2286_v16, %v13151_v42  ;;  %v12321_v22 = vld [vmem:[%s13088_s15 + $0xcb8] sm:$0xff]   ;;  %v12358_v16 = vld [vmem:[%s13088_s15 + $0xe80] sm:$0xff]  }
 0x204   : > { %11055 = vmatprep.subr.bf16.mxu1 %v12287_v30  ;;  %v2315_v30 = vrot.slane %v2287_v26, %v13151_v42  ;;  %v12367_v26 = vld [vmem:[%s13088_s15 + $0xe58] sm:$0xff]  }
 0x205   : > { %11034 = vmatpush3.bf16.msra.mxu0 %v12286_v28  ;;  %v2318_v27 = vcombine.high %v2308_v21, %v2308_v21  ;;  %v12323_v28 = vld [vmem:[%s13088_s15 + $0xd00] sm:$0xff]  }
 0x206   : > { %11063 = vmatprep.subr.bf16.mxu0 %v12290_v36  ;;  %v2319_v36 = vcombine.high %v2315_v30, %v2315_v30 }
 0x207   : > { %11056 = vmatpush3.bf16.msra.mxu1 %v12289_v33  ;;  %v12326_v33 = vld [vmem:[%s13088_s15 + $0xd48] sm:$0xff]  }
 0x208   : > { %8302 = vmatmul.mubr.bf16.vlgmr.msra.gmra.mrb[44].mxu0 %v2252_v35  ;;  %11085 = vmatprep.subr.bf16.mxu1 %v12292_v39  ;;  %v12327_v35 = vld [vmem:[%s13088_s15 + $0xd08] sm:$0xff]  }
 0x209   : > { %11064 = vmatpush3.bf16.msra.mxu0 %v12291_v38  ;;  %8381 = vmatprep.mubr.bf16.mxu0 %v2308_v21  ;;  %v12328_v38 = vld [vmem:[%s13088_s15 + $0xdc8] sm:$0xff]  }
 0x20a   : > { %8342 = vmatmul.mubr.bf16.vlgmr.msra.gmra.mrb[44].mxu1 %v2268_v41  ;;  %11065 = vmatprep.subr.bf16.mxu0 %v12294_v43  ;;  %v12329_v39 = vld [vmem:[%s13088_s15 + $0xd88] sm:$0xff]   ;;  %v12331_v41 = vld [vmem:[%s13088_s15 + $0xd10] sm:$0xff]  }
 0x20b   : > { %11086 = vmatpush3.bf16.msra.mxu1 %v12293_v40  ;;  %8421 = vmatprep.mubr.bf16.mxu1 %v2318_v27  ;;  %v12330_v40 = vld [vmem:[%s13088_s15 + $0xd50] sm:$0xff]   ;;  %v12362_v21 = vld [vmem:[%s13088_s15 + $0xe88] sm:$0xff]   ;;  %v12368_v27 = vld [vmem:[%s13088_s15 + $0xe18] sm:$0xff]  }
 0x20c   : > { %11087 = vmatprep.subr.bf16.mxu1 %v12296_v37  ;;  %v12332_v43 = vld [vmem:[%s13088_s15 + $0xdd0] sm:$0xff]   ;;  %v12334_v37 = vld [vmem:[%s13088_s15 + $0xd58] sm:$0xff]  }
 0x20d   : > { %11066 = vmatpush3.bf16.msra.mxu0 %v12295_v44  ;;  %v12333_v44 = vld [vmem:[%s13088_s15 + $0xd90] sm:$0xff]  }
 0x20e   : > { %11067 = vmatprep.subr.bf16.mxu0 %v12298_v46  ;;  %v12336_v46 = vld [vmem:[%s13088_s15 + $0xdd8] sm:$0xff]  }
 0x20f   : > { %11088 = vmatpush3.bf16.msra.mxu1 %v12297_v45  ;;  %v12335_v45 = vld [vmem:[%s13088_s15 + $0xd18] sm:$0xff]  }
 0x210   : > { %11089 = vmatprep.subr.bf16.mxu1 %v12300_v48  ;;  %v12338_v48 = vld [vmem:[%s13088_s15 + $0xd60] sm:$0xff]  }
 0x211   : > { %11068 = vmatpush3.bf16.msra.mxu0 %v12299_v47  ;;  %v12337_v47 = vld [vmem:[%s13088_s15 + $0xd98] sm:$0xff]  }
 0x212   : > { %11069 = vmatprep.subr.bf16.mxu0 %v12302_v50  ;;  %v12340_v50 = vld [vmem:[%s13088_s15 + $0xde0] sm:$0xff]  }
 0x213   : > { %11090 = vmatpush3.bf16.msra.mxu1 %v12301_v49  ;;  %v12339_v49 = vld [vmem:[%s13088_s15 + $0xd20] sm:$0xff]  }
 0x214   : > { %11091 = vmatprep.subr.bf16.mxu1 %v12304_v52  ;;  %v12342_v52 = vld [vmem:[%s13088_s15 + $0xd68] sm:$0xff]  }
 0x215   : > { %11070 = vmatpush3.bf16.msra.mxu0 %v12303_v51  ;;  %v12341_v51 = vld [vmem:[%s13088_s15 + $0xda0] sm:$0xff]  }
 0x216   : > { %11071 = vmatprep.subr.bf16.mxu0 %v12306_v54  ;;  %v12344_v54 = vld [vmem:[%s13088_s15 + $0xde8] sm:$0xff]  }
 0x217   : > { %11092 = vmatpush3.bf16.msra.mxu1 %v12305_v53  ;;  %v12343_v53 = vld [vmem:[%s13088_s15 + $0xd28] sm:$0xff]  }
 0x218   : > { %11093 = vmatprep.subr.bf16.mxu1 %v12308_v57  ;;  %v12346_v57 = vld [vmem:[%s13088_s15 + $0xd70] sm:$0xff]  }
 0x219   : > { %11072 = vmatpush3.bf16.msra.mxu0 %v12307_v55  ;;  %v12345_v55 = vld [vmem:[%s13088_s15 + $0xda8] sm:$0xff]  }
 0x21a   : > { %11073 = vmatprep.subr.bf16.mxu0 %v12310_v59  ;;  %v12347_v59 = vld [vmem:[%s13088_s15 + $0xd30] sm:$0xff]  }
 0x21b   : > { %v10771_v0 = vpop.f32.mrb[20].mxu0  ;;  %11094 = vmatpush3.bf16.msra.mxu1 %v12309_v58 }
 0x21c   : > { %v10772_v2 = vpop.f32.mrb[21].mxu0  ;;  %11095 = vmatprep.subr.bf16.mxu1 %v12312_v61  ;;  %v12348_v61 = vld [vmem:[%s13088_s15 + $0xdf0] sm:$0xff]  }
 0x21d   : > { %v10773_v4 = vadd.f32 %v10772_v2, %v10771_v0  ;;  %v10774_v5 = vpop.f32.mrb[22].mxu0  ;;  %v10793_v6 = vpop.f32.mrb[20].mxu1  ;;  %11074 = vmatpush3.bf16.msra.mxu0 %v12311_v60  ;;  %v12350_v2 = vld [vmem:[%s13088_s15 + $0xd78] sm:$0xff]  }
 0x21e   : > { %v10775_v9 = vpop.f32.mrb[23].mxu0  ;;  %v10794_v10 = vpop.f32.mrb[21].mxu1  ;;  %11075 = vmatprep.subr.bf16.mxu0 %v12314_v63 }
 0x21f   : > { %v7824_v13 = vadd.f32 %v10773_v4, %v13583_v32  ;;  %v10795_v14 = vadd.f32 %v10794_v10, %v10793_v6  ;;  %11096 = vmatpush3.bf16.msra.mxu1 %v12313_v62  ;;  %v10796_v18 = vpop.f32.mrb[22].mxu1  ;;  %v2316_v32 = vcombine.high %v2294_v23, %v2294_v23  ;;  %v12351_v6 = vld [vmem:[%s13088_s15 + $0xd38] sm:$0xff]  }
 0x220   : > { %11097 = vmatprep.subr.bf16.mxu1 %v12316_v56  ;;  %v10797_v24 = vpop.f32.mrb[23].mxu1  ;;  %v12359_v18 = vld [vmem:[%s13088_s15 + $0xe48] sm:$0xff]  }
 0x221   : > { %v13625_v20 = vadd.f32 %v10795_v14, %v7824_v13  ;;  %11076 = vmatpush3.bf16.msra.mxu0 %v12315_v1  ;;  %v12349_v1 = vld [vmem:[%s13088_s15 + $0xdb0] sm:$0xff]   ;;  %v12355_v13 = vld [vmem:[%s13088_s15 + $0xe40] sm:$0xff]  }
 0x222   : > { %11077 = vmatprep.subr.bf16.mxu0 %v12318_v12  ;;  %v2301_v12 = vrot.slane %v13623_v19, %v13151_v42  ;;  %v12356_v14 = vld [vmem:[%s13088_s15 + $0xe00] sm:$0xff]   ;;  %v12361_v19 = vld [vmem:[%s13088_s15 + $0xec8] sm:$0xff]   ;;  %v12364_v24 = vld [vmem:[%s13088_s15 + $0xe10] sm:$0xff]  }
 0x223   : > { %11098 = vmatpush3.bf16.msra.mxu1 %v12317_v11  ;;  %v12354_v11 = vld [vmem:[%s13088_s15 + $0xdb8] sm:$0xff]  }
 0x224   : > { %11099 = vmatprep.subr.bf16.mxu1 %v12320_v17  ;;  %v2317_v17 = vcombine.high %v2301_v12, %v2301_v12 }
 0x225   : > { %11078 = vmatpush3.bf16.msra.mxu0 %v12319_v15  ;;  %v12357_v15 = vld [vmem:[%s13088_s15 + $0xec0] sm:$0xff]  }
 0x226   : > { %11107 = vmatprep.subr.bf16.mxu0 %v12322_v25  ;;  %v12366_v25 = vld [vmem:[%s13088_s15 + $0xe90] sm:$0xff]  }
 0x227   : > { %11100 = vmatpush3.bf16.msra.mxu1 %v12321_v22  ;;  %v12363_v22 = vld [vmem:[%s13088_s15 + $0xe50] sm:$0xff]  }
 0x228   : > { %8382 = vmatmul.mubr.bf16.vlgmr.msra.gmra.mrb[48].mxu0 %v2294_v23  ;;  %11129 = vmatprep.subr.bf16.mxu1 %v12324_v29  ;;  %v12365_v23 = vld [vmem:[%s13088_s15 + $0xed0] sm:$0xff]   ;;  %v12370_v29 = vld [vmem:[%s13088_s15 + $0xe98] sm:$0xff]  }
 0x229   : > { %11108 = vmatpush3.bf16.msra.mxu0 %v12323_v28  ;;  %8461 = vmatprep.mubr.bf16.mxu0 %v2315_v30  ;;  %v12369_v28 = vld [vmem:[%s13088_s15 + $0xed8] sm:$0xff]   ;;  %v12371_v30 = vld [vmem:[%s13088_s15 + $0xe60] sm:$0xff]  }
 0x22a   : > { %8422 = vmatmul.mubr.bf16.vlgmr.msra.gmra.mrb[48].mxu1 %v2316_v32  ;;  %11109 = vmatprep.subr.bf16.mxu0 %v12326_v33  ;;  %v12373_v32 = vld [vmem:[%s13088_s15 + $0xee0] sm:$0xff]  }
 0x22b   : > { %11130 = vmatpush3.bf16.msra.mxu1 %v12325_v31  ;;  %8501 = vmatprep.mubr.bf16.mxu1 %v2319_v36  ;;  %v12372_v31 = vld [vmem:[%s13088_s15 + $0xe20] sm:$0xff]   ;;  %v12376_v36 = vld [vmem:[%s13088_s15 + $0xe28] sm:$0xff]  }
 0x22c   : > { %11131 = vmatprep.subr.bf16.mxu1 %v12328_v38  ;;  %v12374_v33 = vld [vmem:[%s13088_s15 + $0xea0] sm:$0xff]   ;;  %v12377_v38 = vld [vmem:[%s13088_s15 + $0xee8] sm:$0xff]  }
 0x22d   : > { %11110 = vmatpush3.bf16.msra.mxu0 %v12327_v35  ;;  %v12375_v35 = vld [vmem:[%s13088_s15 + $0xe68] sm:$0xff]  }
 0x22e   : > { %11111 = vmatprep.subr.bf16.mxu0 %v12330_v40  ;;  %v12379_v40 = vld [vmem:[%s13088_s15 + $0xe70] sm:$0xff]  }
 0x22f   : > { %11132 = vmatpush3.bf16.msra.mxu1 %v12329_v39  ;;  %v12378_v39 = vld [vmem:[%s13088_s15 + $0xea8] sm:$0xff]  }
 0x230   : > { %11133 = vmatprep.subr.bf16.mxu1 %v12332_v43  ;;  %v12380_v43 = vld [vmem:[%s13088_s15 + $0xe30] sm:$0xff]  }
 0x231   : > { %11112 = vmatpush3.bf16.msra.mxu0 %v12331_v41 }
 0x232   : > { %11113 = vmatprep.subr.bf16.mxu0 %v12334_v37  ;;  %v12381_v37 = vld [vmem:[%s13088_s15 + $0xef0] sm:$0xff]  }
 0x233   : > { %11134 = vmatpush3.bf16.msra.mxu1 %v12333_v44 }
 0x234   : > { %11135 = vmatprep.subr.bf16.mxu1 %v12336_v46 }
 0x235   : > { %11114 = vmatpush3.bf16.msra.mxu0 %v12335_v45 }
 0x236   : > { %11115 = vmatprep.subr.bf16.mxu0 %v12338_v48  ;;  %v12382_v48 = vld [vmem:[%s13088_s15 + $0xeb0] sm:$0xff]  }
 0x237   : > { %11136 = vmatpush3.bf16.msra.mxu1 %v12337_v47 }
 0x238   : > { %11137 = vmatprep.subr.bf16.mxu1 %v12340_v50  ;;  %v390_v50 = vld [vmem:[%s13110_s20 + $0x38] sm:$0xff] }
 0x239   : > { %11116 = vmatpush3.bf16.msra.mxu0 %v12339_v49  ;;  %v12383_v49 = vld [vmem:[%s13088_s15 + $0xe78] sm:$0xff]  }
 0x23a   : > { %11117 = vmatprep.subr.bf16.mxu0 %v12342_v52 }
 0x23b   : > { %v10815_v58 = vpop.f32.mrb[24].mxu0  ;;  %11138 = vmatpush3.bf16.msra.mxu1 %v12341_v51 }
 0x23c   : > { %v10816_v60 = vpop.f32.mrb[25].mxu0  ;;  %11139 = vmatprep.subr.bf16.mxu1 %v12344_v54  ;;  %v2320_v54 = vcombine.high %v390_v50, %v390_v50 }
 0x23d   : > { %v10817_v62 = vadd.f32 %v10816_v60, %v10815_v58  ;;  %v10818_v63 = vpop.f32.mrb[26].mxu0  ;;  %v10837_v0 = vpop.f32.mrb[24].mxu1  ;;  %11118 = vmatpush3.bf16.msra.mxu0 %v12343_v53  ;;  %v2327_v53 = vrot.slane %v390_v50, %v13151_v42  ;;  %v12384_v58 = vld [vmem:[%s13088_s15 + $0xe38] sm:$0xff]  }
 0x23e   : > { %v10819_v56 = vpop.f32.mrb[27].mxu0  ;;  %v10838_v3 = vpop.f32.mrb[25].mxu1  ;;  %11119 = vmatprep.subr.bf16.mxu0 %v12346_v57  ;;  %v12385_v60 = vld [vmem:[%s13088_s15 + $0xef8] sm:$0xff]   ;;  %v13705_v63 = vrot.slane %v2320_v54, %v13151_v42 }
 0x23f   : > { %v7904_v4 = vadd.f32 %v10817_v62, %v13625_v20  ;;  %v10839_v5 = vadd.f32 %v10838_v3, %v10837_v0  ;;  %11140 = vmatpush3.bf16.msra.mxu1 %v12345_v55  ;;  %v10840_v7 = vpop.f32.mrb[26].mxu1  ;;  %v12360_v20 = vld [vmem:[%s13088_s15 + $0xe08] sm:$0xff]   ;;  %v2343_v56 = vrot.slane %v2327_v53, %v13151_v42  ;;  %v12387_v3 = vld [vmem:[%s13088_s15 + $0xf40] sm:$0xff]   ;;  %v12417_v50 = vld [vmem:[%s13088_s15 + $0xff8] sm:$0xff]  }
 0x240   : > { %11141 = vmatprep.subr.bf16.mxu1 %v12348_v61  ;;  %v10841_v9 = vpop.f32.mrb[27].mxu1  ;;  %v2335_v61 = vcombine.high %v2327_v53, %v2327_v53  ;;  %v12389_v7 = vld [vmem:[%s13088_s15 + $0xfc0] sm:$0xff]   ;;  %v12419_v53 = vld [vmem:[%s13088_s15 + $0xfb8] sm:$0xff]   ;;  %v2350_v54 = vrot.slane %v13705_v63, %v13151_v42 }
 0x241   : > { %v13665_v10 = vadd.f32 %v10839_v5, %v7904_v4  ;;  %11120 = vmatpush3.bf16.msra.mxu0 %v12347_v59  ;;  %v2336_v4 = vcombine.high %v13705_v63, %v13705_v63  ;;  %v12388_v5 = vld [vmem:[%s13088_s15 + $0xf00] sm:$0xff]   ;;  %v12426_v63 = vld [vmem:[%s13088_s15 + $0x10c8] sm:$0xff]  }
 0x242   : > { %11121 = vmatprep.subr.bf16.mxu0 %v12350_v2  ;;  %v2357_v2 = vrot.slane %v2335_v61, %v13151_v42  ;;  %v12390_v9 = vld [vmem:[%s13088_s15 + $0xf80] sm:$0xff]   ;;  %v12424_v61 = vld [vmem:[%s13088_s15 + $0x1048] sm:$0xff]  }
 0x243   : > { %11142 = vmatpush3.bf16.msra.mxu1 %v12349_v1  ;;  %v12386_v1 = vld [vmem:[%s13088_s15 + $0xeb8] sm:$0xff]  }
 0x244   : > { %11143 = vmatprep.subr.bf16.mxu1 %v12352_v8  ;;  %v2364_v8 = vrot.slane %v2336_v4, %v13151_v42  ;;  %v12432_v4 = vld [vmem:[%s13088_s15 + $0x1058] sm:$0xff]  }
 0x245   : > { %11122 = vmatpush3.bf16.msra.mxu0 %v12351_v6  ;;  %v2367_v6 = vcombine.high %v2357_v2, %v2357_v2 }
 0x246   : > { %11151 = vmatprep.subr.bf16.mxu0 %v12355_v13  ;;  %v2368_v13 = vcombine.high %v2364_v8, %v2364_v8 }
 0x247   : > { %11144 = vmatpush3.bf16.msra.mxu1 %v12354_v11  ;;  %v12391_v11 = vld [vmem:[%s13088_s15 + $0xf48] sm:$0xff]  }
 0x248   : > { %8462 = vmatmul.mubr.bf16.vlgmr.msra.gmra.mrb[52].mxu0 %v2301_v12  ;;  %11173 = vmatprep.subr.bf16.mxu1 %v12357_v15  ;;  %v12392_v12 = vld [vmem:[%s13088_s15 + $0xf08] sm:$0xff]  }
 0x249   : > { %11152 = vmatpush3.bf16.msra.mxu0 %v12356_v14  ;;  %8541 = vmatprep.mubr.bf16.mxu0 %v2357_v2  ;;  %v12393_v14 = vld [vmem:[%s13088_s15 + $0xfc8] sm:$0xff]   ;;  %v12429_v2 = vld [vmem:[%s13088_s15 + $0x1010] sm:$0xff]  }
 0x24a   : > { %8502 = vmatmul.mubr.bf16.vlgmr.msra.gmra.mrb[52].mxu1 %v2317_v17  ;;  %11153 = vmatprep.subr.bf16.mxu0 %v12359_v18  ;;  %v12394_v15 = vld [vmem:[%s13088_s15 + $0xf88] sm:$0xff]   ;;  %v12396_v17 = vld [vmem:[%s13088_s15 + $0xf10] sm:$0xff]  }
 0x24b   : > { %11174 = vmatpush3.bf16.msra.mxu1 %v12358_v16  ;;  %8581 = vmatprep.mubr.bf16.mxu1 %v2367_v6  ;;  %v12395_v16 = vld [vmem:[%s13088_s15 + $0xf50] sm:$0xff]   ;;  %v12434_v6 = vld [vmem:[%s13088_s15 + $0x10d8] sm:$0xff]  }
 0x24c   : > { %11175 = vmatprep.subr.bf16.mxu1 %v12361_v19  ;;  %v12397_v18 = vld [vmem:[%s13088_s15 + $0xfd0] sm:$0xff]   ;;  %v12399_v19 = vld [vmem:[%s13088_s15 + $0xf58] sm:$0xff]  }
 0x24d   : > { %11154 = vmatpush3.bf16.msra.mxu0 %v12360_v20  ;;  %v12398_v20 = vld [vmem:[%s13088_s15 + $0xf90] sm:$0xff]  }
 0x24e   : > { %11155 = vmatprep.subr.bf16.mxu0 %v12363_v22  ;;  %v12401_v22 = vld [vmem:[%s13088_s15 + $0xfd8] sm:$0xff]  }
 0x24f   : > { %11176 = vmatpush3.bf16.msra.mxu1 %v12362_v21  ;;  %v12400_v21 = vld [vmem:[%s13088_s15 + $0xf18] sm:$0xff]  }
 0x250   : > { %11177 = vmatprep.subr.bf16.mxu1 %v12365_v23  ;;  %v12403_v23 = vld [vmem:[%s13088_s15 + $0xf60] sm:$0xff]  }
 0x251   : > { %11156 = vmatpush3.bf16.msra.mxu0 %v12364_v24  ;;  %v12402_v24 = vld [vmem:[%s13088_s15 + $0xf98] sm:$0xff]  }
 0x252   : > { %11157 = vmatprep.subr.bf16.mxu0 %v12367_v26  ;;  %v12405_v26 = vld [vmem:[%s13088_s15 + $0xfe0] sm:$0xff]  }
 0x253   : > { %11178 = vmatpush3.bf16.msra.mxu1 %v12366_v25  ;;  %v12404_v25 = vld [vmem:[%s13088_s15 + $0xf20] sm:$0xff]  }
 0x254   : > { %11179 = vmatprep.subr.bf16.mxu1 %v12369_v28  ;;  %v12407_v28 = vld [vmem:[%s13088_s15 + $0xf68] sm:$0xff]  }
 0x255   : > { %11158 = vmatpush3.bf16.msra.mxu0 %v12368_v27  ;;  %v12406_v27 = vld [vmem:[%s13088_s15 + $0xfa0] sm:$0xff]  }
 0x256   : > { %11159 = vmatprep.subr.bf16.mxu0 %v12371_v30  ;;  %v12409_v30 = vld [vmem:[%s13088_s15 + $0xfe8] sm:$0xff]  }
 0x257   : > { %11180 = vmatpush3.bf16.msra.mxu1 %v12370_v29  ;;  %v12408_v29 = vld [vmem:[%s13088_s15 + $0xf28] sm:$0xff]  }
 0x258   : > { %11181 = vmatprep.subr.bf16.mxu1 %v12373_v32  ;;  %v12411_v32 = vld [vmem:[%s13088_s15 + $0xf70] sm:$0xff]  }
 0x259   : > { %11160 = vmatpush3.bf16.msra.mxu0 %v12372_v31  ;;  %v12410_v31 = vld [vmem:[%s13088_s15 + $0xfa8] sm:$0xff]  }
 0x25a   : > { %11161 = vmatprep.subr.bf16.mxu0 %v12375_v35  ;;  %v12412_v35 = vld [vmem:[%s13088_s15 + $0xf30] sm:$0xff]  }
 0x25b   : > { %v10859_v41 = vpop.f32.mrb[28].mxu0  ;;  %11182 = vmatpush3.bf16.msra.mxu1 %v12374_v33 }
 0x25c   : > { %v10860_v44 = vpop.f32.mrb[29].mxu0  ;;  %11183 = vmatprep.subr.bf16.mxu1 %v12377_v38  ;;  %v12413_v38 = vld [vmem:[%s13088_s15 + $0xff0] sm:$0xff]  }
 0x25d   : > { %v10861_v45 = vadd.f32 %v10860_v44, %v10859_v41  ;;  %v10862_v46 = vpop.f32.mrb[30].mxu0  ;;  %v10881_v47 = vpop.f32.mrb[28].mxu1  ;;  %11162 = vmatpush3.bf16.msra.mxu0 %v12376_v36  ;;  %v12415_v44 = vld [vmem:[%s13088_s15 + $0xf78] sm:$0xff]  }
 0x25e   : > { %v10863_v51 = vpop.f32.mrb[31].mxu0  ;;  %v10882_v52 = vpop.f32.mrb[29].mxu1  ;;  %11163 = vmatprep.subr.bf16.mxu0 %v12379_v40 }
 0x25f   : > { %v7984_v55 = vadd.f32 %v10861_v45, %v13665_v10  ;;  %v10883_v57 = vadd.f32 %v10882_v52, %v10881_v47  ;;  %11184 = vmatpush3.bf16.msra.mxu1 %v12378_v39  ;;  %v10884_v59 = vpop.f32.mrb[30].mxu1  ;;  %v2365_v10 = vcombine.high %v2343_v56, %v2343_v56 }
 0x260   : > { %11185 = vmatprep.subr.bf16.mxu1 %v12381_v37  ;;  %v10885_v62 = vpop.f32.mrb[31].mxu1  ;;  %v12423_v59 = vld [vmem:[%s13088_s15 + $0x1080] sm:$0xff]  }
 0x261   : > { %v13707_v0 = vadd.f32 %v10883_v57, %v7984_v55  ;;  %11164 = vmatpush3.bf16.msra.mxu0 %v12380_v43  ;;  %v12414_v43 = vld [vmem:[%s13088_s15 + $0xfb0] sm:$0xff]   ;;  %v12420_v55 = vld [vmem:[%s13088_s15 + $0x1040] sm:$0xff]   ;;  %v12425_v62 = vld [vmem:[%s13088_s15 + $0x1008] sm:$0xff]  }
 0x262   : > { %11165 = vmatprep.subr.bf16.mxu0 %v12383_v49  ;;  %v12421_v57 = vld [vmem:[%s13088_s15 + $0x1000] sm:$0xff]  }
 0x263   : > { %11186 = vmatpush3.bf16.msra.mxu1 %v12382_v48  ;;  %v12416_v48 = vld [vmem:[%s13088_s15 + $0xf38] sm:$0xff]  }
 0x264   : > { %11187 = vmatprep.subr.bf16.mxu1 %v12385_v60  ;;  %v2366_v60 = vcombine.high %v2350_v54, %v2350_v54 }
 0x265   : > { %11166 = vmatpush3.bf16.msra.mxu0 %v12384_v58  ;;  %v12422_v58 = vld [vmem:[%s13088_s15 + $0x10c0] sm:$0xff]  }
 0x266   : > { %11195 = vmatprep.subr.bf16.mxu0 %v12387_v3  ;;  %v12431_v3 = vld [vmem:[%s13088_s15 + $0x1090] sm:$0xff]  }
 0x267   : > { %11188 = vmatpush3.bf16.msra.mxu1 %v12386_v1  ;;  %v12428_v1 = vld [vmem:[%s13088_s15 + $0x1050] sm:$0xff]  }
 0x268   : > { %8542 = vmatmul.mubr.bf16.vlgmr.msra.gmra.mrb[56].mxu0 %v2343_v56  ;;  %11217 = vmatprep.subr.bf16.mxu1 %v12389_v7  ;;  %v12430_v56 = vld [vmem:[%s13088_s15 + $0x10d0] sm:$0xff]   ;;  %v12435_v7 = vld [vmem:[%s13088_s15 + $0x1098] sm:$0xff]  }
 0x269   : > { %11196 = vmatpush3.bf16.msra.mxu0 %v12388_v5  ;;  %8621 = vmatprep.mubr.bf16.mxu0 %v2364_v8  ;;  %v12433_v5 = vld [vmem:[%s13088_s15 + $0x1018] sm:$0xff]   ;;  %v12436_v8 = vld [vmem:[%s13088_s15 + $0x1060] sm:$0xff]  }
 0x26a   : > { %8582 = vmatmul.mubr.bf16.vlgmr.msra.gmra.mrb[56].mxu1 %v2365_v10  ;;  %11197 = vmatprep.subr.bf16.mxu0 %v12391_v11  ;;  %v12438_v10 = vld [vmem:[%s13088_s15 + $0x10e0] sm:$0xff]  }
 0x26b   : > { %11218 = vmatpush3.bf16.msra.mxu1 %v12390_v9  ;;  %8661 = vmatprep.mubr.bf16.mxu1 %v2368_v13  ;;  %v12437_v9 = vld [vmem:[%s13088_s15 + $0x1020] sm:$0xff]   ;;  %v12441_v13 = vld [vmem:[%s13088_s15 + $0x1028] sm:$0xff]  }
 0x26c   : > { %11219 = vmatprep.subr.bf16.mxu1 %v12393_v14  ;;  %v12439_v11 = vld [vmem:[%s13088_s15 + $0x10a0] sm:$0xff]   ;;  %v12442_v14 = vld [vmem:[%s13088_s15 + $0x10e8] sm:$0xff]  }
 0x26d   : > { %11198 = vmatpush3.bf16.msra.mxu0 %v12392_v12  ;;  %v12440_v12 = vld [vmem:[%s13088_s15 + $0x1068] sm:$0xff]  }
 0x26e   : > { %11199 = vmatprep.subr.bf16.mxu0 %v12395_v16  ;;  %v12444_v16 = vld [vmem:[%s13088_s15 + $0x1070] sm:$0xff]  }
 0x26f   : > { %11220 = vmatpush3.bf16.msra.mxu1 %v12394_v15  ;;  %v12443_v15 = vld [vmem:[%s13088_s15 + $0x10a8] sm:$0xff]  }
 0x270   : > { %11221 = vmatprep.subr.bf16.mxu1 %v12397_v18  ;;  %v12445_v18 = vld [vmem:[%s13088_s15 + $0x1030] sm:$0xff]  }
 0x271   : > { %11200 = vmatpush3.bf16.msra.mxu0 %v12396_v17 }
 0x272   : > { %11201 = vmatprep.subr.bf16.mxu0 %v12399_v19  ;;  %v12446_v19 = vld [vmem:[%s13088_s15 + $0x10f0] sm:$0xff]  }
 0x273   : > { %11222 = vmatpush3.bf16.msra.mxu1 %v12398_v20 }
 0x274   : > { %11223 = vmatprep.subr.bf16.mxu1 %v12401_v22 }
 0x275   : > { %11202 = vmatpush3.bf16.msra.mxu0 %v12400_v21 }
 0x276   : > { %11203 = vmatprep.subr.bf16.mxu0 %v12403_v23  ;;  %v12447_v23 = vld [vmem:[%s13088_s15 + $0x10b0] sm:$0xff]  }
 0x277   : > { %11224 = vmatpush3.bf16.msra.mxu1 %v12402_v24 }
 0x278   : > { %11225 = vmatprep.subr.bf16.mxu1 %v12405_v26 }
 0x279   : > { %11204 = vmatpush3.bf16.msra.mxu0 %v12404_v25  ;;  %v12448_v25 = vld [vmem:[%s13088_s15 + $0x1078] sm:$0xff]  }
 0x27a   : > { %11205 = vmatprep.subr.bf16.mxu0 %v12407_v28 }
 0x27b   : > { %v10903_v33 = vpop.f32.mrb[32].mxu0  ;;  %11226 = vmatpush3.bf16.msra.mxu1 %v12406_v27 }
 0x27c   : > { %v10904_v36 = vpop.f32.mrb[33].mxu0  ;;  %11227 = vmatprep.subr.bf16.mxu1 %v12409_v30  ;;  %v12449_v30 = vld [vmem:[%s13088_s15 + $0x1038] sm:$0xff]  }
 0x27d   : > { %v10905_v39 = vadd.f32 %v10904_v36, %v10903_v33  ;;  %v10906_v40 = vpop.f32.mrb[34].mxu0  ;;  %v10925_v41 = vpop.f32.mrb[32].mxu1  ;;  %11206 = vmatpush3.bf16.msra.mxu0 %v12408_v29  ;;  %v12450_v33 = vld [vmem:[%s13088_s15 + $0x10f8] sm:$0xff]  }
 0x27e   : > { %v10907_v37 = vpop.f32.mrb[35].mxu0  ;;  %v10926_v45 = vpop.f32.mrb[33].mxu1  ;;  %11207 = vmatprep.subr.bf16.mxu0 %v12411_v32  ;;  %v12451_v40 = vld [vmem:[%s13088_s15 + $0x10b8] sm:$0xff]  }
 0x27f   : > { %v8064_v46 = vadd.f32 %v10905_v39, %v13707_v0  ;;  %v10927_v47 = vadd.f32 %v10926_v45, %v10925_v41  ;;  %11228 = vmatpush3.bf16.msra.mxu1 %v12410_v31  ;;  %v10928_v49 = vpop.f32.mrb[34].mxu1  ;;  %v12427_v0 = vld [vmem:[%s13088_s15 + $0x1088] sm:$0xff]   ;;  %v391_v31 = vld [vmem:[%s13110_s20 + $0x40] sm:$0xff] }
 0x280   : > { %11229 = vmatprep.subr.bf16.mxu1 %v12413_v38  ;;  %v10929_v51 = vpop.f32.mrb[35].mxu1  ;;  %v2369_v38 = vcombine.high %v391_v31, %v391_v31  ;;  %v12453_v45 = vld [vmem:[%s13088_s15 + $0x1100] sm:$0xff]  }
 0x281   : > { %v13747_v52 = vadd.f32 %v10927_v47, %v8064_v46  ;;  %11208 = vmatpush3.bf16.msra.mxu0 %v12412_v35  ;;  %v2376_v35 = vrot.slane %v391_v31, %v13151_v42  ;;  %v12454_v47 = vld [vmem:[%s13088_s15 + $0x11c0] sm:$0xff]  }
 0x282   : > { %11209 = vmatprep.subr.bf16.mxu0 %v12415_v44  ;;  %v12452_v44 = vld [vmem:[%s13088_s15 + $0x1140] sm:$0xff]   ;;  %v13792_v37 = vrot.slane %v2369_v38, %v13151_v42  ;;  %v12489_v38 = vld [vmem:[%s13088_s15 + $0x1248] sm:$0xff]  }
 0x283   : > { %11230 = vmatpush3.bf16.msra.mxu1 %v12414_v43  ;;  %v2384_v41 = vcombine.high %v2376_v35, %v2376_v35  ;;  %v2392_v43 = vrot.slane %v2376_v35, %v13151_v42  ;;  %v12455_v49 = vld [vmem:[%s13088_s15 + $0x1180] sm:$0xff]  }
 0x284   : > { %11231 = vmatprep.subr.bf16.mxu1 %v12417_v50  ;;  %v12485_v31 = vld [vmem:[%s13088_s15 + $0x1240] sm:$0xff]  }
 0x285   : > { %11210 = vmatpush3.bf16.msra.mxu0 %v12416_v48  ;;  %v2406_v46 = vrot.slane %v2384_v41, %v13151_v42  ;;  %v2385_v48 = vcombine.high %v13792_v37, %v13792_v37  ;;  %v2414_v51 = vcombine.high %v2392_v43, %v2392_v43  ;;  %v12488_v35 = vld [vmem:[%s13088_s15 + $0x1280] sm:$0xff]   ;;  %v12492_v41 = vld [vmem:[%s13088_s15 + $0x1288] sm:$0xff]  }
 0x286   : > { %11239 = vmatprep.subr.bf16.mxu0 %v12420_v55  ;;  %v12458_v55 = vld [vmem:[%s13088_s15 + $0x11c8] sm:$0xff]  }
 0x287   : > { %11232 = vmatpush3.bf16.msra.mxu1 %v12419_v53  ;;  %v2416_v50 = vcombine.high %v2406_v46, %v2406_v46  ;;  %v2413_v53 = vrot.slane %v2385_v48, %v13151_v42  ;;  %v12499_v48 = vld [vmem:[%s13088_s15 + $0x12d8] sm:$0xff]  }
 0x288   : > { %8622 = vmatmul.mubr.bf16.vlgmr.msra.gmra.mrb[60].mxu0 %v2350_v54  ;;  %11261 = vmatprep.subr.bf16.mxu1 %v12422_v58  ;;  %v12457_v54 = vld [vmem:[%s13088_s15 + $0x1108] sm:$0xff]  }
 0x289   : > { %11240 = vmatpush3.bf16.msra.mxu0 %v12421_v57  ;;  %8701 = vmatprep.mubr.bf16.mxu0 %v2406_v46  ;;  %v2417_v57 = vcombine.high %v2413_v53, %v2413_v53  ;;  %v12459_v58 = vld [vmem:[%s13088_s15 + $0x1188] sm:$0xff]   ;;  %v12497_v46 = vld [vmem:[%s13088_s15 + $0x1258] sm:$0xff]  }
 0x28a   : > { %8662 = vmatmul.mubr.bf16.vlgmr.msra.gmra.mrb[60].mxu1 %v2366_v60  ;;  %11241 = vmatprep.subr.bf16.mxu0 %v12424_v61  ;;  %v12461_v60 = vld [vmem:[%s13088_s15 + $0x1110] sm:$0xff]  }
 0x28b   : > { %11262 = vmatpush3.bf16.msra.mxu1 %v12423_v59  ;;  %8741 = vmatprep.mubr.bf16.mxu1 %v2416_v50  ;;  %v12460_v59 = vld [vmem:[%s13088_s15 + $0x1150] sm:$0xff]   ;;  %v12501_v50 = vld [vmem:[%s13088_s15 + $0x1260] sm:$0xff]  }
 0x28c   : > { %11263 = vmatprep.subr.bf16.mxu1 %v12426_v63  ;;  %v12462_v61 = vld [vmem:[%s13088_s15 + $0x11d0] sm:$0xff]   ;;  %v12464_v63 = vld [vmem:[%s13088_s15 + $0x1158] sm:$0xff]  }
 0x28d   : > { %11242 = vmatpush3.bf16.msra.mxu0 %v12425_v62  ;;  %v12463_v62 = vld [vmem:[%s13088_s15 + $0x1190] sm:$0xff]  }
 0x28e   : > { %11243 = vmatprep.subr.bf16.mxu0 %v12428_v1  ;;  %v12466_v1 = vld [vmem:[%s13088_s15 + $0x11d8] sm:$0xff]  }
 0x28f   : > { %11264 = vmatpush3.bf16.msra.mxu1 %v12427_v0  ;;  %v12465_v0 = vld [vmem:[%s13088_s15 + $0x1118] sm:$0xff]  }
 0x290   : > { %11265 = vmatprep.subr.bf16.mxu1 %v12430_v56  ;;  %v12468_v56 = vld [vmem:[%s13088_s15 + $0x1160] sm:$0xff]  }
 0x291   : > { %11244 = vmatpush3.bf16.msra.mxu0 %v12429_v2  ;;  %v12467_v2 = vld [vmem:[%s13088_s15 + $0x1198] sm:$0xff]  }
 0x292   : > { %11245 = vmatprep.subr.bf16.mxu0 %v12432_v4  ;;  %v12470_v4 = vld [vmem:[%s13088_s15 + $0x11e0] sm:$0xff]  }
 0x293   : > { %11266 = vmatpush3.bf16.msra.mxu1 %v12431_v3  ;;  %v12469_v3 = vld [vmem:[%s13088_s15 + $0x1120] sm:$0xff]  }
 0x294   : > { %11267 = vmatprep.subr.bf16.mxu1 %v12434_v6  ;;  %v12472_v6 = vld [vmem:[%s13088_s15 + $0x1168] sm:$0xff]  }
 0x295   : > { %11246 = vmatpush3.bf16.msra.mxu0 %v12433_v5  ;;  %v12471_v5 = vld [vmem:[%s13088_s15 + $0x11a0] sm:$0xff]  }
 0x296   : > { %11247 = vmatprep.subr.bf16.mxu0 %v12436_v8  ;;  %v12474_v8 = vld [vmem:[%s13088_s15 + $0x11e8] sm:$0xff]  }
 0x297   : > { %11268 = vmatpush3.bf16.msra.mxu1 %v12435_v7  ;;  %v12473_v7 = vld [vmem:[%s13088_s15 + $0x1128] sm:$0xff]  }
 0x298   : > { %11269 = vmatprep.subr.bf16.mxu1 %v12438_v10  ;;  %v12476_v10 = vld [vmem:[%s13088_s15 + $0x1170] sm:$0xff]  }
 0x299   : > { %11248 = vmatpush3.bf16.msra.mxu0 %v12437_v9  ;;  %v12475_v9 = vld [vmem:[%s13088_s15 + $0x11a8] sm:$0xff]  }
 0x29a   : > { %11249 = vmatprep.subr.bf16.mxu0 %v12440_v12  ;;  %v12477_v12 = vld [vmem:[%s13088_s15 + $0x1130] sm:$0xff]  }
 0x29b   : > { %v10947_v17 = vpop.f32.mrb[36].mxu0  ;;  %11270 = vmatpush3.bf16.msra.mxu1 %v12439_v11 }
 0x29c   : > { %v10948_v20 = vpop.f32.mrb[37].mxu0  ;;  %11271 = vmatprep.subr.bf16.mxu1 %v12442_v14  ;;  %v12478_v14 = vld [vmem:[%s13088_s15 + $0x11f0] sm:$0xff]  }
 0x29d   : > { %v10949_v21 = vadd.f32 %v10948_v20, %v10947_v17  ;;  %v10950_v22 = vpop.f32.mrb[38].mxu0  ;;  %v10969_v24 = vpop.f32.mrb[36].mxu1  ;;  %11250 = vmatpush3.bf16.msra.mxu0 %v12441_v13  ;;  %v12480_v20 = vld [vmem:[%s13088_s15 + $0x1178] sm:$0xff]  }
 0x29e   : > { %v10951_v26 = vpop.f32.mrb[39].mxu0  ;;  %v10970_v27 = vpop.f32.mrb[37].mxu1  ;;  %11251 = vmatprep.subr.bf16.mxu0 %v12444_v16 }
 0x29f   : > { %v8144_v28 = vadd.f32 %v10949_v21, %v13747_v52  ;;  %v10971_v29 = vadd.f32 %v10970_v27, %v10969_v24  ;;  %11272 = vmatpush3.bf16.msra.mxu1 %v12443_v15  ;;  %v10972_v32 = vpop.f32.mrb[38].mxu1  ;;  %v12456_v52 = vld [vmem:[%s13088_s15 + $0x1148] sm:$0xff]   ;;  %v12482_v26 = vld [vmem:[%s13088_s15 + $0x11f8] sm:$0xff]  }
 0x2a0   : > { %11273 = vmatprep.subr.bf16.mxu1 %v12446_v19  ;;  %v10973_v36 = vpop.f32.mrb[39].mxu1  ;;  %v12486_v32 = vld [vmem:[%s13088_s15 + $0x1200] sm:$0xff]  }
 0x2a1   : > { %v13786_v39 = vadd.f32 %v10971_v29, %v8144_v28  ;;  %11252 = vmatpush3.bf16.msra.mxu0 %v12445_v18  ;;  %v12479_v18 = vld [vmem:[%s13088_s15 + $0x11b0] sm:$0xff]   ;;  %v12484_v29 = vld [vmem:[%s13088_s15 + $0x11b8] sm:$0xff]  }
 0x2a2   : > { %11253 = vmatprep.subr.bf16.mxu0 %v12448_v25 }
 0x2a3   : > { %11274 = vmatpush3.bf16.msra.mxu1 %v12447_v23  ;;  %v12481_v23 = vld [vmem:[%s13088_s15 + $0x1138] sm:$0xff]  }
 0x2a4   : > { %11275 = vmatprep.subr.bf16.mxu1 %v12450_v33  ;;  %v12487_v33 = vld [vmem:[%s13088_s15 + $0x12c0] sm:$0xff]  }
 0x2a5   : > { %11254 = vmatpush3.bf16.msra.mxu0 %v12449_v30  ;;  %v2399_v30 = vrot.slane %v13792_v37, %v13151_v42  ;;  %v12495_v37 = vld [vmem:[%s13088_s15 + $0x12d0] sm:$0xff]  }
 0x2a6   : > { %11283 = vmatprep.subr.bf16.mxu0 %v12452_v44  ;;  %v12494_v44 = vld [vmem:[%s13088_s15 + $0x1210] sm:$0xff]  }
 0x2a7   : > { %11276 = vmatpush3.bf16.msra.mxu1 %v12451_v40  ;;  %v2415_v36 = vcombine.high %v2399_v30, %v2399_v30  ;;  %v12491_v40 = vld [vmem:[%s13088_s15 + $0x12c8] sm:$0xff]  }
 0x2a8   : > { %8702 = vmatmul.mubr.bf16.vlgmr.msra.gmra.mrb[64].mxu0 %v2392_v43  ;;  %11305 = vmatprep.subr.bf16.mxu1 %v12454_v47  ;;  %v12493_v43 = vld [vmem:[%s13088_s15 + $0x1250] sm:$0xff]   ;;  %v12498_v47 = vld [vmem:[%s13088_s15 + $0x1218] sm:$0xff]  }
 0x2a9   : > { %11284 = vmatpush3.bf16.msra.mxu0 %v12453_v45  ;;  %8781 = vmatprep.mubr.bf16.mxu0 %v2413_v53  ;;  %v12496_v45 = vld [vmem:[%s13088_s15 + $0x1290] sm:$0xff]   ;;  %v12504_v53 = vld [vmem:[%s13088_s15 + $0x12a0] sm:$0xff]  }
 0x2aa   : > { %8742 = vmatmul.mubr.bf16.vlgmr.msra.gmra.mrb[64].mxu1 %v2414_v51  ;;  %11285 = vmatprep.subr.bf16.mxu0 %v12456_v52  ;;  %v12502_v51 = vld [vmem:[%s13088_s15 + $0x1220] sm:$0xff]  }
 0x2ab   : > { %11306 = vmatpush3.bf16.msra.mxu1 %v12455_v49  ;;  %8821 = vmatprep.mubr.bf16.mxu1 %v2417_v57  ;;  %v12500_v49 = vld [vmem:[%s13088_s15 + $0x1298] sm:$0xff]   ;;  %v12503_v52 = vld [vmem:[%s13088_s15 + $0x12e0] sm:$0xff]   ;;  %v12507_v57 = vld [vmem:[%s13088_s15 + $0x12e8] sm:$0xff]  }
 0x2ac   : > { %11307 = vmatprep.subr.bf16.mxu1 %v12458_v55  ;;  %v12506_v55 = vld [vmem:[%s13088_s15 + $0x1228] sm:$0xff]  }
 0x2ad   : > { %11286 = vmatpush3.bf16.msra.mxu0 %v12457_v54  ;;  %v12505_v54 = vld [vmem:[%s13088_s15 + $0x1268] sm:$0xff]  }
 0x2ae   : > { %11287 = vmatprep.subr.bf16.mxu0 %v12460_v59  ;;  %v12509_v59 = vld [vmem:[%s13088_s15 + $0x1270] sm:$0xff]  }
 0x2af   : > { %11308 = vmatpush3.bf16.msra.mxu1 %v12459_v58  ;;  %v12508_v58 = vld [vmem:[%s13088_s15 + $0x12a8] sm:$0xff]  }
 0x2b0   : > { %11309 = vmatprep.subr.bf16.mxu1 %v12462_v61  ;;  %v12510_v61 = vld [vmem:[%s13088_s15 + $0x1230] sm:$0xff]  }
 0x2b1   : > { %11288 = vmatpush3.bf16.msra.mxu0 %v12461_v60 }
 0x2b2   : > { %11289 = vmatprep.subr.bf16.mxu0 %v12464_v63  ;;  %v12511_v63 = vld [vmem:[%s13088_s15 + $0x12f0] sm:$0xff]  }
 0x2b3   : > { %11310 = vmatpush3.bf16.msra.mxu1 %v12463_v62 }
 0x2b4   : > { %11311 = vmatprep.subr.bf16.mxu1 %v12466_v1 }
 0x2b5   : > { %11290 = vmatpush3.bf16.msra.mxu0 %v12465_v0 }
 0x2b6   : > { %11291 = vmatprep.subr.bf16.mxu0 %v12468_v56  ;;  %v12512_v56 = vld [vmem:[%s13088_s15 + $0x12b0] sm:$0xff]  }
 0x2b7   : > { %11312 = vmatpush3.bf16.msra.mxu1 %v12467_v2 }
 0x2b8   : > { %11313 = vmatprep.subr.bf16.mxu1 %v12470_v4 }
 0x2b9   : > { %11292 = vmatpush3.bf16.msra.mxu0 %v12469_v3  ;;  %v12513_v3 = vld [vmem:[%s13088_s15 + $0x1278] sm:$0xff]  }
 0x2ba   : > { %11293 = vmatprep.subr.bf16.mxu0 %v12472_v6 }
 0x2bb   : > { %v10991_v11 = vpop.f32.mrb[40].mxu0  ;;  %11314 = vmatpush3.bf16.msra.mxu1 %v12471_v5 }
 0x2bc   : > { %v10992_v13 = vpop.f32.mrb[41].mxu0  ;;  %11315 = vmatprep.subr.bf16.mxu1 %v12474_v8  ;;  %v12514_v8 = vld [vmem:[%s13088_s15 + $0x1238] sm:$0xff]  }
 0x2bd   : > { %v10993_v15 = vadd.f32 %v10992_v13, %v10991_v11  ;;  %v10994_v16 = vpop.f32.mrb[42].mxu0  ;;  %v11013_v17 = vpop.f32.mrb[40].mxu1  ;;  %11294 = vmatpush3.bf16.msra.mxu0 %v12473_v7  ;;  %v392_v11 = vld [vmem:[%s13110_s20 + $0x48] sm:$0xff] }
 0x2be   : > { %v10995_v19 = vpop.f32.mrb[43].mxu0  ;;  %v11014_v21 = vpop.f32.mrb[41].mxu1  ;;  %11295 = vmatprep.subr.bf16.mxu0 %v12476_v10  ;;  %v2418_v16 = vcombine.high %v392_v11, %v392_v11 }
 0x2bf   : > { %v8224_v22 = vadd.f32 %v10993_v15, %v13786_v39  ;;  %v11015_v24 = vadd.f32 %v11014_v21, %v11013_v17  ;;  %11316 = vmatpush3.bf16.msra.mxu1 %v12475_v9  ;;  %v11016_v25 = vpop.f32.mrb[42].mxu1  ;;  %v12490_v39 = vld [vmem:[%s13088_s15 + $0x1208] sm:$0xff]   ;;  %v12515_v9 = vld [vmem:[%s13088_s15 + $0x12f8] sm:$0xff]   ;;  %v12517_v17 = vld [vmem:[%s13088_s15 + $0x1340] sm:$0xff]  }
 0x2c0   : > { %11317 = vmatprep.subr.bf16.mxu1 %v12478_v14  ;;  %v11017_v27 = vpop.f32.mrb[43].mxu1  ;;  %v2425_v14 = vrot.slane %v392_v11, %v13151_v42  ;;  %v12516_v15 = vld [vmem:[%s13088_s15 + $0x12b8] sm:$0xff]   ;;  %v12518_v19 = vld [vmem:[%s13088_s15 + $0x1300] sm:$0xff]   ;;  %v13875_v21 = vrot.slane %v2418_v16, %v13151_v42  ;;  %v12556_v16 = vld [vmem:[%s13088_s15 + $0x14c8] sm:$0xff]  }
 0x2c1   : > { %v13829_v28 = vadd.f32 %v11015_v24, %v8224_v22  ;;  %11296 = vmatpush3.bf16.msra.mxu0 %v12477_v12  ;;  %v12519_v22 = vld [vmem:[%s13088_s15 + $0x13c0] sm:$0xff]   ;;  %v12521_v27 = vld [vmem:[%s13088_s15 + $0x1348] sm:$0xff]  }
 0x2c2   : > { %11297 = vmatprep.subr.bf16.mxu0 %v12480_v20  ;;  %v2441_v20 = vrot.slane %v2425_v14, %v13151_v42  ;;  %v2434_v25 = vcombine.high %v13875_v21, %v13875_v21  ;;  %v12552_v11 = vld [vmem:[%s13088_s15 + $0x14c0] sm:$0xff]  }
 0x2c3   : > { %11318 = vmatpush3.bf16.msra.mxu1 %v12479_v18  ;;  %v2433_v18 = vcombine.high %v2425_v14, %v2425_v14  ;;  %v12554_v14 = vld [vmem:[%s13088_s15 + $0x1448] sm:$0xff]  }
 0x2c4   : > { %11319 = vmatprep.subr.bf16.mxu1 %v12482_v26  ;;  %v2463_v26 = vcombine.high %v2441_v20, %v2441_v20 }
 0x2c5   : > { %11298 = vmatpush3.bf16.msra.mxu0 %v12481_v23  ;;  %v2455_v24 = vrot.slane %v2433_v18, %v13151_v42  ;;  %v12520_v23 = vld [vmem:[%s13088_s15 + $0x1380] sm:$0xff]   ;;  %v12558_v18 = vld [vmem:[%s13088_s15 + $0x1450] sm:$0xff]  }
 0x2c6   : > { %11327 = vmatprep.subr.bf16.mxu0 %v12485_v31  ;;  %v12523_v31 = vld [vmem:[%s13088_s15 + $0x13c8] sm:$0xff]  }
 0x2c7   : > { %11320 = vmatpush3.bf16.msra.mxu1 %v12484_v29  ;;  %v12522_v29 = vld [vmem:[%s13088_s15 + $0x1308] sm:$0xff]  }
 0x2c8   : > { %8782 = vmatmul.mubr.bf16.vlgmr.msra.gmra.mrb[68].mxu0 %v2399_v30  ;;  %11349 = vmatprep.subr.bf16.mxu1 %v12487_v33  ;;  %v2462_v30 = vrot.slane %v2434_v25, %v13151_v42  ;;  %v12565_v25 = vld [vmem:[%s13088_s15 + $0x1498] sm:$0xff]  }
 0x2c9   : > { %11328 = vmatpush3.bf16.msra.mxu0 %v12486_v32  ;;  %8861 = vmatprep.mubr.bf16.mxu0 %v2455_v24  ;;  %v12524_v32 = vld [vmem:[%s13088_s15 + $0x1388] sm:$0xff]  }
 0x2ca   : > { %8822 = vmatmul.mubr.bf16.vlgmr.msra.gmra.mrb[68].mxu1 %v2415_v36  ;;  %11329 = vmatprep.subr.bf16.mxu0 %v12489_v38  ;;  %v2466_v33 = vcombine.high %v2462_v30, %v2462_v30  ;;  %v12526_v36 = vld [vmem:[%s13088_s15 + $0x1310] sm:$0xff]  }
 0x2cb   : > { %11350 = vmatpush3.bf16.msra.mxu1 %v12488_v35  ;;  %v12525_v35 = vld [vmem:[%s13088_s15 + $0x1350] sm:$0xff]  }
 0x2cc   : > { %11351 = vmatprep.subr.bf16.mxu1 %v12491_v40  ;;  %v12527_v38 = vld [vmem:[%s13088_s15 + $0x13d0] sm:$0xff]   ;;  %v12529_v40 = vld [vmem:[%s13088_s15 + $0x1358] sm:$0xff]  }
 0x2cd   : > { %11330 = vmatpush3.bf16.msra.mxu0 %v12490_v39  ;;  %v12528_v39 = vld [vmem:[%s13088_s15 + $0x1390] sm:$0xff]  }
 0x2ce   : > { %11331 = vmatprep.subr.bf16.mxu0 %v12493_v43  ;;  %v12531_v43 = vld [vmem:[%s13088_s15 + $0x13d8] sm:$0xff]  }
 0x2cf   : > { %11352 = vmatpush3.bf16.msra.mxu1 %v12492_v41  ;;  %v12530_v41 = vld [vmem:[%s13088_s15 + $0x1318] sm:$0xff]  }
 0x2d0   : > { %11353 = vmatprep.subr.bf16.mxu1 %v12495_v37  ;;  %v12533_v37 = vld [vmem:[%s13088_s15 + $0x1360] sm:$0xff]  }
 0x2d1   : > { %11332 = vmatpush3.bf16.msra.mxu0 %v12494_v44  ;;  %v12532_v44 = vld [vmem:[%s13088_s15 + $0x1398] sm:$0xff]  }
 0x2d2   : > { %11333 = vmatprep.subr.bf16.mxu0 %v12497_v46  ;;  %v12535_v46 = vld [vmem:[%s13088_s15 + $0x13e0] sm:$0xff]  }
 0x2d3   : > { %11354 = vmatpush3.bf16.msra.mxu1 %v12496_v45  ;;  %v12534_v45 = vld [vmem:[%s13088_s15 + $0x1320] sm:$0xff]  }
 0x2d4   : > { %11355 = vmatprep.subr.bf16.mxu1 %v12499_v48  ;;  %v12537_v48 = vld [vmem:[%s13088_s15 + $0x1368] sm:$0xff]  }
 0x2d5   : > { %11334 = vmatpush3.bf16.msra.mxu0 %v12498_v47  ;;  %v12536_v47 = vld [vmem:[%s13088_s15 + $0x13a0] sm:$0xff]  }
 0x2d6   : > { %11335 = vmatprep.subr.bf16.mxu0 %v12501_v50  ;;  %v12539_v50 = vld [vmem:[%s13088_s15 + $0x13e8] sm:$0xff]  }
 0x2d7   : > { %11356 = vmatpush3.bf16.msra.mxu1 %v12500_v49  ;;  %v12538_v49 = vld [vmem:[%s13088_s15 + $0x1328] sm:$0xff]  }
 0x2d8   : > { %11357 = vmatprep.subr.bf16.mxu1 %v12503_v52  ;;  %v12541_v52 = vld [vmem:[%s13088_s15 + $0x1370] sm:$0xff]  }
 0x2d9   : > { %11336 = vmatpush3.bf16.msra.mxu0 %v12502_v51  ;;  %v12540_v51 = vld [vmem:[%s13088_s15 + $0x13a8] sm:$0xff]  }
 0x2da   : > { %11337 = vmatprep.subr.bf16.mxu0 %v12505_v54  ;;  %v12542_v54 = vld [vmem:[%s13088_s15 + $0x1330] sm:$0xff]  }
 0x2db   : > { %v11035_v60 = vpop.f32.mrb[44].mxu0  ;;  %11358 = vmatpush3.bf16.msra.mxu1 %v12504_v53 }
 0x2dc   : > { %v11036_v62 = vpop.f32.mrb[45].mxu0  ;;  %11359 = vmatprep.subr.bf16.mxu1 %v12507_v57  ;;  %v12543_v57 = vld [vmem:[%s13088_s15 + $0x13f0] sm:$0xff]  }
 0x2dd   : > { %v11037_v0 = vadd.f32 %v11036_v62, %v11035_v60  ;;  %v11038_v1 = vpop.f32.mrb[46].mxu0  ;;  %v11057_v2 = vpop.f32.mrb[44].mxu1  ;;  %11338 = vmatpush3.bf16.msra.mxu0 %v12506_v55  ;;  %v12545_v62 = vld [vmem:[%s13088_s15 + $0x1378] sm:$0xff]  }
 0x2de   : > { %v11039_v4 = vpop.f32.mrb[47].mxu0  ;;  %v11058_v5 = vpop.f32.mrb[45].mxu1  ;;  %11339 = vmatprep.subr.bf16.mxu0 %v12509_v59 }
 0x2df   : > { %v8304_v6 = vadd.f32 %v11037_v0, %v13829_v28  ;;  %v11059_v7 = vadd.f32 %v11058_v5, %v11057_v2  ;;  %11360 = vmatpush3.bf16.msra.mxu1 %v12508_v58  ;;  %v11060_v10 = vpop.f32.mrb[46].mxu1  ;;  %v2465_v28 = vcombine.high %v2455_v24, %v2455_v24  ;;  %v12547_v4 = vld [vmem:[%s13088_s15 + $0x13f8] sm:$0xff]  }
 0x2e0   : > { %11361 = vmatprep.subr.bf16.mxu1 %v12511_v63  ;;  %v11061_v12 = vpop.f32.mrb[47].mxu1  ;;  %v12551_v10 = vld [vmem:[%s13088_s15 + $0x1400] sm:$0xff]   ;;  %v12563_v24 = vld [vmem:[%s13088_s15 + $0x1418] sm:$0xff]  }
 0x2e1   : > { %v13867_v13 = vadd.f32 %v11059_v7, %v8304_v6  ;;  %11340 = vmatpush3.bf16.msra.mxu0 %v12510_v61  ;;  %8901 = vmatprep.mubr.bf16.mxu1 %v2465_v28  ;;  %v12544_v61 = vld [vmem:[%s13088_s15 + $0x13b0] sm:$0xff]   ;;  %v12549_v7 = vld [vmem:[%s13088_s15 + $0x13b8] sm:$0xff]   ;;  %v12553_v12 = vld [vmem:[%s13088_s15 + $0x1480] sm:$0xff]  }
 0x2e2   : > { %11341 = vmatprep.subr.bf16.mxu0 %v12513_v3  ;;  %v12568_v28 = vld [vmem:[%s13088_s15 + $0x14e0] sm:$0xff]  }
 0x2e3   : > { %11362 = vmatpush3.bf16.msra.mxu1 %v12512_v56  ;;  %v12546_v56 = vld [vmem:[%s13088_s15 + $0x1338] sm:$0xff]  }
 0x2e4   : > { %11363 = vmatprep.subr.bf16.mxu1 %v12515_v9  ;;  %v12550_v9 = vld [vmem:[%s13088_s15 + $0x1440] sm:$0xff]  }
 0x2e5   : > { %11342 = vmatpush3.bf16.msra.mxu0 %v12514_v8  ;;  %v2448_v8 = vrot.slane %v13875_v21, %v13151_v42  ;;  %v12561_v21 = vld [vmem:[%s13088_s15 + $0x1490] sm:$0xff]  }
 0x2e6   : > { %11371 = vmatprep.subr.bf16.mxu0 %v12517_v17  ;;  %v12557_v17 = vld [vmem:[%s13088_s15 + $0x1488] sm:$0xff]  }
 0x2e7   : > { %11364 = vmatpush3.bf16.msra.mxu1 %v12516_v15  ;;  %v12555_v15 = vld [vmem:[%s13088_s15 + $0x1408] sm:$0xff]  }
 0x2e8   : > { %8862 = vmatmul.mubr.bf16.vlgmr.msra.gmra.mrb[72].mxu0 %v2441_v20  ;;  %11393 = vmatprep.subr.bf16.mxu1 %v12519_v22  ;;  %v12559_v20 = vld [vmem:[%s13088_s15 + $0x1410] sm:$0xff]   ;;  %v12562_v22 = vld [vmem:[%s13088_s15 + $0x1458] sm:$0xff]  }
 0x2e9   : > { %11372 = vmatpush3.bf16.msra.mxu0 %v12518_v19  ;;  %8941 = vmatprep.mubr.bf16.mxu0 %v2462_v30  ;;  %v12560_v19 = vld [vmem:[%s13088_s15 + $0x14d0] sm:$0xff]   ;;  %v12570_v30 = vld [vmem:[%s13088_s15 + $0x1468] sm:$0xff]  }
 0x2ea   : > { %8902 = vmatmul.mubr.bf16.vlgmr.msra.gmra.mrb[72].mxu1 %v2463_v26  ;;  %11373 = vmatprep.subr.bf16.mxu0 %v12521_v27  ;;  %v12566_v26 = vld [vmem:[%s13088_s15 + $0x1460] sm:$0xff]  }
 0x2eb   : > { %11394 = vmatpush3.bf16.msra.mxu1 %v12520_v23  ;;  %8981 = vmatprep.mubr.bf16.mxu1 %v2466_v33  ;;  %v12564_v23 = vld [vmem:[%s13088_s15 + $0x14d8] sm:$0xff]   ;;  %v12567_v27 = vld [vmem:[%s13088_s15 + $0x1420] sm:$0xff]   ;;  %v12573_v33 = vld [vmem:[%s13088_s15 + $0x14a8] sm:$0xff]  }
 0x2ec   : > { %11395 = vmatprep.subr.bf16.mxu1 %v12523_v31  ;;  %v12571_v31 = vld [vmem:[%s13088_s15 + $0x1428] sm:$0xff]  }
 0x2ed   : > { %11374 = vmatpush3.bf16.msra.mxu0 %v12522_v29  ;;  %v12569_v29 = vld [vmem:[%s13088_s15 + $0x14a0] sm:$0xff]  }
 0x2ee   : > { %11375 = vmatprep.subr.bf16.mxu0 %v12525_v35  ;;  %v12574_v35 = vld [vmem:[%s13088_s15 + $0x1470] sm:$0xff]  }
 0x2ef   : > { %11396 = vmatpush3.bf16.msra.mxu1 %v12524_v32  ;;  %v12572_v32 = vld [vmem:[%s13088_s15 + $0x14e8] sm:$0xff]  }
 0x2f0   : > { %11397 = vmatprep.subr.bf16.mxu1 %v12527_v38  ;;  %v12575_v38 = vld [vmem:[%s13088_s15 + $0x1430] sm:$0xff]  }
 0x2f1   : > { %11376 = vmatpush3.bf16.msra.mxu0 %v12526_v36 }
 0x2f2   : > { %11377 = vmatprep.subr.bf16.mxu0 %v12529_v40  ;;  %v12576_v40 = vld [vmem:[%s13088_s15 + $0x14f0] sm:$0xff]  }
 0x2f3   : > { %11398 = vmatpush3.bf16.msra.mxu1 %v12528_v39 }
 0x2f4   : > { %11399 = vmatprep.subr.bf16.mxu1 %v12531_v43 }
 0x2f5   : > { %11378 = vmatpush3.bf16.msra.mxu0 %v12530_v41 }
 0x2f6   : > { %11379 = vmatprep.subr.bf16.mxu0 %v12533_v37  ;;  %v12577_v37 = vld [vmem:[%s13088_s15 + $0x14b0] sm:$0xff]  }
 0x2f7   : > { %11400 = vmatpush3.bf16.msra.mxu1 %v12532_v44 }
 0x2f8   : > { %11401 = vmatprep.subr.bf16.mxu1 %v12535_v46 }
 0x2f9   : > { %11380 = vmatpush3.bf16.msra.mxu0 %v12534_v45  ;;  %v12578_v45 = vld [vmem:[%s13088_s15 + $0x1478] sm:$0xff]  }
 0x2fa   : > { %11381 = vmatprep.subr.bf16.mxu0 %v12537_v48 }
 0x2fb   : > { %v11079_v53 = vpop.f32.mrb[48].mxu0  ;;  %11402 = vmatpush3.bf16.msra.mxu1 %v12536_v47 }
 0x2fc   : > { %v11080_v55 = vpop.f32.mrb[49].mxu0  ;;  %11403 = vmatprep.subr.bf16.mxu1 %v12539_v50  ;;  %v12579_v50 = vld [vmem:[%s13088_s15 + $0x1438] sm:$0xff]  }
 0x2fd   : > { %v11081_v58 = vadd.f32 %v11080_v55, %v11079_v53  ;;  %v11082_v59 = vpop.f32.mrb[50].mxu0  ;;  %v11101_v60 = vpop.f32.mrb[48].mxu1  ;;  %11382 = vmatpush3.bf16.msra.mxu0 %v12538_v49  ;;  %v393_v55 = vld [vmem:[%s13110_s20 + $0x50] sm:$0xff] }
 0x2fe   : > { %v11083_v63 = vpop.f32.mrb[51].mxu0  ;;  %v11102_v0 = vpop.f32.mrb[49].mxu1  ;;  %11383 = vmatprep.subr.bf16.mxu0 %v12541_v52  ;;  %v12580_v52 = vld [vmem:[%s13088_s15 + $0x14f8] sm:$0xff]   ;;  %v2467_v59 = vcombine.high %v393_v55, %v393_v55 }
 0x2ff   : > { %v8384_v1 = vadd.f32 %v11081_v58, %v13867_v13  ;;  %v11103_v2 = vadd.f32 %v11102_v0, %v11101_v60  ;;  %11404 = vmatpush3.bf16.msra.mxu1 %v12540_v51  ;;  %v11104_v3 = vpop.f32.mrb[50].mxu1  ;;  %v2464_v13 = vcombine.high %v2448_v8, %v2448_v8  ;;  %v12581_v58 = vld [vmem:[%s13088_s15 + $0x14b8] sm:$0xff]   ;;  %v12582_v60 = vld [vmem:[%s13088_s15 + $0x1540] sm:$0xff]  }
 0x300   : > { %11405 = vmatprep.subr.bf16.mxu1 %v12543_v57  ;;  %v11105_v5 = vpop.f32.mrb[51].mxu1  ;;  %v2474_v57 = vrot.slane %v393_v55, %v13151_v42  ;;  %v13956_v63 = vrot.slane %v2467_v59, %v13151_v42  ;;  %v12584_v0 = vld [vmem:[%s13088_s15 + $0x15c0] sm:$0xff]   ;;  %v12619_v55 = vld [vmem:[%s13088_s15 + $0x1648] sm:$0xff]  }
 0x301   : > { %v13911_v6 = vadd.f32 %v11103_v2, %v8384_v1  ;;  %11384 = vmatpush3.bf16.msra.mxu0 %v12542_v54  ;;  %v12583_v2 = vld [vmem:[%s13088_s15 + $0x1500] sm:$0xff]   ;;  %v12620_v59 = vld [vmem:[%s13088_s15 + $0x1608] sm:$0xff]  }
 0x302   : > { %11385 = vmatprep.subr.bf16.mxu0 %v12545_v62  ;;  %v2490_v62 = vrot.slane %v2474_v57, %v13151_v42 }
 0x303   : > { %11406 = vmatpush3.bf16.msra.mxu1 %v12544_v61  ;;  %v2482_v61 = vcombine.high %v2474_v57, %v2474_v57  ;;  %v12618_v57 = vld [vmem:[%s13088_s15 + $0x1680] sm:$0xff]  }
 0x304   : > { %11407 = vmatprep.subr.bf16.mxu1 %v12547_v4  ;;  %v2512_v3 = vcombine.high %v2490_v62, %v2490_v62  ;;  %v12586_v4 = vld [vmem:[%s13088_s15 + $0x1548] sm:$0xff]  }
 0x305   : > { %11386 = vmatpush3.bf16.msra.mxu0 %v12546_v56  ;;  %v2504_v1 = vrot.slane %v2482_v61, %v13151_v42  ;;  %v2483_v56 = vcombine.high %v13956_v63, %v13956_v63  ;;  %v12622_v61 = vld [vmem:[%s13088_s15 + $0x1688] sm:$0xff]  }
 0x306   : > { %11415 = vmatprep.subr.bf16.mxu0 %v12550_v9  ;;  %v12587_v9 = vld [vmem:[%s13088_s15 + $0x1508] sm:$0xff]  }
 0x307   : > { %11408 = vmatpush3.bf16.msra.mxu1 %v12549_v7  ;;  %v2514_v5 = vcombine.high %v2504_v1, %v2504_v1  ;;  %v2511_v7 = vrot.slane %v2483_v56, %v13151_v42  ;;  %v12628_v56 = vld [vmem:[%s13088_s15 + $0x1618] sm:$0xff]  }
 0x308   : > { %8942 = vmatmul.mubr.bf16.vlgmr.msra.gmra.mrb[76].mxu0 %v2448_v8  ;;  %11437 = vmatprep.subr.bf16.mxu1 %v12552_v11  ;;  %v12588_v8 = vld [vmem:[%s13088_s15 + $0x15c8] sm:$0xff]   ;;  %v12590_v11 = vld [vmem:[%s13088_s15 + $0x1550] sm:$0xff]  }
 0x309   : > { %11416 = vmatpush3.bf16.msra.mxu0 %v12551_v10  ;;  %9021 = vmatprep.mubr.bf16.mxu0 %v2504_v1  ;;  %v2515_v10 = vcombine.high %v2511_v7, %v2511_v7  ;;  %v12626_v1 = vld [vmem:[%s13088_s15 + $0x1690] sm:$0xff]  }
 0x30a   : > { %8982 = vmatmul.mubr.bf16.vlgmr.msra.gmra.mrb[76].mxu1 %v2464_v13  ;;  %11417 = vmatprep.subr.bf16.mxu0 %v12554_v14  ;;  %v12592_v13 = vld [vmem:[%s13088_s15 + $0x15d0] sm:$0xff]  }
 0x30b   : > { %11438 = vmatpush3.bf16.msra.mxu1 %v12553_v12  ;;  %9061 = vmatprep.mubr.bf16.mxu1 %v2514_v5  ;;  %v12589_v12 = vld [vmem:[%s13088_s15 + $0x1588] sm:$0xff]   ;;  %v12591_v14 = vld [vmem:[%s13088_s15 + $0x1510] sm:$0xff]   ;;  %v12633_v5 = vld [vmem:[%s13088_s15 + $0x16e0] sm:$0xff]  }
 0x30c   : > { %11439 = vmatprep.subr.bf16.mxu1 %v12556_v16  ;;  %v12593_v16 = vld [vmem:[%s13088_s15 + $0x1590] sm:$0xff]  }
 0x30d   : > { %11418 = vmatpush3.bf16.msra.mxu0 %v12555_v15  ;;  %v12594_v15 = vld [vmem:[%s13088_s15 + $0x1558] sm:$0xff]  }
 0x30e   : > { %11419 = vmatprep.subr.bf16.mxu0 %v12558_v18  ;;  %v12595_v18 = vld [vmem:[%s13088_s15 + $0x1518] sm:$0xff]  }
 0x30f   : > { %11440 = vmatpush3.bf16.msra.mxu1 %v12557_v17  ;;  %v12596_v17 = vld [vmem:[%s13088_s15 + $0x15d8] sm:$0xff]  }
 0x310   : > { %11441 = vmatprep.subr.bf16.mxu1 %v12560_v19  ;;  %v12597_v19 = vld [vmem:[%s13088_s15 + $0x1598] sm:$0xff]  }
 0x311   : > { %11420 = vmatpush3.bf16.msra.mxu0 %v12559_v20  ;;  %v12598_v20 = vld [vmem:[%s13088_s15 + $0x1560] sm:$0xff]  }
 0x312   : > { %11421 = vmatprep.subr.bf16.mxu0 %v12562_v22  ;;  %v12599_v22 = vld [vmem:[%s13088_s15 + $0x1520] sm:$0xff]  }
 0x313   : > { %11442 = vmatpush3.bf16.msra.mxu1 %v12561_v21  ;;  %v12600_v21 = vld [vmem:[%s13088_s15 + $0x15e0] sm:$0xff]  }
 0x314   : > { %11443 = vmatprep.subr.bf16.mxu1 %v12564_v23  ;;  %v12601_v23 = vld [vmem:[%s13088_s15 + $0x15a0] sm:$0xff]  }
 0x315   : > { %11422 = vmatpush3.bf16.msra.mxu0 %v12563_v24  ;;  %v12602_v24 = vld [vmem:[%s13088_s15 + $0x1568] sm:$0xff]  }
 0x316   : > { %11423 = vmatprep.subr.bf16.mxu0 %v12566_v26  ;;  %v12603_v26 = vld [vmem:[%s13088_s15 + $0x1528] sm:$0xff]  }
 0x317   : > { %11444 = vmatpush3.bf16.msra.mxu1 %v12565_v25  ;;  %v12604_v25 = vld [vmem:[%s13088_s15 + $0x15e8] sm:$0xff]  }
 0x318   : > { %11445 = vmatprep.subr.bf16.mxu1 %v12568_v28  ;;  %v12606_v28 = vld [vmem:[%s13088_s15 + $0x1570] sm:$0xff]  }
 0x319   : > { %11424 = vmatpush3.bf16.msra.mxu0 %v12567_v27 }
 0x31a   : > { %11425 = vmatprep.subr.bf16.mxu0 %v12570_v30  ;;  %v12605_v30 = vld [vmem:[%s13088_s15 + $0x15a8] sm:$0xff]  }
 0x31b   : > { %v11123_v36 = vpop.f32.mrb[52].mxu0  ;;  %11446 = vmatpush3.bf16.msra.mxu1 %v12569_v29 }
 0x31c   : > { %v11124_v39 = vpop.f32.mrb[53].mxu0  ;;  %11447 = vmatprep.subr.bf16.mxu1 %v12572_v32 }
 0x31d   : > { %v11125_v41 = vadd.f32 %v11124_v39, %v11123_v36  ;;  %v11126_v43 = vpop.f32.mrb[54].mxu0  ;;  %v11145_v44 = vpop.f32.mrb[52].mxu1  ;;  %11426 = vmatpush3.bf16.msra.mxu0 %v12571_v31  ;;  %v12608_v36 = vld [vmem:[%s13088_s15 + $0x15f0] sm:$0xff]  }
 0x31e   : > { %v11127_v46 = vpop.f32.mrb[55].mxu0  ;;  %v11146_v47 = vpop.f32.mrb[53].mxu1  ;;  %11427 = vmatprep.subr.bf16.mxu0 %v12574_v35  ;;  %v12607_v35 = vld [vmem:[%s13088_s15 + $0x1530] sm:$0xff]   ;;  %v12610_v43 = vld [vmem:[%s13088_s15 + $0x1578] sm:$0xff]  }
 0x31f   : > { %v8464_v48 = vadd.f32 %v11125_v41, %v13911_v6  ;;  %v11147_v49 = vadd.f32 %v11146_v47, %v11145_v44  ;;  %11448 = vmatpush3.bf16.msra.mxu1 %v12573_v33  ;;  %v11148_v51 = vpop.f32.mrb[54].mxu1  ;;  %v12585_v6 = vld [vmem:[%s13088_s15 + $0x1580] sm:$0xff]   ;;  %v12612_v47 = vld [vmem:[%s13088_s15 + $0x15f8] sm:$0xff]  }
 0x320   : > { %11449 = vmatprep.subr.bf16.mxu1 %v12576_v40  ;;  %v11149_v53 = vpop.f32.mrb[55].mxu1  ;;  %v12614_v51 = vld [vmem:[%s13088_s15 + $0x15b8] sm:$0xff]  }
 0x321   : > { %v13948_v54 = vadd.f32 %v11147_v49, %v8464_v48  ;;  %11428 = vmatpush3.bf16.msra.mxu0 %v12575_v38  ;;  %v12611_v48 = vld [vmem:[%s13088_s15 + $0x1538] sm:$0xff]   ;;  %v2497_v49 = vrot.slane %v13956_v63, %v13151_v42  ;;  %v12616_v53 = vld [vmem:[%s13088_s15 + $0x1600] sm:$0xff]   ;;  %v12624_v63 = vld [vmem:[%s13088_s15 + $0x1610] sm:$0xff]  }
 0x322   : > { %11429 = vmatprep.subr.bf16.mxu0 %v12578_v45 }
 0x323   : > { %11450 = vmatpush3.bf16.msra.mxu1 %v12577_v37  ;;  %v12609_v37 = vld [vmem:[%s13088_s15 + $0x15b0] sm:$0xff]  }
 0x324   : > { %11451 = vmatprep.subr.bf16.mxu1 %v12580_v52  ;;  %v12617_v52 = vld [vmem:[%s13088_s15 + $0x16c0] sm:$0xff]  }
 0x325   : > { %11430 = vmatpush3.bf16.msra.mxu0 %v12579_v50  ;;  %v12615_v50 = vld [vmem:[%s13088_s15 + $0x1640] sm:$0xff]  }
 0x326   : > { %11459 = vmatprep.subr.bf16.mxu0 %v12582_v60  ;;  %v12623_v60 = vld [vmem:[%s13088_s15 + $0x1650] sm:$0xff]  }
 0x327   : > { %11452 = vmatpush3.bf16.msra.mxu1 %v12581_v58  ;;  %v12621_v58 = vld [vmem:[%s13088_s15 + $0x16c8] sm:$0xff]  }
 0x328   : > { %11481 = vmatprep.subr.bf16.mxu1 %v12584_v0  ;;  %9022 = vmatmul.mubr.bf16.vlgmr.msra.gmra.mrb[80].mxu0 %v2490_v62  ;;  %v12625_v62 = vld [vmem:[%s13088_s15 + $0x16d0] sm:$0xff]   ;;  %v12627_v0 = vld [vmem:[%s13088_s15 + $0x1658] sm:$0xff]  }
 0x329   : > { %11460 = vmatpush3.bf16.msra.mxu0 %v12583_v2  ;;  %9101 = vmatprep.mubr.bf16.mxu0 %v2511_v7  ;;  %v12629_v2 = vld [vmem:[%s13088_s15 + $0x16d8] sm:$0xff]   ;;  %v12635_v7 = vld [vmem:[%s13088_s15 + $0x1668] sm:$0xff]  }
 0x32a   : > { %9062 = vmatmul.mubr.bf16.vlgmr.msra.gmra.mrb[80].mxu1 %v2512_v3  ;;  %11461 = vmatprep.subr.bf16.mxu0 %v12586_v4  ;;  %v12631_v3 = vld [vmem:[%s13088_s15 + $0x1660] sm:$0xff]   ;;  %v12630_v4 = vld [vmem:[%s13088_s15 + $0x1698] sm:$0xff]  }
 0x32b   : > { %11482 = vmatpush3.bf16.msra.mxu1 %v12585_v6  ;;  %9141 = vmatprep.mubr.bf16.mxu1 %v2515_v10  ;;  %v12632_v6 = vld [vmem:[%s13088_s15 + $0x1620] sm:$0xff]   ;;  %v12636_v10 = vld [vmem:[%s13088_s15 + $0x1628] sm:$0xff]  }
 0x32c   : > { %11483 = vmatprep.subr.bf16.mxu1 %v12588_v8  ;;  %v12634_v8 = vld [vmem:[%s13088_s15 + $0x16a0] sm:$0xff]  }
 0x32d   : > { %11462 = vmatpush3.bf16.msra.mxu0 %v12587_v9  ;;  %v12637_v9 = vld [vmem:[%s13088_s15 + $0x16e8] sm:$0xff]  }
 0x32e   : > { %11463 = vmatprep.subr.bf16.mxu0 %v12590_v11 }
 0x32f   : > { %11484 = vmatpush3.bf16.msra.mxu1 %v12589_v12  ;;  %v12639_v12 = vld [vmem:[%s13088_s15 + $0x1670] sm:$0xff]  }
 0x330   : > { %11485 = vmatprep.subr.bf16.mxu1 %v12592_v13 }
 0x331   : > { %11464 = vmatpush3.bf16.msra.mxu0 %v12591_v14  ;;  %v12638_v14 = vld [vmem:[%s13088_s15 + $0x16a8] sm:$0xff]  }
 0x332   : > { %11465 = vmatprep.subr.bf16.mxu0 %v12594_v15 }
 0x333   : > { %11486 = vmatpush3.bf16.msra.mxu1 %v12593_v16 }
 0x334   : > { %11487 = vmatprep.subr.bf16.mxu1 %v12596_v17 }
 0x335   : > { %11466 = vmatpush3.bf16.msra.mxu0 %v12595_v18  ;;  %v12640_v18 = vld [vmem:[%s13088_s15 + $0x1630] sm:$0xff]  }
 0x336   : > { %11467 = vmatprep.subr.bf16.mxu0 %v12598_v20  ;;  %v12641_v20 = vld [vmem:[%s13088_s15 + $0x16f0] sm:$0xff]  }
 0x337   : > { %11488 = vmatpush3.bf16.msra.mxu1 %v12597_v19 }
 0x338   : > { %11489 = vmatprep.subr.bf16.mxu1 %v12600_v21 }
 0x339   : > { %11468 = vmatpush3.bf16.msra.mxu0 %v12599_v22  ;;  %v12642_v22 = vld [vmem:[%s13088_s15 + $0x16b0] sm:$0xff]  }
 0x33a   : > { %11469 = vmatprep.subr.bf16.mxu0 %v12602_v24 }
 0x33b   : > { %v11167_v27 = vpop.f32.mrb[56].mxu0  ;;  %11490 = vmatpush3.bf16.msra.mxu1 %v12601_v23 }
 0x33c   : > { %v11168_v29 = vpop.f32.mrb[57].mxu0  ;;  %11491 = vmatprep.subr.bf16.mxu1 %v12604_v25  ;;  %v12643_v25 = vld [vmem:[%s13088_s15 + $0x1678] sm:$0xff]  }
 0x33d   : > { %v11169_v31 = vadd.f32 %v11168_v29, %v11167_v27  ;;  %v11170_v32 = vpop.f32.mrb[58].mxu0  ;;  %v11189_v33 = vpop.f32.mrb[56].mxu1  ;;  %11470 = vmatpush3.bf16.msra.mxu0 %v12603_v26  ;;  %v12644_v27 = vld [vmem:[%s13088_s15 + $0x1638] sm:$0xff]  }
 0x33e   : > { %v11171_v38 = vpop.f32.mrb[59].mxu0  ;;  %v11190_v39 = vpop.f32.mrb[57].mxu1  ;;  %11471 = vmatprep.subr.bf16.mxu0 %v12606_v28 }
 0x33f   : > { %v8544_v40 = vadd.f32 %v11169_v31, %v13948_v54  ;;  %v11191_v41 = vadd.f32 %v11190_v39, %v11189_v33  ;;  %v11192_v44 = vpop.f32.mrb[58].mxu1  ;;  %11492 = vmatpush3.bf16.msra.mxu1 %v12605_v30  ;;  %v2513_v54 = vcombine.high %v2497_v49, %v2497_v49  ;;  %v12645_v30 = vld [vmem:[%s13088_s15 + $0x16f8] sm:$0xff]  }
 0x340   : > { %v11193_v45 = vpop.f32.mrb[59].mxu1  ;;  %11493 = vmatprep.subr.bf16.mxu1 %v12608_v36  ;;  %v394_v31 = vld [vmem:[%s13110_s20 + $0x58] sm:$0xff]  ;;  %v12647_v36 = vld [vmem:[%s13088_s15 + $0x1740] sm:$0xff]  }
 0x341   : > { %v13991_v46 = vadd.f32 %v11191_v41, %v8544_v40  ;;  %11472 = vmatpush3.bf16.msra.mxu0 %v12607_v35  ;;  %v2523_v32 = vrot.slane %v394_v31, %v13151_v42  ;;  %v12646_v33 = vld [vmem:[%s13088_s15 + $0x16b8] sm:$0xff]   ;;  %v2516_v35 = vcombine.high %v394_v31, %v394_v31  ;;  %v12649_v41 = vld [vmem:[%s13088_s15 + $0x17c0] sm:$0xff]   ;;  %v12683_v31 = vld [vmem:[%s13088_s15 + $0x1808] sm:$0xff]  }
 0x342   : > { %11473 = vmatprep.subr.bf16.mxu0 %v12610_v43  ;;  %v12648_v44 = vld [vmem:[%s13088_s15 + $0x1700] sm:$0xff]  }
 0x343   : > { %11494 = vmatpush3.bf16.msra.mxu1 %v12609_v37  ;;  %v2531_v38 = vcombine.high %v2523_v32, %v2523_v32  ;;  %v2539_v39 = vrot.slane %v2523_v32, %v13151_v42  ;;  %v14038_v40 = vrot.slane %v2516_v35, %v13151_v42  ;;  %v12684_v32 = vld [vmem:[%s13088_s15 + $0x1850] sm:$0xff]   ;;  %v12686_v35 = vld [vmem:[%s13088_s15 + $0x1858] sm:$0xff]  }
 0x344   : > { %11495 = vmatprep.subr.bf16.mxu1 %v12612_v47 }
 0x345   : > { %11474 = vmatpush3.bf16.msra.mxu0 %v12611_v48  ;;  %v2553_v43 = vrot.slane %v2531_v38, %v13151_v42  ;;  %v2532_v37 = vcombine.high %v14038_v40, %v14038_v40  ;;  %v2561_v45 = vcombine.high %v2539_v39, %v2539_v39  ;;  %v12650_v48 = vld [vmem:[%s13088_s15 + $0x1780] sm:$0xff]  }
 0x346   : > { %11503 = vmatprep.subr.bf16.mxu0 %v12615_v50  ;;  %v12653_v50 = vld [vmem:[%s13088_s15 + $0x17c8] sm:$0xff]   ;;  %v12688_v38 = vld [vmem:[%s13088_s15 + $0x1860] sm:$0xff]  }
 0x347   : > { %11496 = vmatpush3.bf16.msra.mxu1 %v12614_v51  ;;  %v2563_v47 = vcombine.high %v2553_v43, %v2553_v43  ;;  %v12652_v51 = vld [vmem:[%s13088_s15 + $0x1708] sm:$0xff]  }
 0x348   : > { %9102 = vmatmul.mubr.bf16.vlgmr.msra.gmra.mrb[84].mxu0 %v2497_v49  ;;  %11525 = vmatprep.subr.bf16.mxu1 %v12617_v52  ;;  %v2560_v49 = vrot.slane %v2532_v37, %v13151_v42 }
 0x349   : > { %11504 = vmatpush3.bf16.msra.mxu0 %v12616_v53  ;;  %9181 = vmatprep.mubr.bf16.mxu0 %v2553_v43  ;;  %v12655_v53 = vld [vmem:[%s13088_s15 + $0x1750] sm:$0xff]  }
 0x34a   : > { %9142 = vmatmul.mubr.bf16.vlgmr.msra.gmra.mrb[84].mxu1 %v2513_v54  ;;  %11505 = vmatprep.subr.bf16.mxu0 %v12619_v55  ;;  %v2564_v52 = vcombine.high %v2560_v49, %v2560_v49  ;;  %v12654_v54 = vld [vmem:[%s13088_s15 + $0x1788] sm:$0xff]   ;;  %v12657_v55 = vld [vmem:[%s13088_s15 + $0x17d0] sm:$0xff]  }
 0x34b   : > { %11526 = vmatpush3.bf16.msra.mxu1 %v12618_v57  ;;  %9221 = vmatprep.mubr.bf16.mxu1 %v2563_v47  ;;  %v12656_v57 = vld [vmem:[%s13088_s15 + $0x1710] sm:$0xff]  }
 0x34c   : > { %11527 = vmatprep.subr.bf16.mxu1 %v12621_v58  ;;  %v12659_v58 = vld [vmem:[%s13088_s15 + $0x1758] sm:$0xff]   ;;  %v12692_v47 = vld [vmem:[%s13088_s15 + $0x1870] sm:$0xff]  }
 0x34d   : > { %11506 = vmatpush3.bf16.msra.mxu0 %v12620_v59  ;;  %v12658_v59 = vld [vmem:[%s13088_s15 + $0x1790] sm:$0xff]  }
 0x34e   : > { %11507 = vmatprep.subr.bf16.mxu0 %v12623_v60  ;;  %v12661_v60 = vld [vmem:[%s13088_s15 + $0x17d8] sm:$0xff]  }
 0x34f   : > { %11528 = vmatpush3.bf16.msra.mxu1 %v12622_v61  ;;  %v12660_v61 = vld [vmem:[%s13088_s15 + $0x1718] sm:$0xff]  }
 0x350   : > { %11529 = vmatprep.subr.bf16.mxu1 %v12625_v62  ;;  %v12663_v62 = vld [vmem:[%s13088_s15 + $0x1760] sm:$0xff]  }
 0x351   : > { %11508 = vmatpush3.bf16.msra.mxu0 %v12624_v63  ;;  %v12662_v63 = vld [vmem:[%s13088_s15 + $0x1798] sm:$0xff]  }
 0x352   : > { %11509 = vmatprep.subr.bf16.mxu0 %v12627_v0  ;;  %v12665_v0 = vld [vmem:[%s13088_s15 + $0x17e0] sm:$0xff]  }
 0x353   : > { %11530 = vmatpush3.bf16.msra.mxu1 %v12626_v1  ;;  %v12664_v1 = vld [vmem:[%s13088_s15 + $0x1720] sm:$0xff]  }
 0x354   : > { %11531 = vmatprep.subr.bf16.mxu1 %v12629_v2  ;;  %v12667_v2 = vld [vmem:[%s13088_s15 + $0x1768] sm:$0xff]  }
 0x355   : > { %11510 = vmatpush3.bf16.msra.mxu0 %v12628_v56  ;;  %v12666_v56 = vld [vmem:[%s13088_s15 + $0x17a0] sm:$0xff]  }
 0x356   : > { %11511 = vmatprep.subr.bf16.mxu0 %v12631_v3  ;;  %v12669_v3 = vld [vmem:[%s13088_s15 + $0x17e8] sm:$0xff]  }
 0x357   : > { %11532 = vmatpush3.bf16.msra.mxu1 %v12630_v4 }
 0x358   : > { %11533 = vmatprep.subr.bf16.mxu1 %v12633_v5  ;;  %v12668_v5 = vld [vmem:[%s13088_s15 + $0x1728] sm:$0xff]  }
 0x359   : > { %11512 = vmatpush3.bf16.msra.mxu0 %v12632_v6 }
 0x35a   : > { %11513 = vmatprep.subr.bf16.mxu0 %v12635_v7  ;;  %v12671_v7 = vld [vmem:[%s13088_s15 + $0x1770] sm:$0xff]  }
 0x35b   : > { %v11211_v11 = vpop.f32.mrb[60].mxu0  ;;  %11534 = vmatpush3.bf16.msra.mxu1 %v12634_v8 }
 0x35c   : > { %v11212_v13 = vpop.f32.mrb[61].mxu0  ;;  %11535 = vmatprep.subr.bf16.mxu1 %v12637_v9 }
 0x35d   : > { %v11213_v15 = vadd.f32 %v11212_v13, %v11211_v11  ;;  %v11214_v16 = vpop.f32.mrb[62].mxu0  ;;  %v11233_v17 = vpop.f32.mrb[60].mxu1  ;;  %11514 = vmatpush3.bf16.msra.mxu0 %v12636_v10  ;;  %v12670_v11 = vld [vmem:[%s13088_s15 + $0x17a8] sm:$0xff]  }
 0x35e   : > { %v11215_v19 = vpop.f32.mrb[63].mxu0  ;;  %v11234_v21 = vpop.f32.mrb[61].mxu1  ;;  %11515 = vmatprep.subr.bf16.mxu0 %v12639_v12  ;;  %v12673_v12 = vld [vmem:[%s13088_s15 + $0x17f0] sm:$0xff]  }
 0x35f   : > { %v8624_v24 = vadd.f32 %v11213_v15, %v13991_v46  ;;  %v11235_v23 = vadd.f32 %v11234_v21, %v11233_v17  ;;  %v11236_v26 = vpop.f32.mrb[62].mxu1  ;;  %11536 = vmatpush3.bf16.msra.mxu1 %v12638_v14  ;;  %v12651_v46 = vld [vmem:[%s13088_s15 + $0x1748] sm:$0xff]   ;;  %v12672_v17 = vld [vmem:[%s13088_s15 + $0x1730] sm:$0xff]  }
 0x360   : > { %v11237_v28 = vpop.f32.mrb[63].mxu1  ;;  %11537 = vmatprep.subr.bf16.mxu1 %v12641_v20  ;;  %v12675_v20 = vld [vmem:[%s13088_s15 + $0x1778] sm:$0xff]   ;;  %v12680_v26 = vld [vmem:[%s13088_s15 + $0x1840] sm:$0xff]  }
 0x361   : > { %v14029_v29 = vadd.f32 %v11235_v23, %v8624_v24  ;;  %11516 = vmatpush3.bf16.msra.mxu0 %v12640_v18  ;;  %v12677_v24 = vld [vmem:[%s13088_s15 + $0x17f8] sm:$0xff]   ;;  %v12681_v28 = vld [vmem:[%s13088_s15 + $0x1800] sm:$0xff]  }
 0x362   : > { %11517 = vmatprep.subr.bf16.mxu0 %v12643_v25  ;;  %v12676_v23 = vld [vmem:[%s13088_s15 + $0x1738] sm:$0xff]   ;;  %v2546_v25 = vrot.slane %v14038_v40, %v13151_v42 }
 0x363   : > { %11538 = vmatpush3.bf16.msra.mxu1 %v12642_v22  ;;  %v12674_v22 = vld [vmem:[%s13088_s15 + $0x17b0] sm:$0xff]  }
 0x364   : > { %11539 = vmatprep.subr.bf16.mxu1 %v12645_v30  ;;  %v12682_v30 = vld [vmem:[%s13088_s15 + $0x1848] sm:$0xff]  }
 0x365   : > { %11518 = vmatpush3.bf16.msra.mxu0 %v12644_v27  ;;  %v12679_v27 = vld [vmem:[%s13088_s15 + $0x17b8] sm:$0xff]  }
 0x366   : > { %11547 = vmatprep.subr.bf16.mxu0 %v12647_v36  ;;  %v12687_v36 = vld [vmem:[%s13088_s15 + $0x1818] sm:$0xff]  }
 0x367   : > { %11540 = vmatpush3.bf16.msra.mxu1 %v12646_v33  ;;  %v12685_v33 = vld [vmem:[%s13088_s15 + $0x1810] sm:$0xff]  }
 0x368   : > { %11569 = vmatprep.subr.bf16.mxu1 %v12649_v41  ;;  %9182 = vmatmul.mubr.bf16.vlgmr.msra.gmra.mrb[88].mxu0 %v2539_v39  ;;  %v9743_v39 = vld.sshfl [vmem:[%s13110_s20 + $0x60] sm:$0x11 pattern:$0x75316420]  ;;  %v12689_v41 = vld [vmem:[%s13088_s15 + $0x1820] sm:$0xff]  }
 0x369   : > { %11548 = vmatpush3.bf16.msra.mxu0 %v12648_v44  ;;  %9261 = vmatprep.mubr.bf16.mxu0 %v2560_v49  ;;  %v2572_v40 = vcombine.high %v9743_v39, %v9743_v39  ;;  %v12690_v44 = vld [vmem:[%s13088_s15 + $0x1868] sm:$0xff]  }
 0x36a   : > { %9222 = vmatmul.mubr.bf16.vlgmr.msra.gmra.mrb[88].mxu1 %v2561_v45  ;;  %11549 = vmatprep.subr.bf16.mxu0 %v12651_v46  ;;  %v12691_v45 = vld [vmem:[%s13088_s15 + $0x1828] sm:$0xff]  }
 0x36b   : > { %11570 = vmatpush3.bf16.msra.mxu1 %v12650_v48  ;;  %9301 = vmatprep.mubr.bf16.mxu1 %v2564_v52  ;;  %v2586_v43 = vrot.slane %v2572_v40, %v13151_v42 }
 0x36c   : > { %11571 = vmatprep.subr.bf16.mxu1 %v12653_v50 }
 0x36d   : > { %11550 = vmatpush3.bf16.msra.mxu0 %v12652_v51 }
 0x36e   : > { %11551 = vmatprep.subr.bf16.mxu0 %v12655_v53 }
 0x36f   : > { %11572 = vmatpush3.bf16.msra.mxu1 %v12654_v54 }
 0x370   : > { %11573 = vmatprep.subr.bf16.mxu1 %v12657_v55  ;;  %v12693_v55 = vld [vmem:[%s13088_s15 + $0x1830] sm:$0xff]  }
 0x371   : > { %11552 = vmatpush3.bf16.msra.mxu0 %v12656_v57 }
 0x372   : > { %11553 = vmatprep.subr.bf16.mxu0 %v12659_v58  ;;  %v12694_v58 = vld [vmem:[%s13088_s15 + $0x1878] sm:$0xff]  }
 0x373   : > { %11574 = vmatpush3.bf16.msra.mxu1 %v12658_v59 }
 0x374   : > { %11575 = vmatprep.subr.bf16.mxu1 %v12661_v60 }
 0x375   : > { %11554 = vmatpush3.bf16.msra.mxu0 %v12660_v61  ;;  %v12695_v61 = vld [vmem:[%s13088_s15 + $0x1838] sm:$0xff]  }
 0x376   : > { %11555 = vmatprep.subr.bf16.mxu0 %v12663_v62  ;;  %v2579_v62 = vrot.slane %v9743_v39, %v13151_v42 }
 0x377   : > { %11576 = vmatpush3.bf16.msra.mxu1 %v12662_v63 }
 0x378   : > { %11577 = vmatprep.subr.bf16.mxu1 %v12665_v0 }
 0x379   : > { %11556 = vmatpush3.bf16.msra.mxu0 %v12664_v1 }
 0x37a   : > { %11557 = vmatprep.subr.bf16.mxu0 %v12667_v2 }
 0x37b   : > { %v11255_v4 = vpop.f32.mrb[64].mxu0  ;;  %11578 = vmatpush3.bf16.msra.mxu1 %v12666_v56 }
 0x37c   : > { %v11256_v6 = vpop.f32.mrb[65].mxu0  ;;  %11579 = vmatprep.subr.bf16.mxu1 %v12669_v3 }
 0x37d   : > { %v11257_v8 = vadd.f32 %v11256_v6, %v11255_v4  ;;  %v11258_v9 = vpop.f32.mrb[66].mxu0  ;;  %v11277_v10 = vpop.f32.mrb[64].mxu1  ;;  %11558 = vmatpush3.bf16.msra.mxu0 %v12668_v5 }
 0x37e   : > { %v11259_v13 = vpop.f32.mrb[67].mxu0  ;;  %v11278_v14 = vpop.f32.mrb[65].mxu1  ;;  %11559 = vmatprep.subr.bf16.mxu0 %v12671_v7 }
 0x37f   : > { %v8704_v15 = vadd.f32 %v11257_v8, %v14029_v29  ;;  %v11279_v16 = vadd.f32 %v11278_v14, %v11277_v10  ;;  %v11280_v18 = vpop.f32.mrb[66].mxu1  ;;  %11580 = vmatpush3.bf16.msra.mxu1 %v12670_v11  ;;  %v2562_v29 = vcombine.high %v2546_v25, %v2546_v25 }
 0x380   : > { %v11281_v19 = vpop.f32.mrb[67].mxu1  ;;  %11581 = vmatprep.subr.bf16.mxu1 %v12673_v12 }
 0x381   : > { %v8744_v21 = vadd.f32 %v11279_v16, %v8704_v15  ;;  %11560 = vmatpush3.bf16.msra.mxu0 %v12672_v17 }
 0x382   : > { %11561 = vmatprep.subr.bf16.mxu0 %v12675_v20 }
 0x383   : > { %11582 = vmatpush3.bf16.msra.mxu1 %v12674_v22 }
 0x384   : > { %11583 = vmatprep.subr.bf16.mxu1 %v12677_v24 }
 0x385   : > { %11562 = vmatpush3.bf16.msra.mxu0 %v12676_v23 }
 0x386   : > { %11591 = vmatprep.subr.bf16.mxu0 %v12680_v26 }
 0x387   : > { %11584 = vmatpush3.bf16.msra.mxu1 %v12679_v27 }
 0x388   : > { %9262 = vmatmul.mubr.bf16.vlgmr.msra.gmra.mrb[92].mxu0 %v2546_v25 }
 0x389   : > { %11592 = vmatpush3.bf16.msra.mxu0 %v12681_v28  ;;  %9341 = vmatprep.mubr.bf16.mxu0 %v2586_v43 }
 0x38a   : > { %9302 = vmatmul.mubr.bf16.vlgmr.msra.gmra.mrb[92].mxu1 %v2562_v29  ;;  %11593 = vmatprep.subr.bf16.mxu0 %v12682_v30 }
 0x38d   : > { %11594 = vmatpush3.bf16.msra.mxu0 %v12683_v31 }
 0x38e   : > { %11595 = vmatprep.subr.bf16.mxu0 %v12684_v32 }
 0x391   : > { %11596 = vmatpush3.bf16.msra.mxu0 %v12685_v33 }
 0x392   : > { %11597 = vmatprep.subr.bf16.mxu0 %v12686_v35 }
 0x395   : > { %11598 = vmatpush3.bf16.msra.mxu0 %v12687_v36 }
 0x396   : > { %11599 = vmatprep.subr.bf16.mxu0 %v12688_v38 }
 0x399   : > { %11600 = vmatpush3.bf16.msra.mxu0 %v12689_v41 }
 0x39a   : > { %11601 = vmatprep.subr.bf16.mxu0 %v12690_v44 }
 0x39b   : > { %v11299_v37 = vpop.f32.mrb[68].mxu0 }
 0x39c   : > { %v11300_v46 = vpop.f32.mrb[69].mxu0 }
 0x39d   : > { %v11301_v48 = vadd.f32 %v11300_v46, %v11299_v37  ;;  %v11302_v49 = vpop.f32.mrb[70].mxu0  ;;  %v11321_v50 = vpop.f32.mrb[68].mxu1  ;;  %11602 = vmatpush3.bf16.msra.mxu0 %v12691_v45 }
 0x39e   : > { %v11303_v51 = vpop.f32.mrb[71].mxu0  ;;  %v11322_v52 = vpop.f32.mrb[69].mxu1  ;;  %11603 = vmatprep.subr.bf16.mxu0 %v12692_v47 }
 0x39f   : > { %v8784_v53 = vadd.f32 %v11301_v48, %v8744_v21  ;;  %v11323_v54 = vadd.f32 %v11322_v52, %v11321_v50  ;;  %v11324_v57 = vpop.f32.mrb[70].mxu1 }
 0x3a0   : > { %v11325_v59 = vpop.f32.mrb[71].mxu1 }
 0x3a1   : > { %v8824_v60 = vadd.f32 %v11323_v54, %v8784_v53  ;;  %11604 = vmatpush3.bf16.msra.mxu0 %v12693_v55 }
 0x3a2   : > { %11605 = vmatprep.subr.bf16.mxu0 %v12694_v58 }
 0x3a5   : > { %11606 = vmatpush3.bf16.msra.mxu0 %v12695_v61 }
 0x3a8   : > { %9342 = vmatmul.mubr.bf16.vlgmr.msra.gmra.mrb[96].mxu0 %v2579_v62 }
 0x3bb   : > { %v11343_v63 = vpop.f32.mrb[72].mxu0 }
 0x3bc   : > { %v11344_v0 = vpop.f32.mrb[73].mxu0 }
 0x3bd   : > { %v11345_v1 = vadd.f32 %v11344_v0, %v11343_v63  ;;  %v11346_v2 = vpop.f32.mrb[74].mxu0  ;;  %v11365_v56 = vpop.f32.mrb[72].mxu1 }
 0x3be   : > { %v11347_v3 = vpop.f32.mrb[75].mxu0  ;;  %v11366_v4 = vpop.f32.mrb[73].mxu1 }
 0x3bf   : > { %v8864_v5 = vadd.f32 %v11345_v1, %v8824_v60  ;;  %v11367_v6 = vadd.f32 %v11366_v4, %v11365_v56  ;;  %v11368_v7 = vpop.f32.mrb[74].mxu1 }
 0x3c0   : > { %v11369_v8 = vpop.f32.mrb[75].mxu1 }
 0x3c1   : > { %v8904_v9 = vadd.f32 %v11367_v6, %v8864_v5 }
 0x3db   : > { %v11387_v10 = vpop.f32.mrb[76].mxu0 }
 0x3dc   : > { %v11388_v11 = vpop.f32.mrb[77].mxu0 }
 0x3dd   : > { %v11389_v12 = vadd.f32 %v11388_v11, %v11387_v10  ;;  %v11390_v13 = vpop.f32.mrb[78].mxu0  ;;  %v11409_v14 = vpop.f32.mrb[76].mxu1  ;;  %v382_v11 = vld [vmem:[#allocation2] sm:$0x3] }
 0x3de   : > { %v11391_v42 = vpop.f32.mrb[79].mxu0  ;;  %v11410_v15 = vpop.f32.mrb[77].mxu1 }
 0x3df   : > { %v8944_v16 = vadd.f32 %v11389_v12, %v8904_v9  ;;  %v11411_v17 = vadd.f32 %v11410_v15, %v11409_v14  ;;  %v11412_v18 = vpop.f32.mrb[78].mxu1  ;;  %v9356_v42 = vld [vmem:[%s14223_s4] sm:$0xff] (!%p10528_p10)  ;;  %v9357_v15 = vld [vmem:[%s14223_s4 + $0x8] sm:$0xff] (!%p10528_p10) }
 0x3e0   : > { %v11413_v20 = vpop.f32.mrb[79].mxu1  ;;  %v11743_v18 = vpack.c.bf16 (!%p10528_p10), %v9357_v15, %v9356_v42 }
 0x3e1   : > { %v8984_v19 = vadd.f32 %v11411_v17, %v8944_v16  ;;  %v9444_v16 = vld [vmem:[%s14224_s5] sm:$0xff] (!%p10528_p10)  ;;  %v12861_v17 = vmov (!%p10528_p10), 0.0|0.0   ;;  %v9445_v20 = vld [vmem:[%s14224_s5 + $0x8] sm:$0xff] (!%p10528_p10) }
 0x3e2   : > { %11742 = vmatprep.subr.bf16.mxu0 (!%p10528_p10), %v12861_v17  ;;  %11766 = vmatprep.subr.bf16.mxu1 (!%p10528_p10), %v12861_v17 }
 0x3e3   : > { %11744 = vmatpush3.bf16.msra.mxu0 (!%p10528_p10), %v11743_v18 }
 0x3e4   : > { %11745 = vmatprep.subr.bf16.mxu0 (!%p10528_p10), %v12861_v17 }
 0x3fb   : > { %v11431_v21 = vpop.f32.mrb[80].mxu0 }
 0x3fc   : > { %v11432_v22 = vpop.f32.mrb[81].mxu0 }
 0x3fd   : > { %v11433_v24 = vadd.f32 %v11432_v22, %v11431_v21  ;;  %v11434_v23 = vpop.f32.mrb[82].mxu0  ;;  %v11453_v25 = vpop.f32.mrb[80].mxu1  ;;  %v9359_v21 = vld [vmem:[%s14223_s4 + $0x18] sm:$0xff] (!%p10528_p10)  ;;  %v11767_v22 = vpack.c.bf16 (!%p10528_p10), %v9445_v20, %v9444_v16 }
 0x3fe   : > { %v11435_v26 = vpop.f32.mrb[83].mxu0  ;;  %v11454_v27 = vpop.f32.mrb[81].mxu1  ;;  %v9447_v23 = vld [vmem:[%s14224_s5 + $0x18] sm:$0xff] (!%p10528_p10) }
 0x3ff   : > { %v9024_v28 = vadd.f32 %v11433_v24, %v8984_v19  ;;  %v11455_v29 = vadd.f32 %v11454_v27, %v11453_v25  ;;  %v11456_v30 = vpop.f32.mrb[82].mxu1  ;;  %v9358_v19 = vld [vmem:[%s14223_s4 + $0x10] sm:$0xff] (!%p10528_p10)  ;;  %v12863_v25 = vmov (!%p10528_p10), 0.0   ;;  %11768 = vmatpush3.bf16.msra.mxu1 (!%p10528_p10), %v11767_v22 }
 0x400   : > { %v11457_v31 = vpop.f32.mrb[83].mxu1  ;;  %v9446_v24 = vld [vmem:[%s14224_s5 + $0x10] sm:$0xff] (!%p10528_p10)  ;;  %11704 = vmatprep.mubr.msk.f32.mxu1 (!%p10528_p10), %vm12862_vm0, %v12863_v25  ;;  %11687 = vmatprep.mubr.msk.f32.mxu0 (!%p10528_p10), %vm12862_vm0, %v12863_v25  ;;  %v11746_v26 = vpack.c.bf16 (!%p10528_p10), %v9359_v21, %v9358_v19  ;;  %v9448_v30 = vld [vmem:[%s14224_s5 + $0x20] sm:$0xff] (!%p10528_p10) }
 0x401   : > { %v9064_v32 = vadd.f32 %v11455_v29, %v9024_v28  ;;  %v11770_v27 = vpack.c.bf16 (!%p10528_p10), %v9447_v23, %v9446_v24  ;;  %v9360_v28 = vld [vmem:[%s14223_s4 + $0x20] sm:$0xff] (!%p10528_p10)  ;;  %v9361_v29 = vld [vmem:[%s14223_s4 + $0x28] sm:$0xff] (!%p10528_p10)  ;;  %11769 = vmatprep.subr.bf16.mxu1 (!%p10528_p10), %v12861_v17 }
 0x402   : > { %v9449_v31 = vld [vmem:[%s14224_s5 + $0x28] sm:$0xff] (!%p10528_p10)  ;;  %11747 = vmatpush3.bf16.msra.mxu0 (!%p10528_p10), %v11746_v26 }
 0x403   : > { %11771 = vmatpush3.bf16.msra.mxu1 (!%p10528_p10), %v11770_v27  ;;  %11748 = vmatprep.subr.bf16.mxu0 (!%p10528_p10), %v12861_v17 }
 0x404   : > { %11772 = vmatprep.subr.bf16.mxu1 (!%p10528_p10), %v12861_v17 }
 0x41b   : > { %v11475_v33 = vpop.f32.mrb[84].mxu0 }
 0x41c   : > { %v11476_v35 = vpop.f32.mrb[85].mxu0 }
 0x41d   : > { %v11477_v36 = vadd.f32 %v11476_v35, %v11475_v33  ;;  %v11478_v38 = vpop.f32.mrb[86].mxu0  ;;  %v11497_v39 = vpop.f32.mrb[84].mxu1  ;;  %v11773_v33 = vpack.c.bf16 (!%p10528_p10), %v9449_v31, %v9448_v30  ;;  %v9362_v35 = vld [vmem:[%s14223_s4 + $0x30] sm:$0xff] (!%p10528_p10) }
 0x41e   : > { %v11479_v40 = vpop.f32.mrb[87].mxu0  ;;  %v11498_v41 = vpop.f32.mrb[85].mxu1 }
 0x41f   : > { %v9104_v43 = vadd.f32 %v11477_v36, %v9064_v32  ;;  %v11499_v44 = vadd.f32 %v11498_v41, %v11497_v39  ;;  %v11500_v37 = vpop.f32.mrb[86].mxu1  ;;  %v11749_v32 = vpack.c.bf16 (!%p10528_p10), %v9361_v29, %v9360_v28  ;;  %v9363_v36 = vld [vmem:[%s14223_s4 + $0x38] sm:$0xff] (!%p10528_p10)  ;;  %11774 = vmatpush3.bf16.msra.mxu1 (!%p10528_p10), %v11773_v33  ;;  %v9364_v39 = vld [vmem:[%s14223_s4 + $0x40] sm:$0xff] (!%p10528_p10)  ;;  %v9365_v40 = vld [vmem:[%s14223_s4 + $0x48] sm:$0xff] (!%p10528_p10) }
 0x420   : > { %v11501_v45 = vpop.f32.mrb[87].mxu1  ;;  %v11752_v38 = vpack.c.bf16 (!%p10528_p10), %v9363_v36, %v9362_v35  ;;  %11702 = vmatprep.subr.mxu1 (!%p10528_p10), %v12863_v25  ;;  %v9450_v41 = vld [vmem:[%s14224_s5 + $0x30] sm:$0x7] (!%p10528_p10) }
 0x421   : > { %v9144_v46 = vadd.f32 %v11499_v44, %v9104_v43  ;;  %11750 = vmatpush3.bf16.msra.mxu0 (!%p10528_p10), %v11749_v32  ;;  %v9443_v43 = vld [vmem:[%s14222_s3] sm:$0x3] (!%p10528_p10)  ;;  %v11755_v44 = vpack.c.bf16 (!%p10528_p10), %v9365_v40, %v9364_v39  ;;  %v9366_v37 = vld [vmem:[%s14223_s4 + $0x50] sm:$0xff] (!%p10528_p10)  ;;  %v9367_v45 = vld [vmem:[%s14223_s4 + $0x58] sm:$0xff] (!%p10528_p10) }
 0x422   : > { %11751 = vmatprep.subr.bf16.mxu0 (!%p10528_p10), %v12861_v17 }
 0x423   : > { %11703 = vmatpush3.msk.msra.mxu1 (!%p10528_p10), %vm9455_vm1, %v9450_v41 }
 0x424   : > { %11705 = vmatmul.mubr.msk.f32.vlgmr.msra.gmra.mrb[0].mxu1 (!%p10528_p10), %vm9451_vm2, %v9443_v43  ;;  %11775 = vmatprep.subr.bf16.mxu1 (!%p10528_p10), %v12861_v17 }
 0x425   : > { %11753 = vmatpush3.bf16.msra.mxu0 (!%p10528_p10), %v11752_v38  ;;  %11777 = vmatpush3.bf16.msra.mxu1 (!%p10528_p10), %v11743_v18 }
 0x426   : > { %11754 = vmatprep.subr.bf16.mxu0 (!%p10528_p10), %v12861_v17  ;;  %11739 = vmatprep.mubr.msk.f32.mxu1 (!%p10528_p10), %vm12862_vm0, %v12863_v25 }
 0x427   : > { %11778 = vmatprep.subr.bf16.mxu1 (!%p10528_p10), %v12861_v17 }
 0x429   : > { %11756 = vmatpush3.bf16.msra.mxu0 (!%p10528_p10), %v11755_v44  ;;  %11780 = vmatpush3.bf16.msra.mxu1 (!%p10528_p10), %v11746_v26 }
 0x42a   : > { %11757 = vmatprep.subr.bf16.mxu0 (!%p10528_p10), %v12861_v17  ;;  %11781 = vmatprep.subr.bf16.mxu1 (!%p10528_p10), %v12861_v17 }
 0x42d   : > { %11783 = vmatpush3.bf16.msra.mxu1 (!%p10528_p10), %v11749_v32 }
 0x42e   : > { %11784 = vmatprep.subr.bf16.mxu1 (!%p10528_p10), %v12861_v17 }
 0x431   : > { %11786 = vmatpush3.bf16.msra.mxu1 (!%p10528_p10), %v11752_v38 }
 0x432   : > { %11787 = vmatprep.subr.bf16.mxu1 (!%p10528_p10), %v12861_v17 }
 0x435   : > { %11789 = vmatpush3.bf16.msra.mxu1 (!%p10528_p10), %v11755_v44 }
 0x436   : > { %11790 = vmatprep.subr.bf16.mxu1 (!%p10528_p10), %v12861_v17 }
 0x43b   : > { %v11519_v47 = vpop.f32.mrb[88].mxu0 }
 0x43c   : > { %v11520_v48 = vpop.f32.mrb[89].mxu0 }
 0x43d   : > { %v11521_v49 = vadd.f32 %v11520_v48, %v11519_v47  ;;  %v11522_v50 = vpop.f32.mrb[90].mxu0  ;;  %v11541_v51 = vpop.f32.mrb[88].mxu1  ;;  %v9368_v47 = vld [vmem:[%s14223_s4 + $0x60] sm:$0xff] (!%p10528_p10)  ;;  %v9369_v48 = vld [vmem:[%s14223_s4 + $0x68] sm:$0xff] (!%p10528_p10) }
 0x43e   : > { %v11523_v52 = vpop.f32.mrb[91].mxu0  ;;  %v11542_v53 = vpop.f32.mrb[89].mxu1  ;;  %v9370_v50 = vld [vmem:[%s14223_s4 + $0x70] sm:$0xff] (!%p10528_p10) }
 0x43f   : > { %v9184_v54 = vadd.f32 %v11521_v49, %v9144_v46  ;;  %v11543_v55 = vadd.f32 %v11542_v53, %v11541_v51  ;;  %v11544_v57 = vpop.f32.mrb[90].mxu1  ;;  %v11758_v46 = vpack.c.bf16 (!%p10528_p10), %v9367_v45, %v9366_v37  ;;  %v11761_v49 = vpack.c.bf16 (!%p10528_p10), %v9369_v48, %v9368_v47  ;;  %v9371_v51 = vld [vmem:[%s14223_s4 + $0x78] sm:$0xff] (!%p10528_p10)  ;;  %v9372_v53 = vld [vmem:[#allocation5] sm:$0x1] (!%p10528_p10) }
 0x440   : > { %v11545_v58 = vpop.f32.mrb[91].mxu1  ;;  %v11764_v52 = vpack.c.bf16 (!%p10528_p10), %v9371_v51, %v9370_v50 }
 0x441   : > { %v9224_v59 = vadd.f32 %v11543_v55, %v9184_v54  ;;  %11759 = vmatpush3.bf16.msra.mxu0 (!%p10528_p10), %v11758_v46  ;;  %11792 = vmatpush3.bf16.msra.mxu1 (!%p10528_p10), %v11758_v46  ;;  %v9531_v58 = vsub.s32 (!%p10528_p10), 0, %v13145_v34 }
 0x442   : > { %11760 = vmatprep.subr.bf16.mxu0 (!%p10528_p10), %v12861_v17  ;;  %11793 = vmatprep.subr.bf16.mxu1 (!%p10528_p10), %v12861_v17 }
 0x445   : > { %11762 = vmatpush3.bf16.msra.mxu0 (!%p10528_p10), %v11761_v49  ;;  %11795 = vmatpush3.bf16.msra.mxu1 (!%p10528_p10), %v11761_v49 }
 0x446   : > { %11763 = vmatprep.subr.bf16.mxu0 (!%p10528_p10), %v12861_v17  ;;  %11796 = vmatprep.subr.bf16.mxu1 (!%p10528_p10), %v12861_v17 }
 0x449   : > { %11765 = vmatpush3.bf16.msra.mxu0 (!%p10528_p10), %v11764_v52  ;;  %11798 = vmatpush3.bf16.msra.mxu1 (!%p10528_p10), %v11764_v52 }
 0x44c   : > { %11688 = vmatmul.mubr.f32.vlgmr.msra.gmra.mrb[0].mxu0 (!%p10528_p10), %v9372_v53 }
 0x45b   : > { %v11563_v60 = vpop.f32.mrb[92].mxu0 }
 0x45c   : > { %v11564_v61 = vpop.f32.mrb[93].mxu0 }
 0x45d   : > { %v11565_v62 = vadd.f32 %v11564_v61, %v11563_v60  ;;  %v11566_v63 = vpop.f32.mrb[94].mxu0  ;;  %v11585_v0 = vpop.f32.mrb[92].mxu1 }
 0x45e   : > { %v11567_v1 = vpop.f32.mrb[95].mxu0  ;;  %v11586_v2 = vpop.f32.mrb[93].mxu1  ;;  %v10531_v63 = vld [vmem:[#allocation7] ss:$0 sm:$0xff] (!%p10528_p10) }
 0x45f   : > { %v9264_v56 = vadd.f32 %v11565_v62, %v9224_v59  ;;  %v11587_v3 = vadd.f32 %v11586_v2, %v11585_v0  ;;  %v11588_v4 = vpop.f32.mrb[94].mxu1 }
 0x460   : > { %v11589_v5 = vpop.f32.mrb[95].mxu1 }
 0x461   : > { %v9304_v6 = vadd.f32 %v11587_v3, %v9264_v56 }
 0x47b   : > { %v11607_v7 = vpop.f32.mrb[96].mxu0 }
 0x47c   : > { %v11608_v8 = vpop.f32.mrb[97].mxu0 }
 0x47d   : > { %v11609_v9 = vadd.f32 %v11608_v8, %v11607_v7  ;;  %v11610_v10 = vpop.f32.mrb[98].mxu0  ;;  %9354 = sbr.rel (%p10528_p10) target bundleno = 1378 (0x562), region = 68 }
 0x47e   : > { %v11611_v12 = vpop.f32.mrb[99].mxu0 }
 0x47f   : > { %v9344_v13 = vadd.f32 %v11609_v9, %v9304_v6 }
 0x481   : > { %v9349_v14 = vadd.f32 %v9344_v13, %v382_v11 }
 0x483   : > { %9350 = vst [vmem:[#allocation2] sm:$0x3] %v9349_v14 }
 0x484   : > { %s9543_s21 = scalar_select %p9542_p0, 1, 0 }
 0x486   : > { %v9544_v0 = vstv %s9543_s21 }
 0x487   : > { %vm9545_vm3 = vcmp.eq.s32.totalorder %v9544_v0, 1 }
 0x48a   : > { %v9355_v54 = vld [vmem:[#allocation2] sm:$0x3] }
 0x48b   : > { %11740 = vmatmul.mubr.f32.vlgmr.msra.gmra.mrb[2].mxu1 %v9355_v54 }
 0x4f7   : > { %v9525_v55 = vpop.f32.mrb[0].mxu1 }
 0x4f8   : > { %v11706_v57 = vpop.f32.mrb[1].mxu1 }
 0x51f   : > { %v9439_v59 = vpop.f32.mrb[0].mxu0 }
 0x520   : > { %v9532_v60 = vrot.slane %v9439_v59, %v9531_v58  ;;  %v11689_v61 = vpop.f32.mrb[1].mxu0 }
 0x522   : > { %v9533_v62 = vadd.f32 %v9532_v60, %v9525_v55 }
 0x524   : > { %v9541_v1 = vadd.f32 %v10531_v63, %v9533_v62 }
 0x526   : > { %v9546_v2 = vsel %vm9545_vm3, %v9541_v1, 0.0 }
 0x55e   : > { %v9613_v56 = vpop.f32.mrb[2].mxu1 }
 0x55f   : > { %v9614_v3 = vadd.f32 %v9613_v56, %v9546_v2  ;;  %v11741_v4 = vpop.f32.mrb[3].mxu1 }
 0x561   : > { %9618 = vst.msk [vmem:[%s13105_s14] sm:$0x3] %vm9617_vm4, %v9614_v3 }
 0x562 PF: > { %s21_s8 = sadd.s32 1, %s12852_s8   ;;  %s14249_s28 = smov %s13083_s24 }
 0x563   : > { %p18_p13 = scmp.ge.s32.totalorder %s21_s8, 6   ;;  %s14250_s2 = sld [smem:[#allocation10_spill]] }
 0x564   : > { %s14251_s24 = smov %s12828_s25  ;;  %s14252_s25 = smov %s12832_s26 }
 0x565   : > { %s14253_s26 = smov %s14249_s28  ;;  %s14254_s27 = smov %s12844_s29 }
 0x566   : > { %s14256_s29 = smov %s14259_s22  ;;  %s14257_s30 = smov %s14263_s23 }
 0x567   :  { %20 = sbr.rel (!%p18_p13) target bundleno = 9 (0x9), region = 107 }
 0x569   : > { %s14255_s28 = smov %s14250_s2 }
 0x56e   :  { %9638 = vsyncpa [#allocation4], 1 }
 0x56f   :  { %9640 = vsyncpa [#allocation4 + $0x1], 1 }
 0x570   :  { %9641 = vsyncpa [#allocation6], 1 }

</bundles_post_ra>
